<compile_context>
chip_gen: v7x
topology: tpu7x:2x2x1
jax: 0.10.0
libtpu: 0.0.40
codegen_flags: <defaults>
</compile_context>

<pallas_src>
import functools

import jax
import jax.numpy as jnp
from jax import lax
from jax.experimental import pallas as pl
from jax.experimental.pallas import tpu as pltpu


def _round_up(v, m):
    return (v + m - 1) // m * m


# ----------------------------------------------------------------------------
# Kernel
# ----------------------------------------------------------------------------
def _pool_stage(pbuf, cur, *, off, hw, width, r, w_masks):
    """(2r+1)x(2r+1) max-pool, stride 1, -inf padding, on a flat (H*W, C) map.

    `pbuf` is a VMEM scratch of shape (hw + 2*off, C) whose border rows
    (outside [off, off+hw)) hold -1e30.  Shifts along H are whole image rows
    (multiples of `width`) in flat layout; shifts along W are +-d rows with a
    per-column validity mask (precomputed in `w_masks`) to avoid wrapping
    across image rows.
    """
    neg = jnp.float32(-1e30)
    # Stage the input map into the interior of the padded buffer.
    pbuf[pl.ds(off, hw), :] = cur
    # Max over the H (row) axis: taps are static slices of the padded buffer.
    m = pbuf[pl.ds(off - r * width, hw), :]
    for d in range(-r + 1, r + 1):
        m = jnp.maximum(m, pbuf[pl.ds(off + d * width, hw), :])
    # Stage the row-pooled map and max over the W (column) axis.
    pbuf[pl.ds(off, hw), :] = m
    out = m
    for d in range(1, r + 1):
        left_ok, right_ok = w_masks[d - 1]
        rgt = jnp.where(right_ok, pbuf[pl.ds(off + d, hw), :], neg)
        lft = jnp.where(left_ok, pbuf[pl.ds(off - d, hw), :], neg)
        out = jnp.maximum(out, jnp.maximum(rgt, lft))
    return out


def _spp_kernel(x_ref, w1_ref, b1_ref, w2_ref, b2_ref, o_ref, pbuf,
                *, height, width, radii):
    hw = height * width
    rmax = max(radii)
    off = rmax * width
    cp = pbuf.shape[1]

    # -inf halo rows (top/bottom), reused by every pooling stage of this step.
    pbuf[pl.ds(0, off), :] = jnp.full((off, cp), -1e30, jnp.float32)
    pbuf[pl.ds(off + hw, off), :] = jnp.full((off, cp), -1e30, jnp.float32)

    # cv1: 1x1 conv (BN scale folded into weights) + bias + SiLU, f32 accum.
    x = x_ref[0]                                              # (hw, C1p) bf16
    y = jnp.dot(x, w1_ref[...], preferred_element_type=jnp.float32)
    y = y + b1_ref[...]
    y = y * jax.nn.sigmoid(y)                                 # SiLU, f32

    # Column-validity masks for the W-axis taps, hoisted out of the stages.
    w_idx = lax.broadcasted_iota(jnp.int32, (hw, 1), 0) % width
    w_masks = [(w_idx >= d, w_idx < width - d) for d in range(1, rmax + 1)]

    # cv2 accumulates directly over the virtual channel-concat
    # [y, pool_k0(y), pool_k1(y), ...]; pooled maps never leave VMEM.
    acc = jnp.dot(y.astype(w2_ref.dtype), w2_ref[0],
                  preferred_element_type=jnp.float32)
    cur = y
    for i, r in enumerate(radii):
        cur = _pool_stage(pbuf, cur, off=off, hw=hw, width=width, r=r,
                          w_masks=w_masks)
        acc = acc + jnp.dot(cur.astype(w2_ref.dtype), w2_ref[i + 1],
                            preferred_element_type=jnp.float32)

    z = acc + b2_ref[...]
    z = z * jax.nn.sigmoid(z)                                 # SiLU
    o_ref[0] = z.astype(o_ref.dtype)


# ----------------------------------------------------------------------------
# Wrapper
# ----------------------------------------------------------------------------
def _fold_bn(w, gamma, beta, mean, var, eps):
    """Fold eval-mode BN into a 1x1 conv weight. Returns ((c_in, c_out), (c_out,))."""
    scale = gamma / jnp.sqrt(var + eps)
    w_mat = w[:, :, 0, 0] * scale[:, None]            # (c_out, c_in)
    bias = beta - mean * scale
    return w_mat.T, bias


def spp_forward(x_nchw, w1, bn1, w2, bn2, *, k=(5, 9, 13), eps=1e-5):
    """SPP forward. x is NCHW; w1: (c_, c1, 1, 1); w2: (c2, c_*(len(k)+1), 1, 1)."""
    n, c1, h, w = x_nchw.shape
    c_ = w1.shape[0]
    c2 = w2.shape[0]
    npool = len(k)
    assert w1.shape == (c_, c1, 1, 1)
    assert w2.shape == (c2, c_ * (npool + 1), 1, 1)

    # Incremental pooling radii (maxpool composition): needs increasing odd k.
    radii = []
    prev = 1
    for kk in k:
        kk = int(kk)
        assert kk % 2 == 1 and kk > prev, "k must be increasing odd windows"
        radii.append((kk - prev) // 2)
        prev = kk
    rmax = max(radii)
    off = rmax * w
    hw = h * w

    c1p = _round_up(c1, 128)
    cp = _round_up(c_, 128)
    c2p = _round_up(c2, 128)

    # ---- glue: layout, BN fold, channel padding (tiny, one-time) -----------
    x_flat = jnp.transpose(x_nchw, (0, 2, 3, 1)).reshape(n, hw, c1)
    x_flat = jnp.pad(x_flat, ((0, 0), (0, 0), (0, c1p - c1))).astype(jnp.bfloat16)

    w1m, b1 = _fold_bn(w1, *bn1, eps)                  # (c1, c_), (c_,)
    w2m, b2 = _fold_bn(w2, *bn2, eps)                  # ((np+1)*c_, c2), (c2,)

    w1p = jnp.pad(w1m, ((0, c1p - c1), (0, cp - c_))).astype(jnp.bfloat16)
    b1p = jnp.pad(b1, (0, cp - c_)).reshape(1, cp).astype(jnp.float32)
    w2blk = w2m.reshape(npool + 1, c_, c2)             # block i <-> concat slot i
    w2p = jnp.pad(w2blk, ((0, 0), (0, cp - c_), (0, c2p - c2))).astype(jnp.bfloat16)
    b2p = jnp.pad(b2, (0, c2p - c2)).reshape(1, c2p).astype(jnp.float32)

    kernel = functools.partial(_spp_kernel, height=h, width=w,
                               radii=tuple(radii))

    # Explicit VMEM budget (double-buffered I/O blocks + resident weights +
    # pooling scratch + live f32 intermediates), floored at the default.
    need = (2 * (hw * c1p * 2 + hw * c2p * 4)
            + 2 * (c1p * cp * 2 + (npool + 1) * cp * c2p * 2 + (cp + c2p) * 4)
            + (hw + 2 * off) * cp * 4
            + hw * (3 * cp + c2p) * 4)
    vmem_limit = int(min(max(2 * need, 32 * 1024 * 1024), 60 * 1024 * 1024))

    cost = pl.CostEstimate(
        flops=2 * n * hw * (c1p * cp + (npool + 1) * cp * c2p),
        transcendentals=n * hw * (cp + c2p),
        bytes_accessed=(x_flat.size * 2 + w1p.size * 2 + w2p.size * 2
                        + b1p.size * 4 + b2p.size * 4 + n * hw * c2p * 4))

    out = pl.pallas_call(
        kernel,
        out_shape=jax.ShapeDtypeStruct((n, hw, c2p), jnp.float32),
        grid_spec=pltpu.PrefetchScalarGridSpec(
            num_scalar_prefetch=0,
            grid=(n,),
            in_specs=[
                pl.BlockSpec((1, hw, c1p), lambda i: (i, 0, 0)),
                pl.BlockSpec((c1p, cp), lambda i: (0, 0)),
                pl.BlockSpec((1, cp), lambda i: (0, 0)),
                pl.BlockSpec((npool + 1, cp, c2p), lambda i: (0, 0, 0)),
                pl.BlockSpec((1, c2p), lambda i: (0, 0)),
            ],
            out_specs=pl.BlockSpec((1, hw, c2p), lambda i: (i, 0, 0)),
            scratch_shapes=[pltpu.VMEM((hw + 2 * off, cp), jnp.float32)],
        ),
        compiler_params=pltpu.CompilerParams(
            dimension_semantics=("parallel",),
            vmem_limit_bytes=vmem_limit),
        cost_estimate=cost,
    )(x_flat, w1p, b1p, w2p, b2p)

    out = out[:, :, :c2].reshape(n, h, w, c2)
    return jnp.transpose(out, (0, 3, 1, 2))              # back to NCHW


# ----------------------------------------------------------------------------
# Pure-JAX reference (f32) for correctness checking
# ----------------------------------------------------------------------------
def _conv1x1_bn_silu_ref(x, w, bn, eps):
    gamma, beta, mean, var = bn
    y = lax.conv_general_dilated(x, w, (1, 1), [(0, 0), (0, 0)],
                                 dimension_numbers=("NCHW", "OIHW", "NCHW"))
    scale = (gamma / jnp.sqrt(var + eps)).reshape(1, -1, 1, 1)
    bias = (beta - mean * gamma / jnp.sqrt(var + eps)).reshape(1, -1, 1, 1)
    y = y * scale + bias
    return y * jax.nn.sigmoid(y)


def _spp_reference(x, w1, bn1, w2, bn2, *, k=(5, 9, 13), eps=1e-5):
    y = _conv1x1_bn_silu_ref(x, w1, bn1, eps)
    feats = [y]
    for kk in k:
        p = kk // 2
        feats.append(lax.reduce_window(
            y, jnp.array(-jnp.inf, y.dtype), lax.max,
            (1, 1, kk, kk), (1, 1, 1, 1),
            ((0, 0), (0, 0), (p, p), (p, p))))
    return _conv1x1_bn_silu_ref(jnp.concatenate(feats, axis=1), w2, bn2, eps)


if __name__ == "__main__":
    key = jax.random.PRNGKey(0)
    keys = jax.random.split(key, 11)

    # SPP(c1=4, c2=8, k=(5, 9, 13)) on x of shape (2, 4, 16, 16)
    n, c1, c2 = 2, 4, 8
    h = w = 16
    k = (5, 9, 13)
    c_ = c1 // 2
    cin2 = c_ * (len(k) + 1)

    x = jax.random.normal(keys[0], (n, c1, h, w), jnp.float32)
    w1 = jax.random.normal(keys[1], (c_, c1, 1, 1), jnp.float32) * 0.1
    w2 = jax.random.normal(keys[2], (c2, cin2, 1, 1), jnp.float32) * 0.1
    bn1 = (jax.random.normal(keys[3], (c_,)) * 0.1 + 1.0,
           jax.random.normal(keys[4], (c_,)) * 0.1,
           jax.random.normal(keys[5], (c_,)) * 0.1,
           jax.random.uniform(keys[6], (c_,), minval=0.5, maxval=1.5))
    bn2 = (jax.random.normal(keys[7], (c2,)) * 0.1 + 1.0,
           jax.random.normal(keys[8], (c2,)) * 0.1,
           jax.random.normal(keys[9], (c2,)) * 0.1,
           jax.random.uniform(keys[10], (c2,), minval=0.5, maxval=1.5))

    fn = jax.jit(functools.partial(spp_forward, k=k))
    out = fn(x, w1, bn1, w2, bn2)
    jax.block_until_ready(out)

    ref = _spp_reference(x, w1, bn1, w2, bn2, k=k)
    assert out.shape == (n, c2, h, w), out.shape
    max_err = float(jnp.max(jnp.abs(out - ref)))
    assert jnp.allclose(out, ref, atol=2e-2, rtol=2e-2), max_err

    print("KERNEL_OK")
</pallas_src>

<mosaic_0001>
module attributes {stable_mosaic.version = 11 : i64} {
  func.func @_spp_kernel(%arg0: i32, %arg1: memref<1x256x128xbf16, #tpu.memory_space<vmem>>, %arg2: memref<128x128xbf16, #tpu.memory_space<vmem>>, %arg3: memref<1x128xf32, #tpu.memory_space<vmem>>, %arg4: memref<4x128x128xbf16, #tpu.memory_space<vmem>>, %arg5: memref<1x128xf32, #tpu.memory_space<vmem>>, %arg6: memref<1x256x128xf32, #tpu.memory_space<vmem>>, %arg7: memref<320x128xf32, #tpu.memory_space<vmem>>) attributes {dimension_semantics = [#tpu.dimension_semantics<parallel>], iteration_bounds = array<i64: 2>, scalar_prefetch = 0 : i64, scratch_operands = 1 : i64, tpu.core_type = #tpu.core_type<tc>, window_params = [{transform_indices = @transform_0, window_bounds = array<i64: 1, 256, 128>}, {pipeline_mode = #tpu.pipeline_mode<synchronous>, transform_indices = @transform_1, window_bounds = array<i64: 128, 128>}, {pipeline_mode = #tpu.pipeline_mode<synchronous>, transform_indices = @transform_2, window_bounds = array<i64: 1, 128>}, {pipeline_mode = #tpu.pipeline_mode<synchronous>, transform_indices = @transform_3, window_bounds = array<i64: 4, 128, 128>}, {pipeline_mode = #tpu.pipeline_mode<synchronous>, transform_indices = @transform_4, window_bounds = array<i64: 1, 128>}, {transform_indices = @transform_5, window_bounds = array<i64: 1, 256, 128>}]} {
    %cst = arith.constant -1.000000e+30 : f32
    %0 = vector.broadcast %cst : f32 to vector<32x128xf32>
    %c0 = arith.constant 0 : index
    %c0_0 = arith.constant 0 : index
    %1 = vector.load %arg7[%c0, %c0_0] : memref<320x128xf32, #tpu.memory_space<vmem>>, vector<32x128xf32>
    tpu.vector_store %arg7[%c0, %c0_0], %0 {strides = array<i32>} : memref<320x128xf32, #tpu.memory_space<vmem>>, vector<32x128xf32>,
    %cst_1 = arith.constant -1.000000e+30 : f32
    %2 = vector.broadcast %cst_1 : f32 to vector<32x128xf32>
    %c288 = arith.constant 288 : index
    %c0_2 = arith.constant 0 : index
    %3 = vector.load %arg7[%c288, %c0_2] : memref<320x128xf32, #tpu.memory_space<vmem>>, vector<32x128xf32>
    tpu.vector_store %arg7[%c288, %c0_2], %2 {strides = array<i32>} : memref<320x128xf32, #tpu.memory_space<vmem>>, vector<32x128xf32>,
    %c0_3 = arith.constant 0 : index
    %c0_4 = arith.constant 0 : index
    %c0_5 = arith.constant 0 : index
    %4 = vector.load %arg1[%c0_3, %c0_4, %c0_5] : memref<1x256x128xbf16, #tpu.memory_space<vmem>>, vector<1x256x128xbf16>
    %5 = vector.shape_cast %4 : vector<1x256x128xbf16> to vector<256x128xbf16>
    %c0_6 = arith.constant 0 : index
    %c0_7 = arith.constant 0 : index
    %6 = vector.load %arg2[%c0_6, %c0_7] : memref<128x128xbf16, #tpu.memory_space<vmem>>, vector<128x128xbf16>
    %cst_8 = arith.constant dense<0.000000e+00> : vector<256x128xf32>
    %7 = tpu.matmul %5, %6, %cst_8 {dimension_numbers = #tpu.dot_dimension_numbers<[1], [0], [0], [1], [0, 0, 1, 1], [], []>} : vector<256x128xbf16>, vector<128x128xbf16>, vector<256x128xf32> -> vector<256x128xf32>
    %c0_9 = arith.constant 0 : index
    %c0_10 = arith.constant 0 : index
    %8 = vector.load %arg3[%c0_9, %c0_10] : memref<1x128xf32, #tpu.memory_space<vmem>>, vector<1x128xf32>
    %9 = vector.broadcast %8 : vector<1x128xf32> to vector<256x128xf32>
    %10 = arith.addf %7, %9 : vector<256x128xf32>
    %11 = arith.negf %10 : vector<256x128xf32>
    %12 = math.exp %11 : vector<256x128xf32>
    %cst_11 = arith.constant 1.000000e+00 : f32
    %13 = vector.broadcast %cst_11 : f32 to vector<256x128xf32>
    %14 = arith.addf %13, %12 : vector<256x128xf32>
    %15 = arith.divf %13, %14 : vector<256x128xf32>
    %16 = arith.mulf %10, %15 : vector<256x128xf32>
    %17 = tpu.iota {dimensions = array<i32: 0>} : vector<256x1xi32>
    %c16_i32 = arith.constant 16 : i32
    %c0_i32 = arith.constant 0 : i32
    %18 = arith.cmpi eq, %c16_i32, %c0_i32 : i32
    %c1_i32 = arith.constant 1 : i32
    %19 = arith.select %18, %c1_i32, %c16_i32 : i32
    %20 = vector.broadcast %19 : i32 to vector<256x1xi32>
    %21 = arith.remsi %17, %20 : vector<256x1xi32>
    %c0_i32_12 = arith.constant 0 : i32
    %22 = vector.broadcast %c0_i32_12 : i32 to vector<256x1xi32>
    %23 = arith.cmpi ne, %21, %22 : vector<256x1xi32>
    %c0_i32_13 = arith.constant 0 : i32
    %24 = vector.broadcast %c0_i32_13 : i32 to vector<256x1xi32>
    %25 = arith.cmpi slt, %21, %24 : vector<256x1xi32>
    %c0_i32_14 = arith.constant 0 : i32
    %26 = arith.cmpi slt, %19, %c0_i32_14 : i32
    %27 = vector.broadcast %26 : i1 to vector<256x1xi1>
    %28 = vector.broadcast %27 : vector<256x1xi1> to vector<256x1xi1>
    %29 = arith.xori %25, %28 : vector<256x1xi1>
    %30 = arith.andi %29, %23 : vector<256x1xi1>
    %31 = vector.broadcast %19 : i32 to vector<256x1xi32>
    %32 = arith.addi %21, %31 : vector<256x1xi32>
    %33 = arith.select %30, %32, %21 : vector<256x1xi1>, vector<256x1xi32>
    %c1_i32_15 = arith.constant 1 : i32
    %34 = vector.broadcast %c1_i32_15 : i32 to vector<256x1xi32>
    %35 = arith.cmpi sge, %33, %34 : vector<256x1xi32>
    %c15_i32 = arith.constant 15 : i32
    %36 = vector.broadcast %c15_i32 : i32 to vector<256x1xi32>
    %37 = arith.cmpi slt, %33, %36 : vector<256x1xi32>
    %c2_i32 = arith.constant 2 : i32
    %38 = vector.broadcast %c2_i32 : i32 to vector<256x1xi32>
    %39 = arith.cmpi sge, %33, %38 : vector<256x1xi32>
    %c14_i32 = arith.constant 14 : i32
    %40 = vector.broadcast %c14_i32 : i32 to vector<256x1xi32>
    %41 = arith.cmpi slt, %33, %40 : vector<256x1xi32>
    %42 = arith.truncf %16 : vector<256x128xf32> to vector<256x128xbf16>
    %c0_16 = arith.constant 0 : index
    %c0_17 = arith.constant 0 : index
    %c0_18 = arith.constant 0 : index
    %43 = vector.load %arg4[%c0_16, %c0_17, %c0_18] : memref<4x128x128xbf16, #tpu.memory_space<vmem>>, vector<1x128x128xbf16>
    %44 = vector.shape_cast %43 : vector<1x128x128xbf16> to vector<128x128xbf16>
    %cst_19 = arith.constant dense<0.000000e+00> : vector<256x128xf32>
    %45 = tpu.matmul %42, %44, %cst_19 {dimension_numbers = #tpu.dot_dimension_numbers<[1], [0], [0], [1], [0, 0, 1, 1], [], []>} : vector<256x128xbf16>, vector<128x128xbf16>, vector<256x128xf32> -> vector<256x128xf32>
    %c32 = arith.constant 32 : index
    %c0_20 = arith.constant 0 : index
    %46 = vector.load %arg7[%c32, %c0_20] : memref<320x128xf32, #tpu.memory_space<vmem>>, vector<256x128xf32>
    tpu.vector_store %arg7[%c32, %c0_20], %16 {strides = array<i32>} : memref<320x128xf32, #tpu.memory_space<vmem>>, vector<256x128xf32>,
    %c0_21 = arith.constant 0 : index
    %c0_22 = arith.constant 0 : index
    %47 = vector.load %arg7[%c0_21, %c0_22] : memref<320x128xf32, #tpu.memory_space<vmem>>, vector<256x128xf32>
    %c16 = arith.constant 16 : index
    %c0_23 = arith.constant 0 : index
    %48 = vector.load %arg7[%c16, %c0_23] : memref<320x128xf32, #tpu.memory_space<vmem>>, vector<256x128xf32>
    %49 = arith.maximumf %47, %48 : vector<256x128xf32>
    %c32_24 = arith.constant 32 : index
    %c0_25 = arith.constant 0 : index
    %50 = vector.load %arg7[%c32_24, %c0_25] : memref<320x128xf32, #tpu.memory_space<vmem>>, vector<256x128xf32>
    %51 = arith.maximumf %49, %50 : vector<256x128xf32>
    %c48 = arith.constant 48 : index
    %c0_26 = arith.constant 0 : index
    %52 = vector.load %arg7[%c48, %c0_26] : memref<320x128xf32, #tpu.memory_space<vmem>>, vector<256x128xf32>
    %53 = arith.maximumf %51, %52 : vector<256x128xf32>
    %c64 = arith.constant 64 : index
    %c0_27 = arith.constant 0 : index
    %54 = vector.load %arg7[%c64, %c0_27] : memref<320x128xf32, #tpu.memory_space<vmem>>, vector<256x128xf32>
    %55 = arith.maximumf %53, %54 : vector<256x128xf32>
    %c32_28 = arith.constant 32 : index
    %c0_29 = arith.constant 0 : index
    %56 = vector.load %arg7[%c32_28, %c0_29] : memref<320x128xf32, #tpu.memory_space<vmem>>, vector<256x128xf32>
    tpu.vector_store %arg7[%c32_28, %c0_29], %55 {strides = array<i32>} : memref<320x128xf32, #tpu.memory_space<vmem>>, vector<256x128xf32>,
    %c33 = arith.constant 33 : index
    %c0_30 = arith.constant 0 : index
    %57 = vector.load %arg7[%c33, %c0_30] : memref<320x128xf32, #tpu.memory_space<vmem>>, vector<256x128xf32>
    %cst_31 = arith.constant -1.000000e+30 : f32
    %58 = vector.shape_cast %37 : vector<256x1xi1> to vector<256x1xi1>
    %59 = vector.broadcast %58 : vector<256x1xi1> to vector<256x128xi1>
    %60 = vector.broadcast %cst_31 : f32 to vector<256x128xf32>
    %61 = arith.select %59, %57, %60 : vector<256x128xi1>, vector<256x128xf32>
    %c31 = arith.constant 31 : index
    %c0_32 = arith.constant 0 : index
    %62 = vector.load %arg7[%c31, %c0_32] : memref<320x128xf32, #tpu.memory_space<vmem>>, vector<256x128xf32>
    %cst_33 = arith.constant -1.000000e+30 : f32
    %63 = vector.shape_cast %35 : vector<256x1xi1> to vector<256x1xi1>
    %64 = vector.broadcast %63 : vector<256x1xi1> to vector<256x128xi1>
    %65 = vector.broadcast %cst_33 : f32 to vector<256x128xf32>
    %66 = arith.select %64, %62, %65 : vector<256x128xi1>, vector<256x128xf32>
    %67 = arith.maximumf %61, %66 : vector<256x128xf32>
    %68 = arith.maximumf %55, %67 : vector<256x128xf32>
    %c34 = arith.constant 34 : index
    %c0_34 = arith.constant 0 : index
    %69 = vector.load %arg7[%c34, %c0_34] : memref<320x128xf32, #tpu.memory_space<vmem>>, vector<256x128xf32>
    %cst_35 = arith.constant -1.000000e+30 : f32
    %70 = vector.shape_cast %41 : vector<256x1xi1> to vector<256x1xi1>
    %71 = vector.broadcast %70 : vector<256x1xi1> to vector<256x128xi1>
    %72 = vector.broadcast %cst_35 : f32 to vector<256x128xf32>
    %73 = arith.select %71, %69, %72 : vector<256x128xi1>, vector<256x128xf32>
    %c30 = arith.constant 30 : index
    %c0_36 = arith.constant 0 : index
    %74 = vector.load %arg7[%c30, %c0_36] : memref<320x128xf32, #tpu.memory_space<vmem>>, vector<256x128xf32>
    %cst_37 = arith.constant -1.000000e+30 : f32
    %75 = vector.shape_cast %39 : vector<256x1xi1> to vector<256x1xi1>
    %76 = vector.broadcast %75 : vector<256x1xi1> to vector<256x128xi1>
    %77 = vector.broadcast %cst_37 : f32 to vector<256x128xf32>
    %78 = arith.select %76, %74, %77 : vector<256x128xi1>, vector<256x128xf32>
    %79 = arith.maximumf %73, %78 : vector<256x128xf32>
    %80 = arith.maximumf %68, %79 : vector<256x128xf32>
    %81 = arith.truncf %80 : vector<256x128xf32> to vector<256x128xbf16>
    %c1 = arith.constant 1 : index
    %c0_38 = arith.constant 0 : index
    %c0_39 = arith.constant 0 : index
    %82 = vector.load %arg4[%c1, %c0_38, %c0_39] : memref<4x128x128xbf16, #tpu.memory_space<vmem>>, vector<1x128x128xbf16>
    %83 = vector.shape_cast %82 : vector<1x128x128xbf16> to vector<128x128xbf16>
    %cst_40 = arith.constant dense<0.000000e+00> : vector<256x128xf32>
    %84 = tpu.matmul %81, %83, %cst_40 {dimension_numbers = #tpu.dot_dimension_numbers<[1], [0], [0], [1], [0, 0, 1, 1], [], []>} : vector<256x128xbf16>, vector<128x128xbf16>, vector<256x128xf32> -> vector<256x128xf32>
    %85 = arith.addf %45, %84 : vector<256x128xf32>
    %c32_41 = arith.constant 32 : index
    %c0_42 = arith.constant 0 : index
    %86 = vector.load %arg7[%c32_41, %c0_42] : memref<320x128xf32, #tpu.memory_space<vmem>>, vector<256x128xf32>
    tpu.vector_store %arg7[%c32_41, %c0_42], %80 {strides = array<i32>} : memref<320x128xf32, #tpu.memory_space<vmem>>, vector<256x128xf32>,
    %c0_43 = arith.constant 0 : index
    %c0_44 = arith.constant 0 : index
    %87 = vector.load %arg7[%c0_43, %c0_44] : memref<320x128xf32, #tpu.memory_space<vmem>>, vector<256x128xf32>
    %c16_45 = arith.constant 16 : index
    %c0_46 = arith.constant 0 : index
    %88 = vector.load %arg7[%c16_45, %c0_46] : memref<320x128xf32, #tpu.memory_space<vmem>>, vector<256x128xf32>
    %89 = arith.maximumf %87, %88 : vector<256x128xf32>
    %c32_47 = arith.constant 32 : index
    %c0_48 = arith.constant 0 : index
    %90 = vector.load %arg7[%c32_47, %c0_48] : memref<320x128xf32, #tpu.memory_space<vmem>>, vector<256x128xf32>
    %91 = arith.maximumf %89, %90 : vector<256x128xf32>
    %c48_49 = arith.constant 48 : index
    %c0_50 = arith.constant 0 : index
    %92 = vector.load %arg7[%c48_49, %c0_50] : memref<320x128xf32, #tpu.memory_space<vmem>>, vector<256x128xf32>
    %93 = arith.maximumf %91, %92 : vector<256x128xf32>
    %c64_51 = arith.constant 64 : index
    %c0_52 = arith.constant 0 : index
    %94 = vector.load %arg7[%c64_51, %c0_52] : memref<320x128xf32, #tpu.memory_space<vmem>>, vector<256x128xf32>
    %95 = arith.maximumf %93, %94 : vector<256x128xf32>
    %c32_53 = arith.constant 32 : index
    %c0_54 = arith.constant 0 : index
    %96 = vector.load %arg7[%c32_53, %c0_54] : memref<320x128xf32, #tpu.memory_space<vmem>>, vector<256x128xf32>
    tpu.vector_store %arg7[%c32_53, %c0_54], %95 {strides = array<i32>} : memref<320x128xf32, #tpu.memory_space<vmem>>, vector<256x128xf32>,
    %c33_55 = arith.constant 33 : index
    %c0_56 = arith.constant 0 : index
    %97 = vector.load %arg7[%c33_55, %c0_56] : memref<320x128xf32, #tpu.memory_space<vmem>>, vector<256x128xf32>
    %cst_57 = arith.constant -1.000000e+30 : f32
    %98 = vector.shape_cast %37 : vector<256x1xi1> to vector<256x1xi1>
    %99 = vector.broadcast %98 : vector<256x1xi1> to vector<256x128xi1>
    %100 = vector.broadcast %cst_57 : f32 to vector<256x128xf32>
    %101 = arith.select %99, %97, %100 : vector<256x128xi1>, vector<256x128xf32>
    %c31_58 = arith.constant 31 : index
    %c0_59 = arith.constant 0 : index
    %102 = vector.load %arg7[%c31_58, %c0_59] : memref<320x128xf32, #tpu.memory_space<vmem>>, vector<256x128xf32>
    %cst_60 = arith.constant -1.000000e+30 : f32
    %103 = vector.shape_cast %35 : vector<256x1xi1> to vector<256x1xi1>
    %104 = vector.broadcast %103 : vector<256x1xi1> to vector<256x128xi1>
    %105 = vector.broadcast %cst_60 : f32 to vector<256x128xf32>
    %106 = arith.select %104, %102, %105 : vector<256x128xi1>, vector<256x128xf32>
    %107 = arith.maximumf %101, %106 : vector<256x128xf32>
    %108 = arith.maximumf %95, %107 : vector<256x128xf32>
    %c34_61 = arith.constant 34 : index
    %c0_62 = arith.constant 0 : index
    %109 = vector.load %arg7[%c34_61, %c0_62] : memref<320x128xf32, #tpu.memory_space<vmem>>, vector<256x128xf32>
    %cst_63 = arith.constant -1.000000e+30 : f32
    %110 = vector.shape_cast %41 : vector<256x1xi1> to vector<256x1xi1>
    %111 = vector.broadcast %110 : vector<256x1xi1> to vector<256x128xi1>
    %112 = vector.broadcast %cst_63 : f32 to vector<256x128xf32>
    %113 = arith.select %111, %109, %112 : vector<256x128xi1>, vector<256x128xf32>
    %c30_64 = arith.constant 30 : index
    %c0_65 = arith.constant 0 : index
    %114 = vector.load %arg7[%c30_64, %c0_65] : memref<320x128xf32, #tpu.memory_space<vmem>>, vector<256x128xf32>
    %cst_66 = arith.constant -1.000000e+30 : f32
    %115 = vector.shape_cast %39 : vector<256x1xi1> to vector<256x1xi1>
    %116 = vector.broadcast %115 : vector<256x1xi1> to vector<256x128xi1>
    %117 = vector.broadcast %cst_66 : f32 to vector<256x128xf32>
    %118 = arith.select %116, %114, %117 : vector<256x128xi1>, vector<256x128xf32>
    %119 = arith.maximumf %113, %118 : vector<256x128xf32>
    %120 = arith.maximumf %108, %119 : vector<256x128xf32>
    %121 = arith.truncf %120 : vector<256x128xf32> to vector<256x128xbf16>
    %c2 = arith.constant 2 : index
    %c0_67 = arith.constant 0 : index
    %c0_68 = arith.constant 0 : index
    %122 = vector.load %arg4[%c2, %c0_67, %c0_68] : memref<4x128x128xbf16, #tpu.memory_space<vmem>>, vector<1x128x128xbf16>
    %123 = vector.shape_cast %122 : vector<1x128x128xbf16> to vector<128x128xbf16>
    %cst_69 = arith.constant dense<0.000000e+00> : vector<256x128xf32>
    %124 = tpu.matmul %121, %123, %cst_69 {dimension_numbers = #tpu.dot_dimension_numbers<[1], [0], [0], [1], [0, 0, 1, 1], [], []>} : vector<256x128xbf16>, vector<128x128xbf16>, vector<256x128xf32> -> vector<256x128xf32>
    %125 = arith.addf %85, %124 : vector<256x128xf32>
    %c32_70 = arith.constant 32 : index
    %c0_71 = arith.constant 0 : index
    %126 = vector.load %arg7[%c32_70, %c0_71] : memref<320x128xf32, #tpu.memory_space<vmem>>, vector<256x128xf32>
    tpu.vector_store %arg7[%c32_70, %c0_71], %120 {strides = array<i32>} : memref<320x128xf32, #tpu.memory_space<vmem>>, vector<256x128xf32>,
    %c0_72 = arith.constant 0 : index
    %c0_73 = arith.constant 0 : index
    %127 = vector.load %arg7[%c0_72, %c0_73] : memref<320x128xf32, #tpu.memory_space<vmem>>, vector<256x128xf32>
    %c16_74 = arith.constant 16 : index
    %c0_75 = arith.constant 0 : index
    %128 = vector.load %arg7[%c16_74, %c0_75] : memref<320x128xf32, #tpu.memory_space<vmem>>, vector<256x128xf32>
    %129 = arith.maximumf %127, %128 : vector<256x128xf32>
    %c32_76 = arith.constant 32 : index
    %c0_77 = arith.constant 0 : index
    %130 = vector.load %arg7[%c32_76, %c0_77] : memref<320x128xf32, #tpu.memory_space<vmem>>, vector<256x128xf32>
    %131 = arith.maximumf %129, %130 : vector<256x128xf32>
    %c48_78 = arith.constant 48 : index
    %c0_79 = arith.constant 0 : index
    %132 = vector.load %arg7[%c48_78, %c0_79] : memref<320x128xf32, #tpu.memory_space<vmem>>, vector<256x128xf32>
    %133 = arith.maximumf %131, %132 : vector<256x128xf32>
    %c64_80 = arith.constant 64 : index
    %c0_81 = arith.constant 0 : index
    %134 = vector.load %arg7[%c64_80, %c0_81] : memref<320x128xf32, #tpu.memory_space<vmem>>, vector<256x128xf32>
    %135 = arith.maximumf %133, %134 : vector<256x128xf32>
    %c32_82 = arith.constant 32 : index
    %c0_83 = arith.constant 0 : index
    %136 = vector.load %arg7[%c32_82, %c0_83] : memref<320x128xf32, #tpu.memory_space<vmem>>, vector<256x128xf32>
    tpu.vector_store %arg7[%c32_82, %c0_83], %135 {strides = array<i32>} : memref<320x128xf32, #tpu.memory_space<vmem>>, vector<256x128xf32>,
    %c33_84 = arith.constant 33 : index
    %c0_85 = arith.constant 0 : index
    %137 = vector.load %arg7[%c33_84, %c0_85] : memref<320x128xf32, #tpu.memory_space<vmem>>, vector<256x128xf32>
    %cst_86 = arith.constant -1.000000e+30 : f32
    %138 = vector.shape_cast %37 : vector<256x1xi1> to vector<256x1xi1>
    %139 = vector.broadcast %138 : vector<256x1xi1> to vector<256x128xi1>
    %140 = vector.broadcast %cst_86 : f32 to vector<256x128xf32>
    %141 = arith.select %139, %137, %140 : vector<256x128xi1>, vector<256x128xf32>
    %c31_87 = arith.constant 31 : index
    %c0_88 = arith.constant 0 : index
    %142 = vector.load %arg7[%c31_87, %c0_88] : memref<320x128xf32, #tpu.memory_space<vmem>>, vector<256x128xf32>
    %cst_89 = arith.constant -1.000000e+30 : f32
    %143 = vector.shape_cast %35 : vector<256x1xi1> to vector<256x1xi1>
    %144 = vector.broadcast %143 : vector<256x1xi1> to vector<256x128xi1>
    %145 = vector.broadcast %cst_89 : f32 to vector<256x128xf32>
    %146 = arith.select %144, %142, %145 : vector<256x128xi1>, vector<256x128xf32>
    %147 = arith.maximumf %141, %146 : vector<256x128xf32>
    %148 = arith.maximumf %135, %147 : vector<256x128xf32>
    %c34_90 = arith.constant 34 : index
    %c0_91 = arith.constant 0 : index
    %149 = vector.load %arg7[%c34_90, %c0_91] : memref<320x128xf32, #tpu.memory_space<vmem>>, vector<256x128xf32>
    %cst_92 = arith.constant -1.000000e+30 : f32
    %150 = vector.shape_cast %41 : vector<256x1xi1> to vector<256x1xi1>
    %151 = vector.broadcast %150 : vector<256x1xi1> to vector<256x128xi1>
    %152 = vector.broadcast %cst_92 : f32 to vector<256x128xf32>
    %153 = arith.select %151, %149, %152 : vector<256x128xi1>, vector<256x128xf32>
    %c30_93 = arith.constant 30 : index
    %c0_94 = arith.constant 0 : index
    %154 = vector.load %arg7[%c30_93, %c0_94] : memref<320x128xf32, #tpu.memory_space<vmem>>, vector<256x128xf32>
    %cst_95 = arith.constant -1.000000e+30 : f32
    %155 = vector.shape_cast %39 : vector<256x1xi1> to vector<256x1xi1>
    %156 = vector.broadcast %155 : vector<256x1xi1> to vector<256x128xi1>
    %157 = vector.broadcast %cst_95 : f32 to vector<256x128xf32>
    %158 = arith.select %156, %154, %157 : vector<256x128xi1>, vector<256x128xf32>
    %159 = arith.maximumf %153, %158 : vector<256x128xf32>
    %160 = arith.maximumf %148, %159 : vector<256x128xf32>
    %161 = arith.truncf %160 : vector<256x128xf32> to vector<256x128xbf16>
    %c3 = arith.constant 3 : index
    %c0_96 = arith.constant 0 : index
    %c0_97 = arith.constant 0 : index
    %162 = vector.load %arg4[%c3, %c0_96, %c0_97] : memref<4x128x128xbf16, #tpu.memory_space<vmem>>, vector<1x128x128xbf16>
    %163 = vector.shape_cast %162 : vector<1x128x128xbf16> to vector<128x128xbf16>
    %cst_98 = arith.constant dense<0.000000e+00> : vector<256x128xf32>
    %164 = tpu.matmul %161, %163, %cst_98 {dimension_numbers = #tpu.dot_dimension_numbers<[1], [0], [0], [1], [0, 0, 1, 1], [], []>} : vector<256x128xbf16>, vector<128x128xbf16>, vector<256x128xf32> -> vector<256x128xf32>
    %165 = arith.addf %125, %164 : vector<256x128xf32>
    %c0_99 = arith.constant 0 : index
    %c0_100 = arith.constant 0 : index
    %166 = vector.load %arg5[%c0_99, %c0_100] : memref<1x128xf32, #tpu.memory_space<vmem>>, vector<1x128xf32>
    %167 = vector.broadcast %166 : vector<1x128xf32> to vector<256x128xf32>
    %168 = arith.addf %165, %167 : vector<256x128xf32>
    %169 = arith.negf %168 : vector<256x128xf32>
    %170 = math.exp %169 : vector<256x128xf32>
    %cst_101 = arith.constant 1.000000e+00 : f32
    %171 = vector.broadcast %cst_101 : f32 to vector<256x128xf32>
    %172 = arith.addf %171, %170 : vector<256x128xf32>
    %173 = arith.divf %171, %172 : vector<256x128xf32>
    %174 = arith.mulf %168, %173 : vector<256x128xf32>
    %c0_102 = arith.constant 0 : index
    %c0_103 = arith.constant 0 : index
    %c0_104 = arith.constant 0 : index
    %175 = vector.load %arg6[%c0_102, %c0_103, %c0_104] : memref<1x256x128xf32, #tpu.memory_space<vmem>>, vector<1x256x128xf32>
    %176 = vector.shape_cast %175 : vector<1x256x128xf32> to vector<256x128xf32>
    %177 = vector.shape_cast %174 : vector<256x128xf32> to vector<1x256x128xf32>
    tpu.vector_store %arg6[%c0_102, %c0_103, %c0_104], %177 {strides = array<i32>} : memref<1x256x128xf32, #tpu.memory_space<vmem>>, vector<1x256x128xf32>,
    return
  }
  func.func @transform_0(%arg0: i32) -> (i32, i32, i32) {
    %c0_i32 = arith.constant 0 : i32
    %c0_i32_0 = arith.constant 0 : i32
    %c0_i32_1 = arith.constant 0 : i32
    return %arg0, %c0_i32, %c0_i32_0 : i32, i32, i32
  }
  func.func @transform_1(%arg0: i32) -> (i32, i32) {
    %c0_i32 = arith.constant 0 : i32
    %c0_i32_0 = arith.constant 0 : i32
    %c0_i32_1 = arith.constant 0 : i32
    return %c0_i32, %c0_i32_0 : i32, i32
  }
  func.func @transform_2(%arg0: i32) -> (i32, i32) {
    %c0_i32 = arith.constant 0 : i32
    %c0_i32_0 = arith.constant 0 : i32
    %c0_i32_1 = arith.constant 0 : i32
    return %c0_i32, %c0_i32_0 : i32, i32
  }
  func.func @transform_3(%arg0: i32) -> (i32, i32, i32) {
    %c0_i32 = arith.constant 0 : i32
    %c0_i32_0 = arith.constant 0 : i32
    %c0_i32_1 = arith.constant 0 : i32
    %c0_i32_2 = arith.constant 0 : i32
    return %c0_i32, %c0_i32_0, %c0_i32_1 : i32, i32, i32
  }
  func.func @transform_4(%arg0: i32) -> (i32, i32) {
    %c0_i32 = arith.constant 0 : i32
    %c0_i32_0 = arith.constant 0 : i32
    %c0_i32_1 = arith.constant 0 : i32
    return %c0_i32, %c0_i32_0 : i32, i32
  }
  func.func @transform_5(%arg0: i32) -> (i32, i32, i32) {
    %c0_i32 = arith.constant 0 : i32
    %c0_i32_0 = arith.constant 0 : i32
    %c0_i32_1 = arith.constant 0 : i32
    return %arg0, %c0_i32, %c0_i32_0 : i32, i32, i32
  }
}

</mosaic_0001>

<bundles_post_ra>
// kernel: spp_forward.1
= control target key start
LH: loop header
LB: loop body
LE: loop exit
PB: predicated region body
PF: predicated region fallthrough
CT: control target
= control target key end

     0   :  { %s5972_s18 = smov 0   ;;  %s8818_s0 = inlined_call_operand.vmem [shape: bf16[2,256,128], index: 0, kind: input, shape index: {}]   ;;  %s8819_s1 = inlined_call_operand.vmem [shape: bf16[128,128], index: 1, kind: input, shape index: {}]   ;;  %s8820_s2 = inlined_call_operand.vmem [shape: f32[1,128], index: 2, kind: input, shape index: {}]   ;;  %s8821_s3 = inlined_call_operand.vmem [shape: bf16[4,128,128], index: 3, kind: input, shape index: {}]   ;;  %s8822_s4 = inlined_call_operand.vmem [shape: f32[1,128], index: 4, kind: input, shape index: {}]   ;;  %s8823_s5 = inlined_call_operand.vmem [shape: f32[2,256,128], index: 5, kind: output, shape index: {}]  }
   0x1 LB: > { %s4938_s19 = sadd.s32 4294967295, %s5939_s18   ;;  %p4942_p0 = scmp.ge.s32.totalorder %s5939_s18, 1  ;;  %s5939_s18 = sphi %s5972_s18, %s15_s18  }
   0x2   : > { %p187_p1 = scmp.lt.s32.totalorder %s5939_s18, 3 }
   0x4   : > { %p188_p2 = pnand %p4942_p0, %p187_p1 }
   0x6   : > { %191 = sbr.rel (%p188_p2) target bundleno = 933 (0x3a5), region = 40 }
   0xd   : > { %v5602_v0 = vld [vmem:[%s8819_s1] sm:$0xff]   ;;  %p215_p3 = scmp.lt.s32.totalorder %s4938_s19, 1  ;;  %v5603_v1 = vld [vmem:[%s8819_s1 + $0x8] sm:$0xff]   ;;  %v5604_v2 = vld [vmem:[%s8819_s1 + $0x10] sm:$0xff]   ;;  %v5941_v24 = vmov -1e+30   ;;  %v818_v43 = vlaneseq }
   0xe   : > { %5241 = vmatprep.subr.bf16.mxu0 %v5602_v0  ;;  %v5605_v3 = vld [vmem:[%s8819_s1 + $0x18] sm:$0xff]   ;;  %v5606_v5 = vld [vmem:[%s8819_s1 + $0x20] sm:$0xff]   ;;  %v5607_v6 = vld [vmem:[%s8819_s1 + $0x28] sm:$0xff]   ;;  %230 = vst [vmem:[#allocation2 + $0x120] sm:$0xff] %v5941_v24 }
   0xf   : > { %s9689_s19 = smov (!%p215_p3, %s4938_s19), 1  ;;  %5242 = vmatpush3.bf16.msra.mxu0 %v5602_v0  ;;  %v5608_v7 = vld [vmem:[%s8819_s1 + $0x30] sm:$0xff]   ;;  %v5609_v8 = vld [vmem:[%s8819_s1 + $0x38] sm:$0xff]   ;;  %229 = vst [vmem:[#allocation2 + $0x18] sm:$0xff] %v5941_v24  ;;  %v5628_v25 = vld [vmem:[%s8821_s3 + $0x40] sm:$0xff]   ;;  %v6097_v52 = vshrl.u32 %v818_v43, 7 }
  0x10   : > { %5243 = vmatprep.subr.bf16.mxu0 %v5603_v1  ;;  %s5119_s26 = sshll.u32 %s9689_s19, 7  ;;  %v5626_v26 = vld [vmem:[%s8821_s3] sm:$0xff]   ;;  %v5630_v27 = vld [vmem:[%s8821_s3 + $0x48] sm:$0xff]   ;;  %v5632_v29 = vld [vmem:[%s8821_s3 + $0x50] sm:$0xff]   ;;  %s5120_s7 = sshll.u32 %s9689_s19, 8 }
  0x11   : > { %s5995_s29 = scalar_lea.vmem %s8818_s0, %s5119_s26  ;;  %5481 = vmatprep.subr.bf16.mxu1 %v5626_v26  ;;  %v5627_v28 = vld [vmem:[%s8821_s3 + $0x8] sm:$0xff]   ;;  %v5629_v30 = vld [vmem:[%s8821_s3 + $0x10] sm:$0xff]   ;;  %v5634_v31 = vld [vmem:[%s8821_s3 + $0x58] sm:$0xff]   ;;  %v6106_v57 = vadd.s32 8, %v6097_v52  ;;  %v6109_v59 = vadd.s32 16, %v6097_v52  ;;  %v6112_v60 = vadd.s32 24, %v6097_v52  ;;  %s8663_s9 = scalar_lea.vmem %s8823_s5, %s5120_s7 }
  0x12   : > { %v5610_v4 = vld [vmem:[%s5995_s29] sm:$0xff]   ;;  %v5611_v9 = vld [vmem:[%s5995_s29 + $0x8] sm:$0xff]   ;;  %v5612_v10 = vld [vmem:[%s5995_s29 + $0x10] sm:$0xff]   ;;  %5489 = vmatpush3.bf16.msra.mxu1 %v5626_v26  ;;  %v6118_v63 = vadd.s32 32, %v6097_v52  ;;  %v6121_v0 = vadd.s32 40, %v6097_v52 }
  0x13   : > { %5244 = vmatpush3.bf16.msra.mxu0 %v5603_v1  ;;  %5257 = vmatprep.mubr.bf16.mxu0 %v5610_v4  ;;  %v5613_v11 = vld [vmem:[%s5995_s29 + $0x18] sm:$0xff]   ;;  %v5614_v12 = vld [vmem:[%s5995_s29 + $0x20] sm:$0xff]   ;;  %v5615_v13 = vld [vmem:[%s5995_s29 + $0x28] sm:$0xff]   ;;  %v6130_v4 = vadd.s32 56, %v6097_v52 }
  0x14   : > { %5245 = vmatprep.subr.bf16.mxu0 %v5604_v2  ;;  %v5616_v14 = vld [vmem:[%s5995_s29 + $0x30] sm:$0xff]   ;;  %v5617_v15 = vld [vmem:[%s5995_s29 + $0x38] sm:$0xff]   ;;  %v5618_v16 = vld [vmem:[%s5995_s29 + $0x40] sm:$0xff]   ;;  %5482 = vmatprep.subr.bf16.mxu1 %v5627_v28 }
  0x15   : > { %v5619_v17 = vld [vmem:[%s5995_s29 + $0x48] sm:$0xff]   ;;  %v5620_v18 = vld [vmem:[%s5995_s29 + $0x50] sm:$0xff]   ;;  %v5621_v19 = vld [vmem:[%s5995_s29 + $0x58] sm:$0xff]  }
  0x16   : > { %v5622_v20 = vld [vmem:[%s5995_s29 + $0x60] sm:$0xff]   ;;  %v5623_v21 = vld [vmem:[%s5995_s29 + $0x68] sm:$0xff]   ;;  %v5624_v22 = vld [vmem:[%s5995_s29 + $0x70] sm:$0xff]   ;;  %5490 = vmatpush3.bf16.msra.mxu1 %v5627_v28  ;;  %v6163_v28 = vadd.s32 96, %v6097_v52 }
  0x17   : > { %5246 = vmatpush3.bf16.msra.mxu0 %v5604_v2  ;;  %v5625_v23 = vld [vmem:[%s5995_s29 + $0x78] sm:$0xff]   ;;  %5483 = vmatprep.subr.bf16.mxu1 %v5629_v30  ;;  %v5636_v33 = vld [vmem:[%s8821_s3 + $0x60] sm:$0xff]   ;;  %v5638_v35 = vld [vmem:[%s8821_s3 + $0x68] sm:$0xff]  }
  0x18   : > { %5247 = vmatprep.subr.bf16.mxu0 %v5605_v3  ;;  %v5631_v32 = vld [vmem:[%s8821_s3 + $0x18] sm:$0xff]   ;;  %v5633_v34 = vld [vmem:[%s8821_s3 + $0x20] sm:$0xff]   ;;  %v5635_v36 = vld [vmem:[%s8821_s3 + $0x28] sm:$0xff]   ;;  %9117 = vst [vmem:[#allocation7_spill] sm:$0xff] %v6163_v28 }
  0x19   : > { %v5640_v37 = vld [vmem:[%s8821_s3 + $0x70] sm:$0xff]   ;;  %v5639_v39 = vld [vmem:[%s8821_s3 + $0x38] sm:$0xff]   ;;  %v6079_v41 = vld [vmem:[%s8821_s3 + $0x80] sm:$0xff]  }
  0x1a   : > { %5491 = vmatpush3.bf16.msra.mxu1 %v5629_v30  ;;  %v5637_v38 = vld [vmem:[%s8821_s3 + $0x30] sm:$0xff]   ;;  %v5641_v40 = vld [vmem:[%s8821_s3 + $0x78] sm:$0xff]   ;;  %v6085_v42 = vld [vmem:[%s8820_s2] ss:$0 sm:$0xff] }
  0x1b   : > { %5248 = vmatpush3.bf16.msra.mxu0 %v5605_v3  ;;  %5484 = vmatprep.subr.bf16.mxu1 %v5631_v32  ;;  %v6127_v3 = vadd.s32 48, %v6097_v52 }
  0x1c   : > { %5249 = vmatprep.subr.bf16.mxu0 %v5606_v5 }
  0x1e   : > { %5492 = vmatpush3.bf16.msra.mxu1 %v5631_v32 }
  0x1f   : > { %5250 = vmatpush3.bf16.msra.mxu0 %v5606_v5  ;;  %5485 = vmatprep.subr.bf16.mxu1 %v5633_v34 }
  0x20   : > { %5251 = vmatprep.subr.bf16.mxu0 %v5607_v6 }
  0x22   : > { %5493 = vmatpush3.bf16.msra.mxu1 %v5633_v34  ;;  %v6172_v34 = vadd.s32 112, %v6097_v52 }
  0x23   : > { %5252 = vmatpush3.bf16.msra.mxu0 %v5607_v6  ;;  %5486 = vmatprep.subr.bf16.mxu1 %v5635_v36 }
  0x24   : > { %5253 = vmatprep.subr.bf16.mxu0 %v5608_v7  ;;  %9119 = vst [vmem:[#allocation9_spill] sm:$0xff] %v6172_v34 }
  0x26   : > { %5494 = vmatpush3.bf16.msra.mxu1 %v5635_v36 }
  0x27   : > { %5254 = vmatpush3.bf16.msra.mxu0 %v5608_v7  ;;  %5487 = vmatprep.subr.bf16.mxu1 %v5637_v38 }
  0x28   : > { %5255 = vmatprep.subr.bf16.mxu0 %v5609_v8 }
  0x2a   : > { %5495 = vmatpush3.bf16.msra.mxu1 %v5637_v38 }
  0x2b   : > { %5256 = vmatpush3.bf16.msra.mxu0 %v5609_v8  ;;  %5488 = vmatprep.subr.bf16.mxu1 %v5639_v39 }
  0x2c   : > { %5289 = vmatprep.subr.bf16.mxu0 %v5628_v25 }
  0x2e   : > { %5258 = vmatmul.mubr.bf16.vlgmr.msra.gmra.mrb[0].mxu0 %v5611_v9  ;;  %5496 = vmatpush3.bf16.msra.mxu1 %v5639_v39  ;;  %v6178_v39 = vadd.s32 120, %v6097_v52 }
  0x2f   : > { %5261 = vmatprep.mubr.bf16.mxu0 %v5612_v10  ;;  %5290 = vmatpush3.bf16.msra.mxu0 %v5628_v25 }
  0x30   : > { %5291 = vmatprep.subr.bf16.mxu0 %v5630_v27  ;;  %5385 = vmatprep.subr.bf16.mxu1 %v6079_v41  ;;  %9120 = vst [vmem:[#allocation10_spill] sm:$0xff] %v6178_v39 }
  0x33   : > { %5292 = vmatpush3.bf16.msra.mxu0 %v5630_v27  ;;  %v6160_v27 = vadd.s32 88, %v6097_v52 }
  0x34   : > { %5293 = vmatprep.subr.bf16.mxu0 %v5632_v29 }
  0x35   : > { %9116 = vst [vmem:[#allocation6_spill] sm:$0xff] %v6160_v27 }
  0x36   : > { %5262 = vmatmul.mubr.bf16.gmra.mrb[4].mxu0 %v5613_v11 }
  0x37   : > { %5265 = vmatprep.mubr.bf16.mxu0 %v5614_v12  ;;  %5294 = vmatpush3.bf16.msra.mxu0 %v5632_v29 }
  0x38   : > { %5295 = vmatprep.subr.bf16.mxu0 %v5634_v31 }
  0x3b   : > { %5296 = vmatpush3.bf16.msra.mxu0 %v5634_v31 }
  0x3c   : > { %5297 = vmatprep.subr.bf16.mxu0 %v5636_v33 }
  0x3e   : > { %5266 = vmatmul.mubr.bf16.gmra.mrb[8].mxu0 %v5615_v13 }
  0x3f   : > { %5269 = vmatprep.mubr.bf16.mxu0 %v5616_v14  ;;  %5298 = vmatpush3.bf16.msra.mxu0 %v5636_v33  ;;  %v6169_v33 = vadd.s32 104, %v6097_v52 }
  0x40   : > { %5299 = vmatprep.subr.bf16.mxu0 %v5638_v35 }
  0x41   : > { %9118 = vst [vmem:[#allocation8_spill] sm:$0xff] %v6169_v33 }
  0x43   : > { %5300 = vmatpush3.bf16.msra.mxu0 %v5638_v35 }
  0x44   : > { %5301 = vmatprep.subr.bf16.mxu0 %v5640_v37 }
  0x46   : > { %5270 = vmatmul.mubr.bf16.gmra.mrb[12].mxu0 %v5617_v15 }
  0x47   : > { %5273 = vmatprep.mubr.bf16.mxu0 %v5618_v16  ;;  %5302 = vmatpush3.bf16.msra.mxu0 %v5640_v37 }
  0x48   : > { %5303 = vmatprep.subr.bf16.mxu0 %v5641_v40 }
  0x4b   : > { %5304 = vmatpush3.bf16.msra.mxu0 %v5641_v40 }
  0x4c   : > { %5337 = vmatprep.subr.bf16.mxu0 %v5626_v26 }
  0x4e   : > { %5274 = vmatmul.mubr.bf16.gmra.mrb[16].mxu0 %v5619_v17 }
  0x4f   : > { %5277 = vmatprep.mubr.bf16.mxu0 %v5620_v18 }
  0x56   : > { %5278 = vmatmul.mubr.bf16.gmra.mrb[20].mxu0 %v5621_v19 }
  0x57   : > { %5281 = vmatprep.mubr.bf16.mxu0 %v5622_v20 }
  0x5e   : > { %5282 = vmatmul.mubr.bf16.gmra.mrb[24].mxu0 %v5623_v21  ;;  %v6151_v21 = vadd.s32 64, %v6097_v52 }
  0x5f   : > { %5285 = vmatprep.mubr.bf16.mxu0 %v5624_v22  ;;  %v6154_v22 = vadd.s32 72, %v6097_v52 }
  0x60   : > { %9113 = vst [vmem:[#allocation3_spill] sm:$0xff] %v6151_v21 }
  0x61   : > { %9114 = vst [vmem:[#allocation4_spill] sm:$0xff] %v6154_v22 }
  0x66   : > { %5286 = vmatmul.mubr.bf16.gmra.mrb[28].mxu0 %v5625_v23  ;;  %v6157_v23 = vadd.s32 80, %v6097_v52 }
  0x68   : > { %9115 = vst [vmem:[#allocation5_spill] sm:$0xff] %v6157_v23 }
 0x101   : > { %v5259_v44 = vpop.f32.mrb[0].mxu0 }
 0x102   : > { %v6088_v45 = vadd.f32 %v5259_v44, %v6085_v42  ;;  %v467_v46 = vpop.f32.mrb[1].mxu0 }
 0x103   : > { %v6091_v47 = vadd.f32 %v6085_v42, %v467_v46  ;;  %v5260_v48 = vpop.f32.mrb[2].mxu0 }
 0x104   : > { %v4974_v49 = vmul.f32 -1.442695, %v6088_v45  ;;  %v6095_v50 = vadd.f32 %v5260_v48, %v6085_v42  ;;  %v470_v51 = vpop.f32.mrb[3].mxu0 }
 0x105   : > { %v4972_v53 = vmul.f32 -1.442695, %v6091_v47  ;;  %v6101_v54 = vadd.f32 %v6085_v42, %v470_v51 }
 0x106   : > { %5658 = vpow2.f32 %v4974_v49  ;;  %v4975_v55 = vmul.f32 -1.442695, %v6095_v50 }
 0x107   : > { %5660 = vpow2.f32 %v4972_v53  ;;  %v4973_v56 = vmul.f32 -1.442695, %v6101_v54 }
 0x108   : > { %5662 = vpow2.f32 %v4975_v55 }
 0x109   : > { %5664 = vpow2.f32 %v4973_v56  ;;  %v5263_v58 = vpop.f32.mrb[4].mxu0 }
 0x10a   : > { %v6115_v61 = vadd.f32 %v5263_v58, %v6085_v42  ;;  %v483_v62 = vpop.f32.mrb[5].mxu0 }
 0x10b   : > { %v6124_v1 = vadd.f32 %v6085_v42, %v483_v62  ;;  %v5264_v2 = vpop.f32.mrb[6].mxu0 }
 0x10c   : > { %v4978_v5 = vmul.f32 -1.442695, %v6115_v61  ;;  %v6134_v6 = vadd.f32 %v5264_v2, %v6085_v42  ;;  %v486_v7 = vpop.f32.mrb[7].mxu0 }
 0x10d   : > { %v4976_v10 = vmul.f32 -1.442695, %v6124_v1  ;;  %v6140_v11 = vadd.f32 %v6085_v42, %v486_v7 }
 0x10e   : > { %5666 = vpow2.f32 %v4978_v5  ;;  %v4979_v14 = vmul.f32 -1.442695, %v6134_v6 }
 0x10f   : > { %5668 = vpow2.f32 %v4976_v10  ;;  %v4977_v17 = vmul.f32 -1.442695, %v6140_v11 }
 0x110   : > { %v5659_v20 = vpop.eup %5658  ;;  %5670 = vpow2.f32 %v4979_v14 }
 0x111   : > { %v5661_v24 = vpop.eup %5660  ;;  %v692_v25 = vadd.f32 1.0, %v5659_v20  ;;  %5672 = vpow2.f32 %v4977_v17  ;;  %v5267_v26 = vpop.f32.mrb[8].mxu0 }
 0x112   : > { %v5663_v29 = vpop.eup %5662  ;;  %v690_v30 = vadd.f32 1.0, %v5661_v24  ;;  %v6166_v31 = vadd.f32 %v5267_v26, %v6085_v42  ;;  %v499_v32 = vpop.f32.mrb[9].mxu0  ;;  %v6202_v26 = vadd.s32 136, %v6097_v52 }
 0x113   : > { %v5665_v35 = vpop.eup %5664  ;;  %5674 = vrcp.f32 %v692_v25  ;;  %v693_v36 = vadd.f32 1.0, %v5663_v29  ;;  %v6175_v37 = vadd.f32 %v6085_v42, %v499_v32  ;;  %v5268_v38 = vpop.f32.mrb[10].mxu0  ;;  %v6199_v25 = vadd.s32 128, %v6097_v52 }
 0x114   : > { %5676 = vrcp.f32 %v690_v30  ;;  %v691_v40 = vadd.f32 1.0, %v5665_v35  ;;  %v4982_v43 = vmul.f32 -1.442695, %v6166_v31  ;;  %v6182_v44 = vadd.f32 %v5268_v38, %v6085_v42  ;;  %v502_v46 = vpop.f32.mrb[11].mxu0 }
 0x115   : > { %5678 = vrcp.f32 %v693_v36  ;;  %v4980_v48 = vmul.f32 -1.442695, %v6175_v37  ;;  %v6186_v49 = vadd.f32 %v6085_v42, %v502_v46  ;;  %9121 = vst [vmem:[#allocation11_spill] sm:$0xff] %v6199_v25  ;;  %v6208_v36 = vadd.s32 144, %v6097_v52 }
 0x116   : > { %5680 = vrcp.f32 %v691_v40  ;;  %v4983_v53 = vmul.f32 -1.442695, %v6182_v44  ;;  %v9138_v25 = vmov 0 }
 0x117   : > { %5682 = vpow2.f32 %v4982_v43  ;;  %v4981_v58 = vmul.f32 -1.442695, %v6186_v49  ;;  %9122 = vst [vmem:[#allocation12_spill] sm:$0xff] %v6208_v36 }
 0x118   : > { %v5667_v5 = vpop.eup %5666  ;;  %5684 = vpow2.f32 %v4980_v48  ;;  %v6214_v48 = vadd.s32 152, %v6097_v52 }
 0x119   : > { %v5669_v17 = vpop.eup %5668  ;;  %v696_v20 = vadd.f32 1.0, %v5667_v5  ;;  %5686 = vpow2.f32 %v4983_v53  ;;  %v5271_v24 = vpop.f32.mrb[12].mxu0 }
 0x11a   : > { %v5671_v29 = vpop.eup %5670  ;;  %v694_v30 = vadd.f32 1.0, %v5669_v17  ;;  %5688 = vpow2.f32 %v4981_v58  ;;  %v6205_v32 = vadd.f32 %v5271_v24, %v6085_v42  ;;  %v515_v35 = vpop.f32.mrb[13].mxu0  ;;  %9123 = vst [vmem:[#allocation13_spill] sm:$0xff] %v6214_v48 }
 0x11b   : > { %v5673_v38 = vpop.eup %5672  ;;  %5690 = vrcp.f32 %v696_v20  ;;  %v697_v40 = vadd.f32 1.0, %v5671_v29  ;;  %v6211_v43 = vadd.f32 %v6085_v42, %v515_v35  ;;  %v5272_v46 = vpop.f32.mrb[14].mxu0 }
 0x11c   : > { %5692 = vrcp.f32 %v694_v30  ;;  %v695_v53 = vadd.f32 1.0, %v5673_v38  ;;  %v4986_v58 = vmul.f32 -1.442695, %v6205_v32  ;;  %v6218_v5 = vadd.f32 %v5272_v46, %v6085_v42  ;;  %v518_v17 = vpop.f32.mrb[15].mxu0 }
 0x11d   : > { %v5675_v24 = vpop.eup %5674  ;;  %5694 = vrcp.f32 %v697_v40  ;;  %v4984_v20 = vmul.f32 -1.442695, %v6211_v43  ;;  %v6222_v29 = vadd.f32 %v6085_v42, %v518_v17 }
 0x11e   : > { %v5677_v10 = vpop.eup %5676  ;;  %v6226_v14 = vmul.f32 %v5675_v24, %v6088_v45  ;;  %5696 = vrcp.f32 %v695_v53  ;;  %v4987_v30 = vmul.f32 -1.442695, %v6218_v5  ;;  %v6240_v53 = vadd.s32 160, %v6097_v52 }
 0x11f   : > { %v5679_v46 = vpop.eup %5678  ;;  %v6231_v2 = vmul.f32 %v5677_v10, %v6091_v47  ;;  %5698 = vpow2.f32 %v4986_v58  ;;  %v4985_v40 = vmul.f32 -1.442695, %v6222_v29 }
 0x120   : > { %9124 = vst [vmem:[#allocation14_spill] sm:$0xff] %v6226_v14  ;;  %v5681_v7 = vpop.eup %5680  ;;  %v6236_v35 = vmul.f32 %v5679_v46, %v6095_v50  ;;  %5700 = vpow2.f32 %v4984_v20  ;;  %9127 = vst [vmem:[#allocation17_spill] sm:$0xff] %v6240_v53 }
 0x121   : > { %9125 = vst [vmem:[#allocation15_spill] sm:$0xff] %v6231_v2  ;;  %v5683_v24 = vpop.eup %5682  ;;  %v6243_v56 = vmul.f32 %v5681_v7, %v6101_v54  ;;  %5702 = vpow2.f32 %v4987_v30  ;;  %v5275_v47 = vpop.f32.mrb[16].mxu0  ;;  %v1463_v10 = vmax.f32 %v6231_v2, -1e+30  ;;  %v1465_v58 = vmax.f32 %v6231_v2, %v6226_v14 }
 0x122   : > { %9126 = vst [vmem:[#allocation16_spill] sm:$0xff] %v6236_v35  ;;  %v5685_v17 = vpop.eup %5684  ;;  %v700_v20 = vadd.f32 1.0, %v5683_v24  ;;  %5704 = vpow2.f32 %v4985_v40  ;;  %v6251_v46 = vadd.f32 %v5275_v47, %v6085_v42  ;;  %v531_v45 = vpop.f32.mrb[17].mxu0 }
 0x123   : > { %9128 = vst [vmem:[#allocation18_spill] sm:$0xff] %v6243_v56  ;;  %v5687_v62 = vpop.eup %5686  ;;  %v698_v54 = vadd.f32 1.0, %v5685_v17  ;;  %v6254_v7 = vadd.f32 %v6085_v42, %v531_v45  ;;  %v5276_v30 = vpop.f32.mrb[18].mxu0  ;;  %v1464_v55 = vmax.f32 %v6243_v56, -1e+30 }
 0x124   : > { %v5689_v51 = vpop.eup %5688  ;;  %5706 = vrcp.f32 %v700_v20  ;;  %v701_v19 = vadd.f32 1.0, %v5687_v62  ;;  %v4990_v18 = vmul.f32 -1.442695, %v6251_v46  ;;  %v6259_v24 = vadd.f32 %v5276_v30, %v6085_v42  ;;  %v534_v40 = vpop.f32.mrb[19].mxu0 }
 0x125   : > { %v5691_v47 = vpop.eup %5690  ;;  %5708 = vrcp.f32 %v698_v54  ;;  %v699_v50 = vadd.f32 1.0, %v5689_v51  ;;  %v4988_v17 = vmul.f32 -1.442695, %v6254_v7  ;;  %v6263_v45 = vadd.f32 %v6085_v42, %v534_v40 }
 0x126   : > { %v5693_v16 = vpop.eup %5692  ;;  %v6266_v38 = vmul.f32 %v5691_v47, %v6115_v61  ;;  %5710 = vrcp.f32 %v701_v19  ;;  %v4991_v62 = vmul.f32 -1.442695, %v6259_v24  ;;  %v1497_v51 = vmax.f32 %v1463_v10, %v6226_v14 }
 0x127   : > { %v5695_v20 = vpop.eup %5694  ;;  %v6270_v30 = vmul.f32 %v5693_v16, %v6124_v1  ;;  %5712 = vrcp.f32 %v699_v50  ;;  %v4989_v54 = vmul.f32 -1.442695, %v6263_v45  ;;  %v1498_v61 = vmax.f32 %v1464_v55, %v6236_v35 }
 0x128   : > { %9129 = vst [vmem:[#allocation19_spill] sm:$0xff] %v6266_v38  ;;  %v5697_v15 = vpop.eup %5696  ;;  %v6275_v40 = vmul.f32 %v5695_v20, %v6134_v6  ;;  %5714 = vpow2.f32 %v4990_v18 }
 0x129   : > { %9130 = vst [vmem:[#allocation20_spill] sm:$0xff] %v6270_v30  ;;  %v5699_v47 = vpop.eup %5698  ;;  %v6279_v19 = vmul.f32 %v5697_v15, %v6140_v11  ;;  %5716 = vpow2.f32 %v4988_v17  ;;  %v5279_v13 = vpop.f32.mrb[20].mxu0  ;;  %v1467_v1 = vmax.f32 %v6226_v14, %v6270_v30  ;;  %v6290_v11 = vmax.f32 %v1465_v58, %v6270_v30 }
 0x12a   : > { %9131 = vst [vmem:[#allocation21_spill] sm:$0xff] %v6275_v40  ;;  %v5701_v10 = vpop.eup %5700  ;;  %1402 = vst [vmem:[#allocation2 + $0x58] sm:$0xff] %v6275_v40  ;;  %v704_v6 = vadd.f32 1.0, %v5699_v47  ;;  %5718 = vpow2.f32 %v4991_v62  ;;  %v6287_v18 = vadd.f32 %v5279_v13, %v6085_v42  ;;  %v547_v55 = vpop.f32.mrb[21].mxu0 }
 0x12b   : > { %9132 = vst [vmem:[#allocation22_spill] sm:$0xff] %v6279_v19  ;;  %v5703_v15 = vpop.eup %5702  ;;  %v702_v50 = vadd.f32 1.0, %v5701_v10  ;;  %5720 = vpow2.f32 %v4989_v54  ;;  %v6293_v17 = vadd.f32 %v6085_v42, %v547_v55  ;;  %v5280_v20 = vpop.f32.mrb[22].mxu0  ;;  %v6296_v12 = vmax.f32 %v1467_v1, %v6266_v38 }
 0x12c   : > { %v5705_v8 = vpop.eup %5704  ;;  %5722 = vrcp.f32 %v704_v6  ;;  %v705_v62 = vadd.f32 1.0, %v5703_v15  ;;  %v4994_v13 = vmul.f32 -1.442695, %v6287_v18  ;;  %v6300_v47 = vadd.f32 %v5280_v20, %v6085_v42  ;;  %v550_v58 = vpop.f32.mrb[23].mxu0 }
 0x12d   : > { %5724 = vrcp.f32 %v702_v50  ;;  %v703_v16 = vadd.f32 1.0, %v5705_v8  ;;  %v4992_v54 = vmul.f32 -1.442695, %v6293_v17  ;;  %v6304_v10 = vadd.f32 %v6085_v42, %v550_v58 }
 0x12e   : > { %v5707_v55 = vpop.eup %5706  ;;  %5726 = vrcp.f32 %v705_v62  ;;  %v4995_v1 = vmul.f32 -1.442695, %v6300_v47  ;;  %v6308_v6 = vmax.f32 %v1497_v51, %v6270_v30  ;;  %v1533_v8 = vmax.f32 %v6290_v11, %v6266_v38 }
 0x12f   : > { %v5709_v15 = vpop.eup %5708  ;;  %v6311_v9 = vmul.f32 %v5707_v55, %v6166_v31  ;;  %5728 = vrcp.f32 %v703_v16  ;;  %v4993_v50 = vmul.f32 -1.442695, %v6304_v10  ;;  %v6320_v62 = vmax.f32 %v1498_v61, %v6279_v19 }
 0x130   : > { %v5711_v20 = vpop.eup %5710  ;;  %v6317_v58 = vmul.f32 %v5709_v15, %v6175_v37  ;;  %5730 = vpow2.f32 %v4994_v13  ;;  %v6327_v16 = vmax.f32 %v6308_v6, %v6266_v38  ;;  %1625 = vst [vmem:[#allocation2 + $0x20] sm:$0xff] %v6308_v6 }
 0x131   : > { %9133 = vst [vmem:[#allocation23_spill] sm:$0xff] %v6311_v9  ;;  %v5713_v51 = vpop.eup %5712  ;;  %v6323_v14 = vmul.f32 %v5711_v20, %v6182_v44  ;;  %5732 = vpow2.f32 %v4992_v54  ;;  %v5283_v31 = vpop.f32.mrb[24].mxu0  ;;  %1626 = vst [vmem:[#allocation2 + $0x28] sm:$0xff] %v6320_v62 }
 0x132   : > { %9134 = vst [vmem:[#allocation24_spill] sm:$0xff] %v6317_v58  ;;  %v5715_v55 = vpop.eup %5714  ;;  %v6330_v11 = vmul.f32 %v5713_v51, %v6186_v49  ;;  %5734 = vpow2.f32 %v4995_v1  ;;  %v6333_v37 = vadd.f32 %v5283_v31, %v6085_v42  ;;  %v563_v61 = vpop.f32.mrb[25].mxu0  ;;  %v1471_v13 = vmax.f32 %v6266_v38, %v6317_v58  ;;  %1627 = vst [vmem:[#allocation2 + $0x30] sm:$0xff] %v6327_v16 }
 0x133   : > { %9135 = vst [vmem:[#allocation25_spill] sm:$0xff] %v6323_v14  ;;  %v5717_v44 = vpop.eup %5716  ;;  %1406 = vst [vmem:[#allocation2 + $0x78] sm:$0xff] %v6323_v14  ;;  %v708_v54 = vadd.f32 1.0, %v5715_v55  ;;  %5736 = vpow2.f32 %v4993_v50  ;;  %v6341_v49 = vadd.f32 %v6085_v42, %v563_v61  ;;  %v5284_v1 = vpop.f32.mrb[26].mxu0  ;;  %v1535_v34 = vmax.f32 %v6296_v12, %v6317_v58 }
 0x134   : > { %9136 = vst [vmem:[#allocation26_spill] sm:$0xff] %v6330_v11  ;;  %v5719_v20 = vpop.eup %5718  ;;  %1404 = vst [vmem:[#allocation2 + $0x68] sm:$0xff] %v6330_v11  ;;  %v706_v51 = vadd.f32 1.0, %v5717_v44  ;;  %v4998_v31 = vmul.f32 -1.442695, %v6333_v37  ;;  %v6349_v2 = vadd.f32 %v5284_v1, %v6085_v42  ;;  %v566_v55 = vpop.f32.mrb[27].mxu0  ;;  %v6352_v50 = vmax.f32 %v1471_v13, %v6311_v9 }
 0x135   : > { %v5721_v61 = vpop.eup %5720  ;;  %5738 = vrcp.f32 %v708_v54  ;;  %v709_v14 = vadd.f32 1.0, %v5719_v20  ;;  %v4996_v15 = vmul.f32 -1.442695, %v6341_v49  ;;  %v6356_v48 = vadd.f32 %v6085_v42, %v566_v55 }
 0x136   : > { %v5723_v53 = vpop.eup %5722  ;;  %5740 = vrcp.f32 %v706_v51  ;;  %v707_v44 = vadd.f32 1.0, %v5721_v61  ;;  %v4999_v36 = vmul.f32 -1.442695, %v6349_v2  ;;  %v9137_v1 = vand.u32 15, %v6106_v57 }
 0x137   : > { %v9141_v13 = vmax.f32 %v6270_v30, %v6266_v38  ;;  %v5725_v20 = vpop.eup %5724  ;;  %v6372_v55 = vmul.f32 %v5723_v53, %v6205_v32  ;;  %5742 = vrcp.f32 %v709_v14  ;;  %v4997_v51 = vmul.f32 -1.442695, %v6356_v48  ;;  %v1785_v27 = vld [vmem:[#allocation2 + $0x1f] sm:$0xff] }
 0x138   : > { %vm6361_vm0 = vcmp.lt.s32.totalorder %v9137_v1, 15  ;;  %v9143_v61 = vand.u32 15, %v6097_v52  ;;  %v9144_v1 = vmov 0  ;;  %v5727_v39 = vpop.eup %5726  ;;  %5744 = vrcp.f32 %v707_v44 }
 0x139   : > { %v9139_v25 = vsel %vm6361_vm0, 4294967295, %v9138_v25  ;;  %v6369_v54 = vmax.f32 %v9141_v13, %v6317_v58  ;;  %9142 = vst [vmem:[#allocation28_spill] sm:$0xff] %v6372_v55  ;;  %v6384_v13 = vmul.f32 %v5725_v20, %v6211_v43  ;;  %v6389_v14 = vmax.f32 %v1533_v8, %v6317_v58  ;;  %v5729_v53 = vpop.eup %5728  ;;  %v5287_v38 = vpop.f32.mrb[28].mxu0 }
 0x13a   : > { %9140 = vst [vmem:[#allocation27_spill] sm:$0xff] %v9139_v25  ;;  %vm6377_vm1 = vcmp.ge.s32.totalorder %v9143_v61, 1  ;;  %v6392_v61 = vmul.f32 %v5727_v39, %v6218_v5  ;;  %5746 = vpow2.f32 %v4998_v31  ;;  %v6395_v30 = vmax.f32 %v1535_v34, %v6311_v9  ;;  %v5731_v43 = vpop.eup %5730 }
 0x13b   : > { %v9145_v1 = vsel %vm6377_vm1, 4294967295, %v9144_v1  ;;  %9147 = vst [vmem:[#allocation30_spill] sm:$0xff] %v6384_v13  ;;  %v1537_v32 = vmax.f32 %v6369_v54, %v6311_v9  ;;  %9148 = vst [vmem:[#allocation31_spill] sm:$0xff] %v6389_v14  ;;  %v6399_v12 = vmax.f32 %v6320_v62, %v6275_v40  ;;  %v6402_v44 = vmul.f32 %v5729_v53, %v6222_v29  ;;  %v579_v54 = vpop.f32.mrb[29].mxu0  ;;  %v5733_v34 = vpop.eup %5732 }
 0x13c   : > { %9146 = vst [vmem:[#allocation29_spill] sm:$0xff] %v9145_v1  ;;  %9149 = vst [vmem:[#allocation32_spill] sm:$0xff] %v6392_v61  ;;  %5748 = vpow2.f32 %v4996_v15  ;;  %v6405_v8 = vadd.f32 %v5287_v38, %v6085_v42  ;;  %v1475_v39 = vmax.f32 %v6311_v9, %v6384_v13  ;;  %v712_v5 = vadd.f32 1.0, %v5731_v43  ;;  %v5288_v29 = vpop.f32.mrb[30].mxu0  ;;  %v5735_v38 = vpop.eup %5734 }
 0x13d   : > { %9150 = vst [vmem:[#allocation33_spill] sm:$0xff] %v6395_v30  ;;  %9151 = vst [vmem:[#allocation34_spill] sm:$0xff] %v6402_v44  ;;  %5750 = vpow2.f32 %v4999_v36  ;;  %v6412_v31 = vadd.f32 %v6085_v42, %v579_v54  ;;  %v1477_v15 = vmax.f32 %v6384_v13, %v6372_v55  ;;  %v710_v20 = vadd.f32 1.0, %v5733_v34  ;;  %v582_v43 = vpop.f32.mrb[31].mxu0  ;;  %v5737_v54 = vpop.eup %5736 }
 0x13e   : > { %1629 = vst [vmem:[#allocation2 + $0x40] sm:$0xff] %v6389_v14  ;;  %1410 = vst [vmem:[#allocation2 + $0x98] sm:$0xff] %v6392_v61  ;;  %5752 = vpow2.f32 %v4997_v51  ;;  %v5002_v53 = vmul.f32 -1.442695, %v6405_v8  ;;  %v6421_v36 = vadd.f32 %v5288_v29, %v6085_v42  ;;  %v713_v40 = vadd.f32 1.0, %v5735_v38 }
 0x13f   : > { %1631 = vst [vmem:[#allocation2 + $0x50] sm:$0xff] %v6395_v30  ;;  %1628 = vst [vmem:[#allocation2 + $0x38] sm:$0xff] %v6399_v12  ;;  %5754 = vrcp.f32 %v712_v5  ;;  %v5000_v28 = vmul.f32 -1.442695, %v6412_v31  ;;  %v6425_v30 = vadd.f32 %v6085_v42, %v582_v43  ;;  %v711_v14 = vadd.f32 1.0, %v5737_v54  ;;  %v6442_v42 = vld [vmem:[#allocation2 + $0x29] sm:$0xff] }
 0x140   : > { %1408 = vst [vmem:[#allocation2 + $0x88] sm:$0xff] %v6402_v44  ;;  %5756 = vrcp.f32 %v710_v20  ;;  %v5003_v33 = vmul.f32 -1.442695, %v6421_v36  ;;  %v1478_v51 = vmax.f32 %v6402_v44, %v6392_v61  ;;  %v9152_v34 = vand.u32 15, %v6097_v52  ;;  %v5739_v20 = vpop.eup %5738 }
 0x141   : > { %v9153_v29 = vmov 0  ;;  %v9156_v5 = vand.u32 15, %v6106_v57  ;;  %v9157_v38 = vmov 0  ;;  %5758 = vrcp.f32 %v713_v40  ;;  %v5741_v61 = vpop.eup %5740 }
 0x142   : > { %vm6432_vm2 = vcmp.ge.s32.totalorder %v9152_v34, 2  ;;  %v5001_v43 = vmul.f32 -1.442695, %v6425_v30  ;;  %v9160_v54 = vmax.f32 %v6317_v58, %v6311_v9  ;;  %v1509_v23 = vmax.f32 %v1475_v39, %v6372_v55  ;;  %v5743_v22 = vpop.eup %5742  ;;  %v1978_v9 = vld [vmem:[#allocation2 + $0x2a] sm:$0xff]  ;;  %v2105_v58 = vld [vmem:[#allocation2 + $0x1e] sm:$0xff] }
 0x143   : > { %v9154_v29 = vsel %vm6432_vm2, 4294967295, %v9153_v29  ;;  %vm6438_vm3 = vcmp.lt.s32.totalorder %v9156_v5, 14  ;;  %v6451_v57 = vmul.f32 %v5739_v20, %v6251_v46  ;;  %5760 = vrcp.f32 %v711_v14  ;;  %v5745_v46 = vpop.eup %5744 }
 0x144   : > { %9155 = vst [vmem:[#allocation35_spill] sm:$0xff] %v9154_v29  ;;  %v9158_v38 = vsel %vm6438_vm3, 4294967295, %v9157_v38  ;;  %v1507_v34 = vmax.f32 %v9160_v54, %v6384_v13  ;;  %v1539_v5 = vmax.f32 %v6352_v50, %v6384_v13  ;;  %v6456_v40 = vmax.f32 %v1537_v32, %v6384_v13  ;;  %v5747_v32 = vpop.eup %5746  ;;  %v9288_v29 = vld [vmem:[#allocation9_spill] sm:$0xff] }
 0x145   : > { %9159 = vst [vmem:[#allocation36_spill] sm:$0xff] %v9158_v38  ;;  %5762 = vpow2.f32 %v5002_v53  ;;  %v6459_v21 = vmul.f32 %v5741_v61, %v6254_v7  ;;  %v1754_v39 = vsel %vm6361_vm0, %v6442_v42, -1e+30  ;;  %v6466_v14 = vmul.f32 %v5743_v22, %v6259_v24 }
 0x146   : > { %v1541_v54 = vmax.f32 %v1507_v34, %v6372_v55  ;;  %5764 = vpow2.f32 %v5000_v28  ;;  %v6469_v50 = vmax.f32 %v1539_v5, %v6372_v55  ;;  %1633 = vst [vmem:[#allocation2 + $0x60] sm:$0xff] %v6456_v40  ;;  %v1881_v7 = vsel %vm6377_vm1, %v1785_v27, -1e+30  ;;  %v5749_v28 = vpop.eup %5748 }
 0x147   : > { %5766 = vpow2.f32 %v5003_v33  ;;  %v6475_v61 = vmul.f32 %v5745_v46, %v6263_v45  ;;  %v1479_v53 = vmax.f32 %v6372_v55, %v6459_v21  ;;  %v1481_v22 = vmax.f32 %v6459_v21, %v6451_v57  ;;  %1414 = vst [vmem:[#allocation2 + $0xb8] sm:$0xff] %v6466_v14  ;;  %v5751_v33 = vpop.eup %5750  ;;  %v1657_v46 = vld [vmem:[#allocation2 + $0x21] sm:$0xff] }
 0x148   : > { %9161 = vst [vmem:[#allocation37_spill] sm:$0xff] %v6469_v50  ;;  %v716_v24 = vadd.f32 1.0, %v5747_v32  ;;  %5768 = vpow2.f32 %v5001_v43  ;;  %v1511_v42 = vmax.f32 %v1477_v15, %v6459_v21  ;;  %v1543_v27 = vmax.f32 %v1509_v23, %v6459_v21  ;;  %1635 = vst [vmem:[#allocation2 + $0x70] sm:$0xff] %v6469_v50  ;;  %v1786_v55 = vld [vmem:[#allocation2 + $0x27] sm:$0xff] }
 0x149   : > { %v714_v45 = vadd.f32 1.0, %v5749_v28  ;;  %v1371_v20 = vpack.c.bf16 %v6475_v61, %v6459_v21  ;;  %v1512_v34 = vmax.f32 %v1478_v51, %v6475_v61  ;;  %v6489_v5 = vmax.f32 %v1479_v53, %v6451_v57  ;;  %v5753_v28 = vpop.eup %5752  ;;  %v1977_v50 = vld [vmem:[#allocation2 + $0x22] sm:$0xff] }
 0x14a   : > { %v9162_v43 = vand.u32 15, %v6109_v59  ;;  %v9163_v15 = vmov 0  ;;  %v9166_v23 = vand.u32 15, %v6112_v60  ;;  %v9167_v32 = vmov 0 }
 0x14b   : > { %5770 = vrcp.f32 %v716_v24  ;;  %v717_v51 = vadd.f32 1.0, %v5751_v33  ;;  %v1545_v53 = vmax.f32 %v1511_v42, %v6451_v57  ;;  %v6505_v13 = vmax.f32 %v1541_v54, %v6459_v21  ;;  %5369 = vmatprep.mubr.bf16.mxu1 %v1371_v20 }
 0x14c   : > { %vm6493_vm4 = vcmp.ge.s32.totalorder %v9162_v43, 1  ;;  %vm6499_vm5 = vcmp.lt.s32.totalorder %v9166_v23, 15  ;;  %v5755_v43 = vpop.eup %5754  ;;  %5772 = vrcp.f32 %v714_v45  ;;  %v715_v1 = vadd.f32 1.0, %v5753_v28  ;;  %v2106_v28 = vld [vmem:[#allocation2 + $0x26] sm:$0xff] }
 0x14d   : > { %v9164_v15 = vsel %vm6493_vm4, 4294967295, %v9163_v15  ;;  %v9168_v32 = vsel %vm6499_vm5, 4294967295, %v9167_v32  ;;  %v1546_v25 = vmax.f32 %v1512_v34, %v6466_v14  ;;  %v6509_v23 = vmax.f32 %v1543_v27, %v6451_v57  ;;  %v5757_v42 = vpop.eup %5756  ;;  %1637 = vst [vmem:[#allocation2 + $0x80] sm:$0xff] %v6505_v13 }
 0x14e   : > { %9165 = vst [vmem:[#allocation38_spill] sm:$0xff] %v9164_v15  ;;  %9169 = vst [vmem:[#allocation39_spill] sm:$0xff] %v9168_v32  ;;  %v9170_v24 = vand.u32 15, %v6109_v59  ;;  %v9171_v33 = vmov 0  ;;  %v9174_v21 = vand.u32 15, %v6112_v60  ;;  %v9175_v54 = vmov 0  ;;  %v5759_v59 = vpop.eup %5758 }
 0x14f   : > { %v6524_v45 = vmul.f32 %v5755_v43, %v6287_v18  ;;  %5774 = vrcp.f32 %v717_v51  ;;  %v1913_v27 = vmax.f32 %v1657_v46, %v1881_v7  ;;  %v1914_v20 = vmax.f32 %v1754_v39, %v1786_v55  ;;  %1639 = vst [vmem:[#allocation2 + $0x90] sm:$0xff] %v6509_v23  ;;  %v5761_v43 = vpop.eup %5760 }
 0x150   : > { %vm6513_vm6 = vcmp.ge.s32.totalorder %v9170_v24, 2  ;;  %vm6519_vm7 = vcmp.lt.s32.totalorder %v9174_v21, 14  ;;  %v6528_v34 = vmul.f32 %v5757_v42, %v6293_v17  ;;  %5776 = vrcp.f32 %v715_v1  ;;  %v5763_v7 = vpop.eup %5762 }
 0x151   : > { %v9172_v33 = vsel %vm6513_vm6, 4294967295, %v9171_v33  ;;  %v9176_v54 = vsel %vm6519_vm7, 4294967295, %v9175_v54  ;;  %v2074_v60 = vsel %vm6438_vm3, %v1978_v9, -1e+30  ;;  %v2201_v18 = vsel %vm6432_vm2, %v2105_v58, -1e+30 }
 0x152   : > { %9173 = vst [vmem:[#allocation40_spill] sm:$0xff] %v9172_v33  ;;  %9177 = vst [vmem:[#allocation41_spill] sm:$0xff] %v9176_v54  ;;  %v6536_v51 = vmul.f32 %v5759_v59, %v6300_v47  ;;  %v1945_v55 = vmax.f32 %v6308_v6, %v1913_v27  ;;  %v1946_v39 = vmax.f32 %v6320_v62, %v1914_v20  ;;  %v5765_v47 = vpop.eup %5764  ;;  %v720_v6 = vadd.f32 1.0, %v5763_v7  ;;  %v1660_v20 = vld [vmem:[#allocation2 + $0x39] sm:$0xff]  ;;  %v1787_v59 = vld [vmem:[#allocation2 + $0x2f] sm:$0xff] }
 0x153   : > { %v2233_v17 = vmax.f32 %v1977_v50, %v2201_v18  ;;  %v6541_v1 = vmul.f32 %v5761_v43, %v6304_v10  ;;  %v1483_v46 = vmax.f32 %v6451_v57, %v6528_v34  ;;  %v6548_v58 = vmax.f32 %v1481_v22, %v6528_v34  ;;  %v5767_v42 = vpop.eup %5766  ;;  %v1659_v7 = vld [vmem:[#allocation2 + $0x31] sm:$0xff] }
 0x154   : > { %1418 = vst [vmem:[#allocation2 + $0xd8] sm:$0xff] %v6536_v51  ;;  %v1547_v62 = vmax.f32 %v6489_v5, %v6528_v34  ;;  %v6554_v50 = vmax.f32 %v1545_v53, %v6528_v34  ;;  %v2234_v10 = vmax.f32 %v2074_v60, %v2106_v28  ;;  %v9178_v24 = vand.u32 15, %v6118_v63  ;;  %v5769_v60 = vpop.eup %5768 }
 0x155   : > { %v9179_v21 = vmov 0  ;;  %1416 = vst [vmem:[#allocation2 + $0xc8] sm:$0xff] %v6541_v1  ;;  %v718_v22 = vadd.f32 1.0, %v5765_v47  ;;  %v6564_v27 = vmax.f32 %v1483_v46, %v6524_v45  ;;  %v1549_v5 = vmax.f32 %v6548_v58, %v6524_v45  ;;  %v1980_v47 = vld [vmem:[#allocation2 + $0x3a] sm:$0xff] }
 0x156   : > { %vm6558_vm8 = vcmp.ge.s32.totalorder %v9178_v24, 1  ;;  %v6569_v53 = vmax.f32 %v1546_v25, %v6541_v1  ;;  %5778 = vrcp.f32 %v720_v6  ;;  %v721_v28 = vadd.f32 1.0, %v5767_v42  ;;  %1641 = vst [vmem:[#allocation2 + $0xa0] sm:$0xff] %v6554_v50  ;;  %v2107_v6 = vld [vmem:[#allocation2 + $0x2e] sm:$0xff]  ;;  %v5771_v24 = vpop.eup %5770 }
 0x157   : > { %v9180_v21 = vsel %vm6558_vm8, 4294967295, %v9179_v21  ;;  %v6572_v18 = vmax.f32 %v1547_v62, %v6524_v45  ;;  %v6575_v43 = vmax.f32 %v1945_v55, %v2233_v17  ;;  %5780 = vrcp.f32 %v718_v22  ;;  %v5643_v62 = vld [vmem:[%s8821_s3 + $0x88] sm:$0xff]   ;;  %v1979_v17 = vld [vmem:[#allocation2 + $0x32] sm:$0xff]  ;;  %v5773_v22 = vpop.eup %5772 }
 0x158   : > { %9181 = vst [vmem:[#allocation42_spill] sm:$0xff] %v9180_v21  ;;  %v719_v46 = vadd.f32 1.0, %v5769_v60  ;;  %1642 = vst [vmem:[#allocation2 + $0xa8] sm:$0xff] %v6569_v53  ;;  %v6578_v58 = vmax.f32 %v1946_v39, %v2234_v10  ;;  %v1372_v25 = vpack.c.bf16 %v6466_v14, %v6451_v57  ;;  %5782 = vrcp.f32 %v721_v28 }
 0x159   : > { %9182 = vst [vmem:[#allocation43_spill] sm:$0xff] %v6572_v18  ;;  %1643 = vst [vmem:[#allocation2 + $0xb0] sm:$0xff] %v6572_v18  ;;  %v1756_v55 = vsel %vm6499_vm5, %v1660_v20, -1e+30  ;;  %v1883_v39 = vsel %vm6493_vm4, %v1787_v59, -1e+30  ;;  %v6600_v60 = vmul.f32 %v5771_v24, %v6333_v37  ;;  %v5775_v9 = vpop.eup %5774 }
 0x15a   : > { %v9183_v10 = vand.u32 15, %v6202_v26  ;;  %v9184_v57 = vmov 0  ;;  %v6597_v42 = vadd.s32 168, %v6097_v52  ;;  %5784 = vrcp.f32 %v719_v46  ;;  %5370 = vmatmul.mubr.bf16.vlgmr.msra.gmra.mrb[0].mxu1 %v1372_v25  ;;  %v1788_v59 = vld [vmem:[#allocation2 + $0x37] sm:$0xff]  ;;  %v5777_v37 = vpop.eup %5776 }
 0x15b   : > { %v2297_v20 = vpack.c.bf16 %v6578_v58, %v6575_v43  ;;  %v1915_v28 = vmax.f32 %v1659_v7, %v1883_v39  ;;  %v1916_v15 = vmax.f32 %v1756_v55, %v1788_v59  ;;  %v2076_v32 = vsel %vm6519_vm7, %v1980_v47, -1e+30  ;;  %5386 = vmatpush3.bf16.msra.mxu1 %v6079_v41  ;;  %v5644_v47 = vld [vmem:[%s8821_s3 + $0x90] sm:$0xff]  }
 0x15c   : > { %vm6592_vm9 = vcmp.lt.s32.totalorder %v9183_v10, 15  ;;  %v6605_v10 = vmul.f32 %v5773_v22, %v6341_v49  ;;  %v2203_v18 = vsel %vm6513_vm6, %v2107_v6, -1e+30  ;;  %v6613_v46 = vmul.f32 %v5775_v9, %v6349_v2  ;;  %5387 = vmatprep.subr.bf16.mxu1 %v5643_v62 }
 0x15d   : > { %v9185_v57 = vsel %vm6592_vm9, 4294967295, %v9184_v57  ;;  %5305 = vmatprep.mubr.bf16.mxu0 %v2297_v20  ;;  %v1947_v7 = vmax.f32 %v6327_v16, %v1915_v28  ;;  %v2235_v25 = vmax.f32 %v1979_v17, %v2203_v18  ;;  %v1373_v49 = vpack.c.bf16 %v6541_v1, %v6528_v34  ;;  %v2108_v18 = vld [vmem:[#allocation2 + $0x36] sm:$0xff]  ;;  %v6632_v1 = vld [vmem:[#allocation2 + $0x3f] sm:$0xff]  ;;  %v6663_v28 = vld [vmem:[#allocation2 + $0x68] sm:$0xff] }
 0x15e   : > { %9186 = vst [vmem:[#allocation44_spill] sm:$0xff] %v9185_v57  ;;  %9187 = vst [vmem:[#allocation45_spill] sm:$0xff] %v6613_v46  ;;  %v6622_v24 = vmul.f32 %v5777_v37, %v6356_v48  ;;  %v1487_v41 = vmax.f32 %v6524_v45, %v6605_v10  ;;  %v1489_v2 = vmax.f32 %v6605_v10, %v6600_v60  ;;  %v9190_v20 = vand.u32 15, %v6118_v63 }
 0x15f   : > { %v9188_v16 = vmax.f32 %v6528_v34, %v6524_v45  ;;  %1422 = vst [vmem:[#allocation2 + $0xf8] sm:$0xff] %v6613_v46  ;;  %v1551_v48 = vmax.f32 %v6564_v27, %v6605_v10  ;;  %v6638_v6 = vmax.f32 %v1549_v5, %v6605_v10  ;;  %v1948_v55 = vmax.f32 %v6399_v12, %v1916_v15  ;;  %v1438_v27 = vld [vmem:[#allocation2 + $0x58] sm:$0xff] }
 0x160   : > { %v2236_v39 = vmax.f32 %v2076_v32, %v2108_v18  ;;  %5373 = vmatprep.mubr.bf16.mxu1 %v1373_v49  ;;  %1420 = vst [vmem:[#allocation2 + $0xe8] sm:$0xff] %v6622_v24  ;;  %v1521_v34 = vmax.f32 %v1487_v41, %v6600_v60  ;;  %v6644_v22 = vmax.f32 %v1947_v7, %v2235_v25  ;;  %vm6648_vm10 = vcmp.ge.s32.totalorder %v9190_v20, 2  ;;  %v5779_v7 = vpop.eup %5778  ;;  %v6680_v18 = vld [vmem:[#allocation2 + $0xa9] sm:$0xff] }
 0x161   : > { %v1519_v9 = vmax.f32 %v9188_v16, %v6605_v10  ;;  %9189 = vst [vmem:[#allocation46_spill] sm:$0xff] %v6638_v6  ;;  %v9191_v59 = vmov 0  ;;  %v1466_v12 = vmax.f32 %v6243_v56, %v6236_v35  ;;  %5388 = vmatpush3.bf16.msra.mxu1 %v5643_v62  ;;  %v1490_v15 = vmax.f32 %v6622_v24, %v6613_v46  ;;  %1645 = vst [vmem:[#allocation2 + $0xc0] sm:$0xff] %v6638_v6  ;;  %v6676_v16 = vld [vmem:[#allocation2 + $0x78] sm:$0xff] }
 0x162   : > { %v9192_v59 = vsel %vm6648_vm10, 4294967295, %v9191_v59  ;;  %v1615_v32 = vmax.f32 %v1551_v48, %v6600_v60  ;;  %v6658_v5 = vmax.f32 %v1948_v55, %v2236_v39  ;;  %5389 = vmatprep.subr.bf16.mxu1 %v5644_v47  ;;  %v9194_v37 = vand.u32 15, %v6202_v26  ;;  %v5781_v26 = vpop.eup %5780  ;;  %v5645_v39 = vld [vmem:[%s8821_s3 + $0x98] sm:$0xff]  }
 0x163   : > { %v1553_v17 = vmax.f32 %v1519_v9, %v6600_v60  ;;  %9193 = vst [vmem:[#allocation47_spill] sm:$0xff] %v9192_v59  ;;  %v9195_v62 = vmov 0  ;;  %v1500_v25 = vmax.f32 %v1466_v12, %v6279_v19  ;;  %v1374_v49 = vpack.c.bf16 %v6536_v51, %v6524_v45 }
 0x164   : > { %vm6667_vm11 = vcmp.lt.s32.totalorder %v9194_v37, 14  ;;  %v1468_v41 = vmax.f32 %v6236_v35, %v6279_v19  ;;  %v1375_v9 = vpack.c.bf16 %v6622_v24, %v6605_v10  ;;  %v6683_v48 = vmul.f32 %v5779_v7, %v6405_v8  ;;  %1647 = vst [vmem:[#allocation2 + $0xd0] sm:$0xff] %v1615_v32  ;;  %v5783_v10 = vpop.eup %5782  ;;  %v5915_v35 = vld [vmem:[%s8821_s3 + $0x8] sm:$0xff]  }
 0x165   : > { %v9196_v62 = vsel %vm6667_vm11, 4294967295, %v9195_v62  ;;  %v2298_v55 = vpack.c.bf16 %v6658_v5, %v6644_v22  ;;  %v1470_v45 = vmax.f32 %v6279_v19, %v1438_v27  ;;  %v6694_v20 = vmul.f32 %v5781_v26, %v6412_v31  ;;  %5374 = vmatmul.mubr.bf16.gmra.mrb[4].mxu1 %v1374_v49  ;;  %v5785_v37 = vpop.eup %5784  ;;  %v1570_v26 = vld [vmem:[#allocation2 + $0x88] sm:$0xff] }
 0x166   : > { %9197 = vst [vmem:[#allocation48_spill] sm:$0xff] %v9196_v62  ;;  %v1534_v12 = vmax.f32 %v1500_v25, %v1438_v27  ;;  %v1502_v8 = vmax.f32 %v1468_v41, %v1438_v27  ;;  %v1472_v32 = vmax.f32 %v1438_v27, %v6663_v28  ;;  %v6698_v7 = vmul.f32 %v5783_v10, %v6421_v36 }
 0x167   : > { %5306 = vmatmul.mubr.bf16.vlgmr.msra.gmra.mrb[32].mxu0 %v2298_v55  ;;  %5377 = vmatprep.mubr.bf16.mxu1 %v1375_v9  ;;  %v1504_v63 = vmax.f32 %v1470_v45, %v6663_v28  ;;  %v1474_v51 = vmax.f32 %v6663_v28, %v6676_v16  ;;  %v1770_v31 = vsel %vm6592_vm9, %v6680_v18, -1e+30  ;;  %v1491_v25 = vmax.f32 %v6600_v60, %v6694_v20 }
 0x168   : > { %v1523_v27 = vmax.f32 %v1489_v2, %v6694_v20  ;;  %v1555_v49 = vmax.f32 %v1521_v34, %v6694_v20  ;;  %v1617_v36 = vmax.f32 %v1553_v17, %v6694_v20  ;;  %v9198_v41 = vand.u32 15, %v6121_v0  ;;  %5390 = vmatpush3.bf16.msra.mxu1 %v5644_v47  ;;  %1426 = vst [vmem:[#allocation2 + $0x118] sm:$0xff] %v6698_v7  ;;  %v5646_v47 = vld [vmem:[%s8821_s3 + $0xa0] sm:$0xff]  }
 0x169   : > { %v9199_v9 = vmov 0  ;;  %v6719_v18 = vmul.f32 %v5785_v37, %v6425_v30  ;;  %v9204_v2 = vmov 0  ;;  %v6728_v34 = vmax.f32 %v1534_v12, %v6330_v11  ;;  %5391 = vmatprep.subr.bf16.mxu1 %v5645_v39  ;;  %v6738_v37 = vld [vmem:[#allocation2 + $0x3e] sm:$0xff] }
 0x16a   : > { %vm6713_vm12 = vcmp.lt.s32.totalorder %v9198_v41, 15  ;;  %v9203_v55 = vmov %v9198_v41  ;;  %v1536_v17 = vmax.f32 %v1502_v8, %v6663_v28  ;;  %v1538_v45 = vmax.f32 %v1504_v63, %v6676_v16  ;;  %1649 = vst [vmem:[#allocation2 + $0xe0] sm:$0xff] %v1617_v36 }
 0x16b   : > { %v9200_v9 = vsel %vm6713_vm12, 4294967295, %v9199_v9  ;;  %9202 = vst [vmem:[#allocation50_spill] sm:$0xff] %v6719_v18  ;;  %vm6723_vm13 = vcmp.lt.s32.totalorder %v9203_v55, 14  ;;  %v1525_v30 = vmax.f32 %v1491_v25, %v6683_v48  ;;  %v1557_v0 = vmax.f32 %v1523_v27, %v6683_v48  ;;  %v1802_v27 = vld [vmem:[#allocation2 + $0xa7] sm:$0xff]  ;;  %1630 = vst [vmem:[#allocation2 + $0x48] sm:$0xff] %v6728_v34 }
 0x16c   : > { %9201 = vst [vmem:[#allocation49_spill] sm:$0xff] %v9200_v9  ;;  %v9205_v2 = vsel %vm6723_vm13, 4294967295, %v9204_v2  ;;  %v1619_v10 = vmax.f32 %v1555_v49, %v6683_v48  ;;  %v9207_v12 = vand.u32 15, %v6127_v3  ;;  %v9208_v28 = vmov 0  ;;  %v5914_v49 = vld [vmem:[%s8821_s3] sm:$0xff]   ;;  %5392 = vmatpush3.bf16.msra.mxu1 %v5645_v39 }
 0x16d   : > { %9206 = vst [vmem:[#allocation51_spill] sm:$0xff] %v9205_v2  ;;  %v9211_v63 = vand.u32 15, %v6130_v4  ;;  %v9212_v8 = vmov 0  ;;  %v1506_v25 = vmax.f32 %v1472_v32, %v6676_v16  ;;  %5338 = vmatpush3.bf16.msra.mxu0 %v5914_v49  ;;  %v1524_v36 = vmax.f32 %v1490_v15, %v6719_v18  ;;  %v1994_v32 = vld [vmem:[#allocation2 + $0xaa] sm:$0xff]  ;;  %v5916_v49 = vld [vmem:[#allocation2 + $0x120] sm:$0xff]  ;;  %5393 = vmatprep.subr.bf16.mxu1 %v5646_v47 }
 0x16e   : > { %vm6742_vm14 = vcmp.ge.s32.totalorder %v9207_v12, 1  ;;  %v6759_v41 = vmax.f32 %v1536_v17, %v6676_v16  ;;  %v6761_v55 = vmax.f32 %v1538_v45, %v1570_v26  ;;  %v1572_v12 = vld [vmem:[#allocation2 + $0x98] sm:$0xff]  ;;  %5339 = vmatprep.subr.bf16.mxu0 %v5915_v35  ;;  %v1559_v57 = vmax.f32 %v1525_v30, %v5916_v49  ;;  %1651 = vst [vmem:[#allocation2 + $0xf0] sm:$0xff] %v1619_v10  ;;  %v2122_v30 = vld [vmem:[#allocation2 + $0xa6] sm:$0xff] }
 0x16f   : > { %v9209_v28 = vsel %vm6742_vm14, 4294967295, %v9208_v28  ;;  %vm6748_vm15 = vcmp.lt.s32.totalorder %v9211_v63, 15  ;;  %v1377_v63 = vpack.c.bf16 %v6719_v18, %v6694_v20  ;;  %v1621_v15 = vmax.f32 %v1557_v0, %v5916_v49  ;;  %v9223_v10 = vld [vmem:[#allocation3_spill] sm:$0xff] }
 0x170   : > { %9210 = vst [vmem:[#allocation52_spill] sm:$0xff] %v9209_v28  ;;  %v9213_v8 = vsel %vm6748_vm15, 4294967295, %v9212_v8  ;;  %v9215_v11 = vand.u32 15, %v6127_v3  ;;  %v9216_v17 = vmov 0  ;;  %v9219_v26 = vand.u32 15, %v6130_v4  ;;  %1632 = vst [vmem:[#allocation2 + $0x58] sm:$0xff] %v6759_v41  ;;  %5394 = vmatpush3.bf16.msra.mxu1 %v5646_v47 }
 0x171   : > { %9214 = vst [vmem:[#allocation53_spill] sm:$0xff] %v9213_v8  ;;  %v9220_v20 = vmov 0  ;;  %v1540_v45 = vmax.f32 %v1506_v25, %v6402_v44  ;;  %v1508_v19 = vmax.f32 %v1474_v51, %v6402_v44  ;;  %v1558_v0 = vmax.f32 %v1524_v36, %v6698_v7  ;;  %1634 = vst [vmem:[#allocation2 + $0x68] sm:$0xff] %v6761_v55  ;;  %v6791_v4 = vld [vmem:[%s8821_s3 + $0xa8] sm:$0xff]   ;;  %5340 = vmatpush3.bf16.msra.mxu0 %v5915_v35  ;;  %v9243_v35 = vld [vmem:[#allocation6_spill] sm:$0xff] }
 0x172   : > { %vm6770_vm9 = vcmp.ge.s32.totalorder %v9215_v11, 2  ;;  %vm6776_vm6 = vcmp.lt.s32.totalorder %v9219_v26, 14  ;;  %v2205_v3 = vsel %vm6648_vm10, %v6738_v37, -1e+30  ;;  %v1476_v11 = vmax.f32 %v6676_v16, %v6402_v44  ;;  %1653 = vst [vmem:[#allocation2 + $0x100] sm:$0xff] %v1621_v15  ;;  %v9228_v36 = vld [vmem:[#allocation4_spill] sm:$0xff]  ;;  %5395 = vmatprep.subr.bf16.mxu1 %v6791_v4 }
 0x173   : > { %v9217_v17 = vsel %vm6770_vm9, 4294967295, %v9216_v17  ;;  %v9221_v20 = vsel %vm6776_vm6, 4294967295, %v9220_v20  ;;  %v1930_v51 = vmax.f32 %v1770_v31, %v1802_v27  ;;  %v1623_v39 = vmax.f32 %v1559_v57, %v5916_v49  ;;  %v9234_v57 = vld [vmem:[#allocation32_spill] sm:$0xff] }
 0x174   : > { %9218 = vst [vmem:[#allocation54_spill] sm:$0xff] %v9217_v17  ;;  %9222 = vst [vmem:[#allocation55_spill] sm:$0xff] %v9221_v20  ;;  %v9224_v25 = vand.u32 15, %v9223_v10  ;;  %v9225_v37 = vmov 0  ;;  %v9229_v26 = vand.u32 15, %v9228_v36  ;;  %v9230_v56 = vmov 0  ;;  %5396 = vmatpush3.bf16.msra.mxu1 %v6791_v4 }
 0x175   : > { %v9233_v18 = vpack.c.bf16 %v6613_v46, %v6600_v60  ;;  %v6810_v16 = vmax.f32 %v1540_v45, %v1572_v12  ;;  %v1542_v31 = vmax.f32 %v1508_v19, %v9234_v57  ;;  %v2090_v27 = vsel %vm6667_vm11, %v1994_v32, -1e+30  ;;  %1655 = vst [vmem:[#allocation2 + $0x110] sm:$0xff] %v1623_v39  ;;  %v1576_v32 = vld [vmem:[#allocation2 + $0xb8] sm:$0xff]  ;;  %v1661_v47 = vld [vmem:[#allocation2 + $0x41] sm:$0xff]  ;;  %v1662_v39 = vld [vmem:[#allocation2 + $0x49] sm:$0xff] }
 0x176   : > { %vm6797_vm7 = vcmp.ge.s32.totalorder %v9224_v25, 1  ;;  %vm6803_vm10 = vcmp.lt.s32.totalorder %v9229_v26, 15  ;;  %v1622_v15 = vmax.f32 %v1558_v0, %v5916_v49  ;;  %v1510_v25 = vmax.f32 %v1476_v11, %v9234_v57  ;;  %v6848_v11 = vld [vmem:[%s8821_s3 + $0xb0] sm:$0xff]   ;;  %v9269_v4 = vld [vmem:[#allocation7_spill] sm:$0xff] }
 0x177   : > { %v9226_v37 = vsel %vm6797_vm7, 4294967295, %v9225_v37  ;;  %v9231_v56 = vsel %vm6803_vm10, 4294967295, %v9230_v56  ;;  %5378 = vmatmul.mubr.bf16.gmra.mrb[8].mxu1 %v9233_v18  ;;  %v1962_v26 = vmax.f32 %v6569_v53, %v1930_v51  ;;  %v2250_v44 = vmax.f32 %v2090_v27, %v2122_v30  ;;  %1636 = vst [vmem:[#allocation2 + $0x78] sm:$0xff] %v6810_v16  ;;  %v1791_v21 = vld [vmem:[#allocation2 + $0x4f] sm:$0xff]  ;;  %5397 = vmatprep.subr.bf16.mxu1 %v6848_v11 }
 0x178   : > { %9227 = vst [vmem:[#allocation3_spill] sm:$0xff] %v9226_v37  ;;  %9232 = vst [vmem:[#allocation4_spill] sm:$0xff] %v9231_v56  ;;  %5381 = vmatprep.mubr.bf16.mxu1 %v1377_v63  ;;  %v9235_v59 = vand.u32 15, %v9223_v10  ;;  %v9236_v60 = vmov 0  ;;  %v9239_v19 = vand.u32 15, %v9228_v36  ;;  %v9240_v18 = vmov 0  ;;  %5398 = vmatpush3.bf16.msra.mxu1 %v6848_v11 }
 0x179   : > { %v9244_v12 = vand.u32 15, %v9243_v35  ;;  %v9245_v63 = vmov 0  ;;  %v6837_v53 = vmax.f32 %v1542_v31, %v6475_v61  ;;  %v2816_v45 = vmax.f32 %v5916_v49, %v6575_v43  ;;  %1654 = vst [vmem:[#allocation2 + $0x108] sm:$0xff] %v1622_v15  ;;  %v9249_v10 = vld [vmem:[#allocation5_spill] sm:$0xff]  ;;  %v1794_v20 = vld [vmem:[#allocation2 + $0x67] sm:$0xff] }
 0x17a   : > { %vm6819_vm4 = vcmp.ge.s32.totalorder %v9235_v59, 2  ;;  %vm6825_vm5 = vcmp.lt.s32.totalorder %v9239_v19, 14  ;;  %v1378_v59 = vpack.c.bf16 %v6698_v7, %v6683_v48  ;;  %v2817_v30 = vmax.f32 %v5916_v49, %v6578_v58  ;;  %v1790_v49 = vld [vmem:[#allocation2 + $0x47] sm:$0xff]  ;;  %v2112_v8 = vld [vmem:[#allocation2 + $0x56] sm:$0xff] }
 0x17b   : > { %v9237_v60 = vsel %vm6819_vm4, 4294967295, %v9236_v60  ;;  %v9241_v18 = vsel %vm6825_vm5, 4294967295, %v9240_v18  ;;  %vm6831_vm11 = vcmp.lt.s32.totalorder %v9244_v12, 15  ;;  %v1544_v0 = vmax.f32 %v1510_v25, %v6475_v61  ;;  %1638 = vst [vmem:[#allocation2 + $0x88] sm:$0xff] %v6837_v53  ;;  %v1982_v48 = vld [vmem:[#allocation2 + $0x4a] sm:$0xff]  ;;  %v1985_v17 = vld [vmem:[#allocation2 + $0x62] sm:$0xff] }
 0x17c   : > { %9238 = vst [vmem:[#allocation56_spill] sm:$0xff] %v9237_v60  ;;  %9242 = vst [vmem:[#allocation57_spill] sm:$0xff] %v9241_v18  ;;  %v9246_v63 = vsel %vm6831_vm11, 4294967295, %v9245_v63  ;;  %v6850_v51 = vmax.f32 %v1962_v26, %v2250_v44  ;;  %v2848_v7 = vmax.f32 %v6575_v43, -1e+30  ;;  %v9250_v36 = vand.u32 15, %v9249_v10 }
 0x17d   : > { %9247 = vst [vmem:[#allocation6_spill] sm:$0xff] %v9246_v63  ;;  %v9251_v31 = vmov 0  ;;  %v2849_v27 = vmax.f32 %v6578_v58, -1e+30  ;;  %v6864_v44 = vmax.f32 %v2816_v45, %v6644_v22  ;;  %v6867_v15 = vmax.f32 %v2817_v30, %v6658_v5  ;;  %v5917_v26 = vld [vmem:[%s8821_s3 + $0x10] sm:$0xff]   ;;  %v2110_v30 = vld [vmem:[#allocation2 + $0x46] sm:$0xff] }
 0x17e   : > { %9248 = vst [vmem:[#allocation58_spill] sm:$0xff] %v6850_v51  ;;  %vm6857_vm2 = vcmp.ge.s32.totalorder %v9250_v36, 1  ;;  %v1480_v25 = vmax.f32 %v9234_v57, %v6475_v61  ;;  %5341 = vmatprep.subr.bf16.mxu0 %v5917_v26  ;;  %v1758_v19 = vsel %vm6713_vm12, %v1662_v39, -1e+30  ;;  %v9254_v12 = vsel %vm6558_vm8, %v6632_v1, -1e+30 }
 0x17f   : > { %v9252_v31 = vsel %vm6857_vm2, 4294967295, %v9251_v31  ;;  %v1917_v45 = vmax.f32 %v1661_v47, %v9254_v12  ;;  %v1981_v36 = vld [vmem:[#allocation2 + $0x42] sm:$0xff]  ;;  %v9255_v62 = vand.u32 15, %v9243_v35  ;;  %v9256_v57 = vmov 0  ;;  %v6894_v39 = vld [vmem:[%s8821_s3 + $0xb8] sm:$0xff]   ;;  %5342 = vmatpush3.bf16.msra.mxu0 %v5917_v26  ;;  %5382 = vmatmul.mubr.bf16.gmra.mrb[12].mxu1 %v1378_v59  ;;  %v1795_v18 = vld [vmem:[#allocation2 + $0x6f] sm:$0xff] }
 0x180   : > { %9253 = vst [vmem:[#allocation5_spill] sm:$0xff] %v9252_v31  ;;  %v6886_v33 = vmax.f32 %v1544_v0, %v1576_v32  ;;  %v6889_v54 = vmax.f32 %v2848_v7, %v6644_v22  ;;  %v1918_v1 = vmax.f32 %v1758_v19, %v1790_v49  ;;  %v2078_v47 = vsel %vm6723_vm13, %v1982_v48, -1e+30  ;;  %v1664_v12 = vld [vmem:[#allocation2 + $0x59] sm:$0xff]  ;;  %v9263_v7 = vld [vmem:[#allocation8_spill] sm:$0xff]  ;;  %5399 = vmatprep.subr.bf16.mxu1 %v6894_v39 }
 0x181   : > { %vm6882_vm3 = vcmp.lt.s32.totalorder %v9255_v62, 14  ;;  %v2237_v35 = vmax.f32 %v1981_v36, %v2205_v3  ;;  %v1663_v62 = vld [vmem:[#allocation2 + $0x51] sm:$0xff]  ;;  %v9259_v32 = vand.u32 15, %v9249_v10  ;;  %v9260_v0 = vmov 0  ;;  %v9268_v49 = vld [vmem:[#allocation31_spill] sm:$0xff]  ;;  %5400 = vmatpush3.bf16.msra.mxu1 %v6894_v39 }
 0x182   : > { %v9257_v57 = vsel %vm6882_vm3, 4294967295, %v9256_v57  ;;  %v9264_v9 = vand.u32 15, %v9263_v7  ;;  %v9265_v6 = vmov 0  ;;  %v6912_v48 = vmax.f32 %v2849_v27, %v6658_v5  ;;  %v5918_v3 = vld [vmem:[%s8821_s3 + $0x18] sm:$0xff]   ;;  %1640 = vst [vmem:[#allocation2 + $0x98] sm:$0xff] %v6886_v33  ;;  %v1799_v56 = vld [vmem:[#allocation2 + $0x8f] sm:$0xff] }
 0x183   : > { %9258 = vst [vmem:[#allocation59_spill] sm:$0xff] %v9257_v57  ;;  %vm6900_vm8 = vcmp.ge.s32.totalorder %v9259_v32, 2  ;;  %5343 = vmatprep.subr.bf16.mxu0 %v5918_v3  ;;  %v1949_v10 = vmax.f32 %v9268_v49, %v1917_v45  ;;  %v2238_v26 = vmax.f32 %v2078_v47, %v2110_v30  ;;  %v1760_v19 = vsel %vm6748_vm15, %v1664_v12, -1e+30  ;;  %v1983_v32 = vld [vmem:[#allocation2 + $0x52] sm:$0xff]  ;;  %v1984_v12 = vld [vmem:[#allocation2 + $0x5a] sm:$0xff] }
 0x184   : > { %v9261_v0 = vsel %vm6900_vm8, 4294967295, %v9260_v0  ;;  %vm6906_vm12 = vcmp.lt.s32.totalorder %v9264_v9, 15  ;;  %v1792_v9 = vld [vmem:[#allocation2 + $0x57] sm:$0xff]  ;;  %v1887_v36 = vsel %vm6742_vm14, %v1791_v21, -1e+30  ;;  %v9270_v2 = vand.u32 15, %v9269_v4  ;;  %5344 = vmatpush3.bf16.msra.mxu0 %v5918_v3 }
 0x185   : > { %9262 = vst [vmem:[#allocation60_spill] sm:$0xff] %v9261_v0  ;;  %v9266_v6 = vsel %vm6906_vm12, 4294967295, %v9265_v6  ;;  %v9271_v27 = vmov 0  ;;  %v1950_v45 = vmax.f32 %v6728_v34, %v1918_v1  ;;  %v1919_v30 = vmax.f32 %v1663_v62, %v1887_v36  ;;  %v2111_v49 = vld [vmem:[#allocation2 + $0x4e] sm:$0xff]  ;;  %v1665_v62 = vld [vmem:[#allocation2 + $0x61] sm:$0xff]  ;;  %v9282_v59 = vld [vmem:[#allocation10_spill] sm:$0xff] }
 0x186   : > { %9267 = vst [vmem:[#allocation8_spill] sm:$0xff] %v9266_v6  ;;  %vm6924_vm13 = vcmp.ge.s32.totalorder %v9270_v2, 1  ;;  %v1920_v47 = vmax.f32 %v1760_v19, %v1792_v9  ;;  %v9274_v21 = vand.u32 15, %v9263_v7  ;;  %v9275_v28 = vmov 0  ;;  %v1666_v19 = vld [vmem:[#allocation2 + $0x69] sm:$0xff] }
 0x187   : > { %v9272_v27 = vsel %vm6924_vm13, 4294967295, %v9271_v27  ;;  %v6938_v2 = vmax.f32 %v1480_v25, %v6466_v14  ;;  %v6940_v46 = vmax.f32 %v1949_v10, %v2237_v35  ;;  %v2080_v34 = vsel %vm6776_vm6, %v1984_v12, -1e+30  ;;  %v9287_v12 = vld [vmem:[#allocation33_spill] sm:$0xff] }
 0x188   : > { %9273 = vst [vmem:[#allocation31_spill] sm:$0xff] %v9272_v27  ;;  %vm6933_vm15 = vcmp.lt.s32.totalorder %v9274_v21, 14  ;;  %v2207_v1 = vsel %vm6770_vm9, %v2111_v49, -1e+30  ;;  %v9278_v7 = vand.u32 15, %v9269_v4  ;;  %v9279_v9 = vmov 0 }
 0x189   : > { %v9276_v28 = vsel %vm6933_vm15, 4294967295, %v9275_v28  ;;  %v9283_v36 = vand.u32 15, %v9282_v59  ;;  %v9284_v25 = vmov 0  ;;  %v6960_v10 = vmax.f32 %v1950_v45, %v2238_v26  ;;  %v1990_v57 = vld [vmem:[#allocation2 + $0x8a] sm:$0xff]  ;;  %v1672_v0 = vld [vmem:[#allocation2 + $0x99] sm:$0xff] }
 0x18a   : > { %9277 = vst [vmem:[#allocation7_spill] sm:$0xff] %v9276_v28  ;;  %vm6948_vm14 = vcmp.ge.s32.totalorder %v9278_v7, 2  ;;  %v1951_v49 = vmax.f32 %v9287_v12, %v1919_v30  ;;  %v1952_v4 = vmax.f32 %v6759_v41, %v1920_v47  ;;  %v2239_v21 = vmax.f32 %v1983_v32, %v2207_v1  ;;  %v1793_v7 = vld [vmem:[#allocation2 + $0x5f] sm:$0xff]  ;;  %v1986_v41 = vld [vmem:[#allocation2 + $0x6a] sm:$0xff] }
 0x18b   : > { %v9280_v9 = vsel %vm6948_vm14, 4294967295, %v9279_v9  ;;  %vm6954_vm1 = vcmp.lt.s32.totalorder %v9283_v36, 15  ;;  %v9289_v38 = vand.u32 15, %v9288_v29  ;;  %v9290_v36 = vmov 0  ;;  %v2113_v32 = vld [vmem:[#allocation2 + $0x5e] sm:$0xff]  ;;  %v1671_v6 = vld [vmem:[#allocation2 + $0x91] sm:$0xff] }
 0x18c   : > { %9281 = vst [vmem:[#allocation61_spill] sm:$0xff] %v9280_v9  ;;  %v9285_v25 = vsel %vm6954_vm1, 4294967295, %v9284_v25  ;;  %v2240_v35 = vmax.f32 %v2080_v34, %v2112_v8  ;;  %v1762_v3 = vsel %vm6803_vm10, %v1666_v19, -1e+30  ;;  %v1889_v26 = vsel %vm6797_vm7, %v1793_v7, -1e+30 }
 0x18d   : > { %9286 = vst [vmem:[#allocation10_spill] sm:$0xff] %v9285_v25  ;;  %vm6966_vm6 = vcmp.ge.s32.totalorder %v9289_v38, 1  ;;  %v9293_v45 = vand.u32 15, %v9282_v59  ;;  %v9294_v30 = vmov 0  ;;  %v5919_v8 = vld [vmem:[%s8821_s3 + $0x20] sm:$0xff]   ;;  %v2299_v11 = vpack.c.bf16 %v6960_v10, %v6940_v46 }
 0x18e   : > { %v9291_v36 = vsel %vm6966_vm6, 4294967295, %v9290_v36  ;;  %5345 = vmatprep.subr.bf16.mxu0 %v5919_v8  ;;  %v6989_v47 = vmax.f32 %v1951_v49, %v2239_v21  ;;  %v1921_v34 = vmax.f32 %v1665_v62, %v1889_v26  ;;  %v1922_v1 = vmax.f32 %v1762_v3, %v1794_v20  ;;  %v2114_v19 = vld [vmem:[#allocation2 + $0x66] sm:$0xff]  ;;  %v1668_v59 = vld [vmem:[#allocation2 + $0x79] sm:$0xff] }
 0x18f   : > { %9292 = vst [vmem:[#allocation33_spill] sm:$0xff] %v9291_v36  ;;  %vm6977_vm9 = vcmp.lt.s32.totalorder %v9293_v45, 14  ;;  %v9297_v12 = vmov %v9289_v38  ;;  %v9298_v7 = vmov 0  ;;  %v7000_v45 = vld [vmem:[%s8821_s3 + $0xc0] sm:$0xff]   ;;  %v7002_v38 = vmax.f32 %v1952_v4, %v2240_v35  ;;  %5346 = vmatpush3.bf16.msra.mxu0 %v5919_v8  ;;  %5309 = vmatprep.mubr.bf16.mxu0 %v2299_v11  ;;  %v1987_v11 = vld [vmem:[#allocation2 + $0x72] sm:$0xff] }
 0x190   : > { %v9295_v30 = vsel %vm6977_vm9, 4294967295, %v9294_v30  ;;  %vm6993_vm10 = vcmp.ge.s32.totalorder %v9297_v12, 2  ;;  %v2082_v49 = vsel %vm6825_vm5, %v1986_v41, -1e+30  ;;  %v2209_v20 = vsel %vm6819_vm4, %v2113_v32, -1e+30  ;;  %5433 = vmatprep.subr.bf16.mxu1 %v7000_v45 }
 0x191   : > { %9296 = vst [vmem:[#allocation9_spill] sm:$0xff] %v9295_v30  ;;  %v9299_v7 = vsel %vm6993_vm10, 4294967295, %v9298_v7  ;;  %v1764_v29 = vsel %vm6831_vm11, %v1668_v59, -1e+30  ;;  %v9301_v62 = vld [vmem:[#allocation11_spill] sm:$0xff]  ;;  %v9303_v3 = vmov 0  ;;  %v1953_v35 = vmax.f32 %v6456_v40, %v1921_v34 }
 0x192   : > { %9300 = vst [vmem:[#allocation62_spill] sm:$0xff] %v9299_v7  ;;  %v9302_v21 = vand.u32 15, %v9301_v62  ;;  %v1954_v4 = vmax.f32 %v6761_v55, %v1922_v1  ;;  %v2241_v26 = vmax.f32 %v1985_v17, %v2209_v20  ;;  %v2242_v41 = vmax.f32 %v2082_v49, %v2114_v19  ;;  %v1667_v12 = vld [vmem:[#allocation2 + $0x71] sm:$0xff]  ;;  %v1988_v55 = vld [vmem:[#allocation2 + $0x7a] sm:$0xff]  ;;  %v1670_v62 = vld [vmem:[#allocation2 + $0x89] sm:$0xff] }
 0x193   : > { %v1796_v32 = vld [vmem:[#allocation2 + $0x77] sm:$0xff]  ;;  %v9307_v59 = vmov 0  ;;  %v1891_v8 = vsel %vm6857_vm2, %v1795_v18, -1e+30  ;;  %v2115_v17 = vld [vmem:[#allocation2 + $0x6e] sm:$0xff]  ;;  %v9352_v36 = vld [vmem:[#allocation35_spill] sm:$0xff] }
 0x194   : > { %vm7012_vm7 = vcmp.ge.s32.totalorder %v9302_v21, 1  ;;  %v9306_v63 = vmov %v9302_v21  ;;  %v2300_v21 = vpack.c.bf16 %v7002_v38, %v6989_v47  ;;  %v1924_v40 = vmax.f32 %v1764_v29, %v1796_v32  ;;  %v2116_v34 = vld [vmem:[#allocation2 + $0x76] sm:$0xff]  ;;  %v1669_v29 = vld [vmem:[#allocation2 + $0x81] sm:$0xff] }
 0x195   : > { %v9304_v3 = vsel %vm7012_vm7, 4294967295, %v9303_v3  ;;  %vm7020_vm11 = vcmp.ge.s32.totalorder %v9306_v63, 2  ;;  %v5920_v63 = vld [vmem:[%s8821_s3 + $0x28] sm:$0xff]   ;;  %v7034_v19 = vmax.f32 %v1953_v35, %v2241_v26  ;;  %v7036_v49 = vmax.f32 %v1954_v4, %v2242_v41  ;;  %v1797_v32 = vld [vmem:[#allocation2 + $0x7f] sm:$0xff] }
 0x196   : > { %9305 = vst [vmem:[#allocation11_spill] sm:$0xff] %v9304_v3  ;;  %v9308_v59 = vsel %vm7020_vm11, 4294967295, %v9307_v59  ;;  %5347 = vmatprep.subr.bf16.mxu0 %v5920_v63  ;;  %v1923_v18 = vmax.f32 %v1667_v12, %v1891_v8  ;;  %v2084_v20 = vsel %vm6882_vm3, %v1988_v55, -1e+30  ;;  %5310 = vmatmul.mubr.bf16.gmra.mrb[36].mxu0 %v2300_v21  ;;  %v1956_v39 = vmax.f32 %v6810_v16, %v1924_v40  ;;  %v1798_v4 = vld [vmem:[#allocation2 + $0x87] sm:$0xff]  ;;  %v9310_v12 = vld [vmem:[#allocation37_spill] sm:$0xff] }
 0x197   : > { %9309 = vst [vmem:[#allocation63_spill] sm:$0xff] %v9308_v59  ;;  %v2211_v1 = vsel %vm6900_vm8, %v2115_v17, -1e+30  ;;  %v2244_v31 = vmax.f32 %v2084_v20, %v2116_v34  ;;  %v1766_v35 = vsel %vm6906_vm12, %v1670_v62, -1e+30  ;;  %v1989_v26 = vld [vmem:[#allocation2 + $0x82] sm:$0xff]  ;;  %v2301_v41 = vpack.c.bf16 %v7036_v49, %v7034_v19  ;;  %5348 = vmatpush3.bf16.msra.mxu0 %v5920_v63 }
 0x198   : > { %v1955_v8 = vmax.f32 %v9310_v12, %v1923_v18  ;;  %v2243_v55 = vmax.f32 %v1987_v11, %v2211_v1  ;;  %v1893_v21 = vsel %vm6924_vm13, %v1797_v32, -1e+30  ;;  %v2117_v16 = vld [vmem:[#allocation2 + $0x7e] sm:$0xff]  ;;  %v2118_v40 = vld [vmem:[#allocation2 + $0x86] sm:$0xff]  ;;  %v1926_v20 = vmax.f32 %v1766_v35, %v1798_v4  ;;  %v5921_v11 = vld [vmem:[%s8821_s3 + $0x30] sm:$0xff]  }
 0x199   : > { %v7051_v17 = vmax.f32 %v1956_v39, %v2244_v31  ;;  %v1925_v34 = vmax.f32 %v1669_v29, %v1893_v21  ;;  %v2086_v62 = vsel %vm6933_vm15, %v1990_v57, -1e+30  ;;  %5349 = vmatprep.subr.bf16.mxu0 %v5921_v11  ;;  %5313 = vmatprep.mubr.bf16.mxu0 %v2301_v41  ;;  %v2213_v31 = vsel %vm6948_vm14, %v2117_v16, -1e+30  ;;  %v1800_v29 = vld [vmem:[#allocation2 + $0x97] sm:$0xff]  ;;  %v2119_v12 = vld [vmem:[#allocation2 + $0x8e] sm:$0xff] }
 0x19a   : > { %v7058_v1 = vmax.f32 %v1955_v8, %v2243_v55  ;;  %v2246_v63 = vmax.f32 %v2086_v62, %v2118_v40  ;;  %v1768_v18 = vsel %vm6954_vm1, %v1672_v0, -1e+30  ;;  %v1991_v57 = vld [vmem:[#allocation2 + $0x92] sm:$0xff]  ;;  %v1958_v39 = vmax.f32 %v6837_v53, %v1926_v20  ;;  %v1992_v41 = vld [vmem:[#allocation2 + $0x9a] sm:$0xff]  ;;  %v1993_v20 = vld [vmem:[#allocation2 + $0xa2] sm:$0xff] }
 0x19b   : > { %v1957_v32 = vmax.f32 %v6505_v13, %v1925_v34  ;;  %v2245_v35 = vmax.f32 %v1989_v26, %v2213_v31  ;;  %v1895_v4 = vsel %vm6966_vm6, %v1799_v56, -1e+30  ;;  %v2120_v8 = vld [vmem:[#allocation2 + $0x96] sm:$0xff]  ;;  %v1928_v16 = vmax.f32 %v1768_v18, %v1800_v29  ;;  %v1673_v40 = vld [vmem:[#allocation2 + $0xa1] sm:$0xff]  ;;  %5350 = vmatpush3.bf16.msra.mxu0 %v5921_v11 }
 0x19c   : > { %v2302_v55 = vpack.c.bf16 %v7051_v17, %v7058_v1  ;;  %v1927_v21 = vmax.f32 %v1671_v6, %v1895_v4  ;;  %v2088_v0 = vsel %vm6977_vm9, %v1992_v41, -1e+30  ;;  %v1801_v62 = vld [vmem:[#allocation2 + $0x9f] sm:$0xff]  ;;  %v7072_v26 = vmax.f32 %v1958_v39, %v2246_v63 }
 0x19d   : > { %v2121_v13 = vld [vmem:[#allocation2 + $0x9e] sm:$0xff]  ;;  %v2277_v53 = vmax.f32 %v1957_v32, %v2245_v35  ;;  %v2215_v56 = vsel %vm6993_vm10, %v2119_v12, -1e+30  ;;  %v2248_v34 = vmax.f32 %v2088_v0, %v2120_v8  ;;  %v1960_v18 = vmax.f32 %v6886_v33, %v1928_v16 }
 0x19e   : > { %v5922_v6 = vld [vmem:[%s8821_s3 + $0x38] sm:$0xff]   ;;  %v1959_v31 = vmax.f32 %v6509_v23, %v1927_v21  ;;  %v2247_v29 = vmax.f32 %v1991_v57, %v2215_v56  ;;  %v1897_v11 = vsel %vm7012_vm7, %v1801_v62, -1e+30  ;;  %5314 = vmatmul.mubr.bf16.gmra.mrb[40].mxu0 %v2302_v55  ;;  %2761 = vst [vmem:[#allocation2 + $0x88] sm:$0xff] %v7072_v26  ;;  %v2217_v39 = vsel %vm7020_vm11, %v2121_v13, -1e+30 }
 0x19f   : > { %5351 = vmatprep.subr.bf16.mxu0 %v5922_v6  ;;  %v2303_v63 = vpack.c.bf16 %v7072_v26, %v2277_v53  ;;  %v1929_v32 = vmax.f32 %v1673_v40, %v1897_v11  ;;  %v2824_v35 = vmax.f32 %v6989_v47, %v7034_v19  ;;  %v2280_v23 = vmax.f32 %v1960_v18, %v2248_v34 }
 0x1a0   : > { %v7089_v4 = vmax.f32 %v1959_v31, %v2247_v29  ;;  %v2249_v33 = vmax.f32 %v1993_v20, %v2217_v39  ;;  %v2826_v57 = vmax.f32 %v7034_v19, %v7058_v1  ;;  %5352 = vmatpush3.bf16.msra.mxu0 %v5922_v6  ;;  %v2828_v12 = vmax.f32 %v7058_v1, %v2277_v53  ;;  %v9314_v20 = vld [vmem:[#allocation12_spill] sm:$0xff] }
 0x1a1   : > { %5317 = vmatprep.mubr.bf16.mxu0 %v2303_v63  ;;  %v1961_v41 = vmax.f32 %v6554_v50, %v1929_v32  ;;  %v9311_v8 = vmax.f32 %v6575_v43, %v6644_v22  ;;  %v9312_v21 = vmax.f32 %v6644_v22, %v6940_v46  ;;  %2763 = vst [vmem:[#allocation2 + $0x98] sm:$0xff] %v2280_v23  ;;  %v9315_v6 = vand.u32 15, %v9314_v20  ;;  %v1582_v20 = vld [vmem:[#allocation2 + $0xe8] sm:$0xff] }
 0x1a2   : > { %v2304_v0 = vpack.c.bf16 %v2280_v23, %v7089_v4  ;;  %v2830_v40 = vmax.f32 %v2277_v53, %v7089_v4  ;;  %v9313_v50 = vmax.f32 %v6940_v46, %v6989_v47  ;;  %v2858_v13 = vmax.f32 %v2824_v35, %v7058_v1  ;;  %v7134_v23 = vld [vmem:[#allocation2 + $0xc8] sm:$0xff] }
 0x1a3   : > { %v2852_v55 = vmax.f32 %v9311_v8, %v6940_v46  ;;  %v2854_v16 = vmax.f32 %v9312_v21, %v6989_v47  ;;  %v7110_v56 = vmax.f32 %v1961_v41, %v2249_v33  ;;  %v2860_v43 = vmax.f32 %v2826_v57, %v2277_v53 }
 0x1a4   : > { %v2856_v62 = vmax.f32 %v9313_v50, %v7034_v19  ;;  %v7113_v34 = vmax.f32 %v2828_v12, %v7089_v4  ;;  %v2884_v22 = vmax.f32 %v6864_v44, %v6940_v46  ;;  %vm7119_vm11 = vcmp.ge.s32.totalorder %v9315_v6, 1 }
 0x1a5   : > { %v9316_v31 = vmov 0  ;;  %v2886_v18 = vmax.f32 %v2852_v55, %v6989_v47  ;;  %v2888_v29 = vmax.f32 %v2854_v16, %v7034_v19  ;;  %v2892_v63 = vmax.f32 %v2858_v13, %v2277_v53 }
 0x1a6   : > { %v9317_v31 = vsel %vm7119_vm11, 4294967295, %v9316_v31  ;;  %v2890_v11 = vmax.f32 %v2856_v62, %v7058_v1  ;;  %v2305_v32 = vpack.c.bf16 %v6850_v51, %v7110_v56  ;;  %v7131_v44 = vmax.f32 %v2830_v40, %v7110_v56  ;;  %5318 = vmatmul.mubr.bf16.gmra.mrb[44].mxu0 %v2304_v0  ;;  %v7180_v0 = vld [vmem:[#allocation2 + $0xd8] sm:$0xff]  ;;  %v9326_v62 = vld [vmem:[#allocation13_spill] sm:$0xff] }
 0x1a7   : > { %9318 = vst [vmem:[#allocation37_spill] sm:$0xff] %v9317_v31  ;;  %v2894_v35 = vmax.f32 %v2860_v43, %v7089_v4  ;;  %v7140_v57 = vmax.f32 %v6889_v54, %v6940_v46  ;;  %v7144_v41 = vmax.f32 %v6912_v48, %v6960_v10  ;;  %v7147_v12 = vmax.f32 %v2884_v22, %v6989_v47  ;;  %v9320_v48 = vld [vmem:[#allocation17_spill] sm:$0xff] }
 0x1a8   : > { %v7150_v8 = vmax.f32 %v2886_v18, %v7034_v19  ;;  %v7153_v55 = vmax.f32 %v2888_v29, %v7058_v1  ;;  %v7155_v21 = vmax.f32 %v2890_v11, %v2277_v53  ;;  %v7158_v16 = vmax.f32 %v2892_v63, %v7089_v4  ;;  %5321 = vmatprep.mubr.bf16.mxu0 %v2305_v32 }
 0x1a9   : > { %v7161_v54 = vmax.f32 %v2894_v35, %v7110_v56  ;;  %2978 = vst [vmem:[#allocation2 + $0x20] sm:$0xff] %v7140_v57  ;;  %2979 = vst [vmem:[#allocation2 + $0x28] sm:$0xff] %v7144_v41  ;;  %v1548_v46 = vmax.f32 %v6938_v2, %v7134_v23  ;;  %v995_v47 = vand.u32 15, %v9320_v48  ;;  %v1002_v19 = vand.u32 15, %v6597_v42 }
 0x1aa   : > { %2980 = vst [vmem:[#allocation2 + $0x30] sm:$0xff] %v7147_v12  ;;  %2982 = vst [vmem:[#allocation2 + $0x40] sm:$0xff] %v7150_v8  ;;  %v9321_v1 = vmov %v9315_v6  ;;  %v9322_v53 = vmov 0  ;;  %v9325_v42 = vmax.f32 %v6475_v61, %v6466_v14  ;;  %v2885_v40 = vmax.f32 %v6867_v15, %v6960_v10  ;;  %v1803_v6 = vld [vmem:[#allocation2 + $0xaf] sm:$0xff] }
 0x1ab   : > { %9319 = vst [vmem:[#allocation12_spill] sm:$0xff] %v7161_v54  ;;  %2984 = vst [vmem:[#allocation2 + $0x50] sm:$0xff] %v7153_v55  ;;  %vm7176_vm7 = vcmp.ge.s32.totalorder %v9321_v1, 2  ;;  %v2819_v50 = vmax.f32 %v6578_v58, %v6658_v5  ;;  %v9327_v13 = vand.u32 15, %v9326_v62  ;;  %v9328_v43 = vmov 0  ;;  %v7205_v58 = vld [vmem:[#allocation2 + $0xae] sm:$0xff] }
 0x1ac   : > { %2986 = vst [vmem:[#allocation2 + $0x60] sm:$0xff] %v7155_v21  ;;  %2988 = vst [vmem:[#allocation2 + $0x70] sm:$0xff] %v7158_v16  ;;  %v9323_v53 = vsel %vm7176_vm7, 4294967295, %v9322_v53  ;;  %v1516_v2 = vmax.f32 %v9325_v42, %v7134_v23  ;;  %v7198_v22 = vmax.f32 %v1548_v46, %v7180_v0  ;;  %v7201_v61 = vadd.s32 176, %v6097_v52 }
 0x1ad   : > { %9324 = vst [vmem:[#allocation17_spill] sm:$0xff] %v9323_v53  ;;  %2990 = vst [vmem:[#allocation2 + $0x80] sm:$0xff] %v7161_v54  ;;  %vm7193_vm9 = vcmp.lt.s32.totalorder %v9327_v13, 15  ;;  %v1484_v15 = vmax.f32 %v6466_v14, %v7134_v23  ;;  %v7209_v29 = vmax.f32 %v2885_v40, %v7002_v38  ;;  %v2853_v11 = vmax.f32 %v2819_v50, %v6960_v10  ;;  %v1584_v40 = vld [vmem:[#allocation2 + $0xf8] sm:$0xff] }
 0x1ae   : > { %v9329_v43 = vsel %vm7193_vm9, 4294967295, %v9328_v43  ;;  %v1550_v18 = vmax.f32 %v1516_v2, %v7180_v0  ;;  %v7213_v63 = vadd.s32 184, %v6097_v52  ;;  %v9331_v32 = vmov %v9327_v13  ;;  %1644 = vst [vmem:[#allocation2 + $0xb8] sm:$0xff] %v7198_v22 }
 0x1af   : > { %9330 = vst [vmem:[#allocation13_spill] sm:$0xff] %v9329_v43  ;;  %vm7217_vm1 = vcmp.lt.s32.totalorder %v9331_v32, 14  ;;  %v9332_v35 = vmov 0  ;;  %vm7222_vm10 = vcmp.ge.s32.totalorder %v995_v47, 1  ;;  %v9335_v14 = vmov 0  ;;  %2981 = vst [vmem:[#allocation2 + $0x38] sm:$0xff] %v7209_v29 }
 0x1b0   : > { %v9333_v35 = vsel %vm7217_vm1, 4294967295, %v9332_v35  ;;  %v9336_v14 = vsel %vm7222_vm10, 4294967295, %v9335_v14  ;;  %vm7226_vm6 = vcmp.lt.s32.totalorder %v1002_v19, 15  ;;  %v9338_v46 = vmov 0  ;;  %v3074_v32 = vld [vmem:[#allocation2 + $0x1f] sm:$0xff]  ;;  %v3075_v31 = vld [vmem:[#allocation2 + $0x27] sm:$0xff] }
 0x1b1   : > { %9334 = vst [vmem:[#allocation64_spill] sm:$0xff] %v9333_v35  ;;  %9337 = vst [vmem:[#allocation65_spill] sm:$0xff] %v9336_v14  ;;  %v9339_v46 = vsel %vm7226_vm6, 4294967295, %v9338_v46  ;;  %v1518_v48 = vmax.f32 %v1484_v15, %v7180_v0  ;;  %vm7231_vm15 = vcmp.ge.s32.totalorder %v995_v47, 2  ;;  %v9341_v1 = vmov 0  ;;  %v3202_v3 = vld [vmem:[#allocation2 + $0x22] sm:$0xff] }
 0x1b2   : > { %9340 = vst [vmem:[#allocation66_spill] sm:$0xff] %v9339_v46  ;;  %v9342_v1 = vsel %vm7231_vm15, 4294967295, %v9341_v1  ;;  %v7235_v42 = vmax.f32 %v1550_v18, %v1582_v20  ;;  %v2887_v2 = vmax.f32 %v2853_v11, %v7002_v38  ;;  %v7240_v50 = vadd.s32 192, %v6097_v52  ;;  %v3010_v18 = vld [vmem:[#allocation2 + $0x21] sm:$0xff]  ;;  %v3011_v11 = vld [vmem:[#allocation2 + $0x29] sm:$0xff] }
 0x1b3   : > { %9343 = vst [vmem:[#allocation67_spill] sm:$0xff] %v9342_v1  ;;  %v7243_v62 = vadd.s32 200, %v6097_v52  ;;  %v1899_v13 = vsel %vm7119_vm11, %v1803_v6, -1e+30  ;;  %v2219_v47 = vsel %vm7176_vm7, %v7205_v58, -1e+30  ;;  %v1552_v15 = vmax.f32 %v1518_v48, %v6622_v24 }
 0x1b4   : > { %vm7250_vm12 = vcmp.lt.s32.totalorder %v1002_v19, 14  ;;  %v9344_v20 = vmov 0  ;;  %1646 = vst [vmem:[#allocation2 + $0xc8] sm:$0xff] %v7235_v42  ;;  %v7257_v33 = vmax.f32 %v2887_v2, %v7036_v49  ;;  %v1486_v19 = vmax.f32 %v7134_v23, %v7180_v0  ;;  %v9348_v48 = vld [vmem:[#allocation29_spill] sm:$0xff]  ;;  %v3266_v39 = vld [vmem:[#allocation2 + $0x1e] sm:$0xff]  ;;  %v9350_v58 = vld [vmem:[#allocation36_spill] sm:$0xff] }
 0x1b5   : > { %v9345_v20 = vsel %vm7250_vm12, 4294967295, %v9344_v20  ;;  %v3043_v53 = vsel %vm6361_vm0, %v3011_v11, -1e+30  ;;  %vm9349_vm7 = vnez %v9348_v48  ;;  %v7267_v30 = vmax.f32 %v1552_v15, %v1584_v40  ;;  %v3203_v7 = vld [vmem:[#allocation2 + $0x2a] sm:$0xff]  ;;  %v1804_v23 = vld [vmem:[#allocation2 + $0xb7] sm:$0xff]  ;;  %v9388_v46 = vld [vmem:[#allocation51_spill] sm:$0xff] }
 0x1b6   : > { %9346 = vst [vmem:[#allocation68_spill] sm:$0xff] %v9345_v20  ;;  %v3106_v59 = vsel %vm9349_vm7, %v3074_v32, -1e+30  ;;  %v2821_v2 = vmax.f32 %v6658_v5, %v6960_v10  ;;  %v3139_v6 = vmax.f32 %v3043_v53, %v3075_v31  ;;  %2983 = vst [vmem:[#allocation2 + $0x48] sm:$0xff] %v7257_v33  ;;  %vm9351_vm0 = vnez %v9350_v58  ;;  %v3267_v32 = vld [vmem:[#allocation2 + $0x26] sm:$0xff]  ;;  %v1675_v11 = vld [vmem:[#allocation2 + $0xb1] sm:$0xff] }
 0x1b7   : > { %v3138_v25 = vmax.f32 %v3010_v18, %v3106_v59  ;;  %v3235_v48 = vsel %vm9351_vm0, %v3203_v7, -1e+30  ;;  %vm9353_vm7 = vnez %v9352_v36  ;;  %1648 = vst [vmem:[#allocation2 + $0xd8] sm:$0xff] %v7267_v30  ;;  %v7280_v5 = vmax.f32 %v1486_v19, %v6622_v24  ;;  %v1676_v7 = vld [vmem:[#allocation2 + $0xb9] sm:$0xff]  ;;  %v7289_v28 = vld [vmem:[#allocation2 + $0x2f] sm:$0xff] }
 0x1b8   : > { %v3298_v40 = vsel %vm9353_vm7, %v3266_v39, -1e+30  ;;  %v7283_v59 = vmax.f32 %v2821_v2, %v7002_v38  ;;  %v3171_v53 = vmax.f32 %v7144_v41, %v3139_v6  ;;  %v3331_v18 = vmax.f32 %v3235_v48, %v3267_v32  ;;  %v1995_v58 = vld [vmem:[#allocation2 + $0xb2] sm:$0xff]  ;;  %v1996_v54 = vld [vmem:[#allocation2 + $0xba] sm:$0xff] }
 0x1b9   : > { %v3170_v31 = vmax.f32 %v7140_v57, %v3138_v25  ;;  %v3330_v15 = vmax.f32 %v3202_v3, %v3298_v40  ;;  %v1772_v39 = vsel %vm7193_vm9, %v1676_v7, -1e+30  ;;  %v1931_v36 = vmax.f32 %v1675_v11, %v1899_v13  ;;  %v2124_v19 = vld [vmem:[#allocation2 + $0xb6] sm:$0xff]  ;;  %v1805_v48 = vld [vmem:[#allocation2 + $0xbf] sm:$0xff]  ;;  %v7297_v13 = vld [vmem:[#allocation2 + $0x2e] sm:$0xff] }
 0x1ba   : > { %v9354_v2 = vld [vmem:[#allocation45_spill] sm:$0xff]  ;;  %v3363_v57 = vmax.f32 %v3171_v53, %v3331_v18  ;;  %v1932_v41 = vmax.f32 %v1772_v39, %v1804_v23  ;;  %v2092_v6 = vsel %vm7217_vm1, %v1996_v54, -1e+30  ;;  %v2125_v32 = vld [vmem:[#allocation2 + $0xbe] sm:$0xff]  ;;  %v2251_v7 = vmax.f32 %v1995_v58, %v2219_v47 }
 0x1bb   : > { %v3362_v3 = vmax.f32 %v3170_v31, %v3330_v15  ;;  %v9355_v11 = vld [vmem:[#allocation43_spill] sm:$0xff]  ;;  %v2252_v43 = vmax.f32 %v2092_v6, %v2124_v19  ;;  %v1678_v51 = vld [vmem:[#allocation2 + $0xc9] sm:$0xff]  ;;  %v1901_v25 = vsel %vm7222_vm10, %v1805_v48, -1e+30  ;;  %v9356_v31 = vand.u32 15, %v7201_v61  ;;  %v9386_v20 = vld [vmem:[#allocation42_spill] sm:$0xff] }
 0x1bc   : > { %v1963_v40 = vmax.f32 %v9355_v11, %v1931_v36  ;;  %v1677_v27 = vld [vmem:[#allocation2 + $0xc1] sm:$0xff]  ;;  %v9357_v23 = vmov 0  ;;  %v9360_v54 = vand.u32 15, %v7213_v63  ;;  %v9361_v53 = vmov 0  ;;  %v1998_v39 = vld [vmem:[#allocation2 + $0xca] sm:$0xff]  ;;  %3669 = vst [vmem:[#allocation2 + $0x28] sm:$0xff] %v3363_v57 }
 0x1bd   : > { %v1806_v9 = vld [vmem:[#allocation2 + $0xc7] sm:$0xff]  ;;  %vm7304_vm7 = vcmp.ge.s32.totalorder %v9356_v31, 1  ;;  %v3394_v36 = vpack.c.bf16 %v3363_v57, %v3362_v3  ;;  %3668 = vst [vmem:[#allocation2 + $0x20] sm:$0xff] %v3362_v3  ;;  %v1964_v47 = vmax.f32 %v7198_v22, %v1932_v41  ;;  %v1774_v58 = vsel %vm7226_vm6, %v1678_v51, -1e+30  ;;  %v3013_v3 = vld [vmem:[#allocation2 + $0x39] sm:$0xff] }
 0x1be   : > { %v9358_v23 = vsel %vm7304_vm7, 4294967295, %v9357_v23  ;;  %vm7310_vm0 = vcmp.lt.s32.totalorder %v9360_v54, 15  ;;  %v1933_v15 = vmax.f32 %v1677_v27, %v1901_v25  ;;  %v1997_v18 = vld [vmem:[#allocation2 + $0xc2] sm:$0xff]  ;;  %v7317_v6 = vmax.f32 %v1963_v40, %v2251_v7  ;;  %v9372_v25 = vld [vmem:[#allocation46_spill] sm:$0xff]  ;;  %v9379_v1 = vld [vmem:[#allocation41_spill] sm:$0xff] }
 0x1bf   : > { %9359 = vst [vmem:[#allocation45_spill] sm:$0xff] %v9358_v23  ;;  %v9362_v53 = vsel %vm7310_vm0, 4294967295, %v9361_v53  ;;  %v2126_v19 = vld [vmem:[#allocation2 + $0xc6] sm:$0xff]  ;;  %v1934_v48 = vmax.f32 %v1774_v58, %v1806_v9  ;;  %v2094_v11 = vsel %vm7250_vm12, %v1998_v39, -1e+30  ;;  %v9364_v22 = vand.u32 15, %v7201_v61  ;;  %5401 = vmatprep.mubr.bf16.mxu1 %v3394_v36 }
 0x1c0   : > { %9363 = vst [vmem:[#allocation43_spill] sm:$0xff] %v9362_v53  ;;  %v2221_v31 = vsel %vm7231_vm15, %v2125_v32, -1e+30  ;;  %v9365_v41 = vmov 0  ;;  %v9368_v51 = vmov %v9360_v54  ;;  %v9369_v27 = vmov 0  ;;  %v3205_v7 = vld [vmem:[#allocation2 + $0x3a] sm:$0xff] }
 0x1c1   : > { %vm7325_vm10 = vcmp.ge.s32.totalorder %v9364_v22, 2  ;;  %vm7331_vm6 = vcmp.lt.s32.totalorder %v9368_v51, 14  ;;  %v7335_v9 = vmax.f32 %v1964_v47, %v2252_v43  ;;  %v1965_v57 = vmax.f32 %v9372_v25, %v1933_v15  ;;  %v3012_v47 = vld [vmem:[#allocation2 + $0x31] sm:$0xff]  ;;  %v3014_v22 = vld [vmem:[#allocation2 + $0x41] sm:$0xff]  ;;  %v3015_v51 = vld [vmem:[#allocation2 + $0x49] sm:$0xff] }
 0x1c2   : > { %v9366_v41 = vsel %vm7325_vm10, 4294967295, %v9365_v41  ;;  %v9370_v27 = vsel %vm7331_vm6, 4294967295, %v9369_v27  ;;  %v2253_v40 = vmax.f32 %v1997_v18, %v2221_v31  ;;  %v2254_v32 = vmax.f32 %v2094_v11, %v2126_v19  ;;  %v3077_v15 = vld [vmem:[#allocation2 + $0x37] sm:$0xff]  ;;  %v9375_v11 = vld [vmem:[#allocation39_spill] sm:$0xff] }
 0x1c3   : > { %9367 = vst [vmem:[#allocation69_spill] sm:$0xff] %v9366_v41  ;;  %9371 = vst [vmem:[#allocation70_spill] sm:$0xff] %v9370_v27  ;;  %v2834_v61 = vmax.f32 %v7110_v56, %v7317_v6  ;;  %v9373_v54 = vmax.f32 %v7089_v4, %v7110_v56  ;;  %v2898_v58 = vmax.f32 %v7131_v44, %v7317_v6  ;;  %v3204_v18 = vld [vmem:[#allocation2 + $0x32] sm:$0xff]  ;;  %vm9376_vm15 = vnez %v9375_v11  ;;  %v3078_v25 = vld [vmem:[#allocation2 + $0x3f] sm:$0xff] }
 0x1c4   : > { %v9374_v43 = vmax.f32 %v7113_v34, %v7110_v56  ;;  %v2306_v39 = vpack.c.bf16 %v7335_v9, %v7317_v6  ;;  %v1966_v19 = vmax.f32 %v7235_v42, %v1934_v48  ;;  %v7357_v4 = vmax.f32 %v1965_v57, %v2253_v40  ;;  %v3269_v44 = vld [vmem:[#allocation2 + $0x36] sm:$0xff]  ;;  %v3207_v56 = vld [vmem:[#allocation2 + $0x4a] sm:$0xff]  ;;  %v9390_v35 = vld [vmem:[#allocation47_spill] sm:$0xff] }
 0x1c5   : > { %v7344_v63 = vmax.f32 %v9373_v54, %v7317_v6  ;;  %v3045_v31 = vsel %vm9376_vm15, %v3013_v3, -1e+30  ;;  %v9377_v34 = vld [vmem:[#allocation38_spill] sm:$0xff]  ;;  %vm9380_vm1 = vnez %v9379_v1  ;;  %v9381_v48 = vld [vmem:[#allocation40_spill] sm:$0xff]  ;;  %v9384_v11 = vld [vmem:[#allocation49_spill] sm:$0xff]  ;;  %vm9387_vm15 = vnez %v9386_v20 }
 0x1c6   : > { %v7352_v36 = vmax.f32 %v9374_v43, %v7317_v6  ;;  %vm9378_vm12 = vnez %v9377_v34  ;;  %v3141_v43 = vmax.f32 %v3045_v31, %v3077_v15  ;;  %v3237_v42 = vsel %vm9380_vm1, %v3205_v7, -1e+30  ;;  %5322 = vmatmul.mubr.bf16.gmra.mrb[48].mxu0 %v2306_v39  ;;  %v3206_v15 = vld [vmem:[#allocation2 + $0x42] sm:$0xff] }
 0x1c7   : > { %v3108_v54 = vsel %vm9378_vm12, %v7289_v28, -1e+30  ;;  %vm9382_vm11 = vnez %v9381_v48  ;;  %v7370_v3 = vmax.f32 %v1966_v19, %v2254_v32  ;;  %v7373_v40 = vmax.f32 %v2834_v61, %v7357_v4  ;;  %v3079_v28 = vld [vmem:[#allocation2 + $0x47] sm:$0xff]  ;;  %v3270_v31 = vld [vmem:[#allocation2 + $0x3e] sm:$0xff]  ;;  %v1807_v19 = vld [vmem:[#allocation2 + $0xcf] sm:$0xff] }
 0x1c8   : > { %2992 = vst [vmem:[#allocation2 + $0x90] sm:$0xff] %v7352_v36  ;;  %v3300_v57 = vsel %vm9382_vm11, %v7297_v13, -1e+30  ;;  %v7378_v34 = vmax.f32 %v2898_v58, %v7357_v4  ;;  %v3140_v7 = vmax.f32 %v3012_v47, %v3108_v54  ;;  %v3173_v1 = vmax.f32 %v7209_v29, %v3141_v43  ;;  %v3271_v39 = vld [vmem:[#allocation2 + $0x46] sm:$0xff]  ;;  %v1680_v32 = vld [vmem:[#allocation2 + $0xd9] sm:$0xff] }
 0x1c9   : > { %v3332_v48 = vmax.f32 %v3204_v18, %v3300_v57  ;;  %v3333_v13 = vmax.f32 %v3237_v42, %v3269_v44  ;;  %v2307_v61 = vpack.c.bf16 %v7370_v3, %v7357_v4  ;;  %vm9385_vm1 = vnez %v9384_v11  ;;  %v1808_v43 = vld [vmem:[#allocation2 + $0xd7] sm:$0xff]  ;;  %v2127_v57 = vld [vmem:[#allocation2 + $0xce] sm:$0xff] }
 0x1ca   : > { %9383 = vst [vmem:[#allocation46_spill] sm:$0xff] %v7378_v34  ;;  %2994 = vst [vmem:[#allocation2 + $0xa0] sm:$0xff] %v7378_v34  ;;  %v3047_v58 = vsel %vm9385_vm1, %v3015_v51, -1e+30  ;;  %v3110_v14 = vsel %vm9387_vm15, %v3078_v25, -1e+30  ;;  %vm9389_vm11 = vnez %v9388_v46  ;;  %v3172_v29 = vmax.f32 %v7147_v12, %v3140_v7 }
 0x1cb   : > { %v3239_v47 = vsel %vm9389_vm11, %v3207_v56, -1e+30  ;;  %v3365_v18 = vmax.f32 %v3173_v1, %v3333_v13  ;;  %v3142_v44 = vmax.f32 %v3014_v22, %v3110_v14  ;;  %v3143_v54 = vmax.f32 %v3047_v58, %v3079_v28  ;;  %v2000_v42 = vld [vmem:[#allocation2 + $0xda] sm:$0xff]  ;;  %5325 = vmatprep.mubr.bf16.mxu0 %v2307_v61  ;;  %v1679_v22 = vld [vmem:[#allocation2 + $0xd1] sm:$0xff] }
 0x1cc   : > { %vm9391_vm12 = vnez %v9390_v35  ;;  %v3335_v11 = vmax.f32 %v3239_v47, %v3271_v39  ;;  %v1776_v51 = vsel %vm7310_vm0, %v1680_v32, -1e+30  ;;  %v1903_v25 = vsel %vm7304_vm7, %v1807_v19, -1e+30  ;;  %v2128_v28 = vld [vmem:[#allocation2 + $0xd6] sm:$0xff] }
 0x1cd   : > { %v3302_v34 = vsel %vm9391_vm12, %v3270_v31, -1e+30  ;;  %v3364_v56 = vmax.f32 %v3172_v29, %v3332_v48  ;;  %v3174_v12 = vmax.f32 %v7150_v8, %v3142_v44  ;;  %v3175_v14 = vmax.f32 %v7257_v33, %v3143_v54  ;;  %3671 = vst [vmem:[#allocation2 + $0x38] sm:$0xff] %v3365_v18  ;;  %v1999_v61 = vld [vmem:[#allocation2 + $0xd2] sm:$0xff]  ;;  %v5651_v33 = vld [vmem:[%s8821_s3 + $0xc8] sm:$0xff]  }
 0x1ce   : > { %v3334_v1 = vmax.f32 %v3206_v15, %v3302_v34  ;;  %v1935_v7 = vmax.f32 %v1679_v22, %v1903_v25  ;;  %v1936_v13 = vmax.f32 %v1776_v51, %v1808_v43  ;;  %v2096_v31 = vsel %vm7331_vm6, %v2000_v42, -1e+30  ;;  %v5923_v34 = vld [vmem:[#allocation2 + $0xd0] sm:$0xff]  ;;  %v9392_v29 = vld [vmem:[#allocation50_spill] sm:$0xff] }
 0x1cf   : > { %v2223_v39 = vsel %vm7325_vm10, %v2127_v57, -1e+30  ;;  %v3395_v32 = vpack.c.bf16 %v3365_v18, %v3364_v56  ;;  %3670 = vst [vmem:[#allocation2 + $0x30] sm:$0xff] %v3364_v56  ;;  %v3367_v19 = vmax.f32 %v3175_v14, %v3335_v11  ;;  %v2256_v47 = vmax.f32 %v2096_v31, %v2128_v28  ;;  %v7413_v18 = vld [vmem:[#allocation2 + $0x4f] sm:$0xff] }
 0x1d0   : > { %v3366_v48 = vmax.f32 %v3174_v12, %v3334_v1  ;;  %v2255_v8 = vmax.f32 %v1999_v61, %v2223_v39  ;;  %v1967_v15 = vmax.f32 %v5923_v34, %v1935_v7  ;;  %v1968_v58 = vmax.f32 %v7267_v30, %v1936_v13  ;;  %v7415_v43 = vld [vmem:[#allocation2 + $0x4e] sm:$0xff]  ;;  %v1809_v30 = vld [vmem:[#allocation2 + $0xdf] sm:$0xff] }
 0x1d1   : > { %v9393_v44 = vmax.f32 %v7280_v5, %v9354_v2  ;;  %5402 = vmatmul.mubr.bf16.vlgmr.msra.gmra.mrb[16].mxu1 %v3395_v32  ;;  %v9394_v42 = vand.u32 15, %v7240_v50  ;;  %v9395_v57 = vmov 0  ;;  %v9398_v5 = vmax.f32 %v7283_v59, %v7036_v49  ;;  %3673 = vst [vmem:[#allocation2 + $0x48] sm:$0xff] %v3367_v19  ;;  %v7447_v59 = vld [vmem:[#allocation2 + $0xde] sm:$0xff]  ;;  %v5652_v7 = vld [vmem:[%s8821_s3 + $0xd0] sm:$0xff]  }
 0x1d2   : > { %v3396_v11 = vpack.c.bf16 %v3367_v19, %v3366_v48  ;;  %3672 = vst [vmem:[#allocation2 + $0x40] sm:$0xff] %v3366_v48  ;;  %5434 = vmatpush3.bf16.msra.mxu1 %v7000_v45  ;;  %v7430_v51 = vmax.f32 %v1967_v15, %v2255_v8  ;;  %v7432_v25 = vmax.f32 %v1968_v58, %v2256_v47  ;;  %v9399_v56 = vand.u32 15, %v7243_v62  ;;  %v7480_v62 = vld [vmem:[#allocation2 + $0xf8] sm:$0xff]  ;;  %v9412_v58 = vld [vmem:[#allocation52_spill] sm:$0xff] }
 0x1d3   : > { %v7411_v54 = vmax.f32 %v9393_v44, %v9392_v29  ;;  %vm7419_vm11 = vcmp.ge.s32.totalorder %v9394_v42, 1  ;;  %v7427_v2 = vmax.f32 %v9398_v5, %v7051_v17  ;;  %v9400_v12 = vmov 0  ;;  %5435 = vmatprep.subr.bf16.mxu1 %v5651_v33  ;;  %v9414_v44 = vld [vmem:[#allocation54_spill] sm:$0xff] }
 0x1d4   : > { %v9396_v57 = vsel %vm7419_vm11, 4294967295, %v9395_v57  ;;  %vm7436_vm1 = vcmp.lt.s32.totalorder %v9399_v56, 15  ;;  %v9403_v14 = vmov %v9394_v42  ;;  %v9404_v1 = vmov 0  ;;  %5405 = vmatprep.mubr.bf16.mxu1 %v3396_v11  ;;  %v1588_v42 = vld [vmem:[#allocation2 + $0x118] sm:$0xff] }
 0x1d5   : > { %9397 = vst [vmem:[#allocation50_spill] sm:$0xff] %v9396_v57  ;;  %v9401_v12 = vsel %vm7436_vm1, 4294967295, %v9400_v12  ;;  %vm7442_vm12 = vcmp.ge.s32.totalorder %v9403_v14, 2  ;;  %1650 = vst [vmem:[#allocation2 + $0xe8] sm:$0xff] %v7411_v54  ;;  %v2823_v45 = vmax.f32 %v6960_v10, %v7002_v38  ;;  %v845_v22 = vadd.s32 208, %v6097_v52 }
 0x1d6   : > { %9402 = vst [vmem:[#allocation71_spill] sm:$0xff] %v9401_v12  ;;  %v9405_v1 = vsel %vm7442_vm12, 4294967295, %v9404_v1  ;;  %2985 = vst [vmem:[#allocation2 + $0x58] sm:$0xff] %v7427_v2  ;;  %v846_v28 = vadd.s32 216, %v6097_v52  ;;  %v1488_v50 = vmax.f32 %v7180_v0, %v6622_v24  ;;  %v2308_v13 = vpack.c.bf16 %v7432_v25, %v7430_v51  ;;  %5436 = vmatpush3.bf16.msra.mxu1 %v5651_v33 }
 0x1d7   : > { %9406 = vst [vmem:[#allocation72_spill] sm:$0xff] %v9405_v1  ;;  %v9407_v61 = vmax.f32 %v7344_v63, %v7357_v4  ;;  %v9408_v10 = vmov %v9399_v56  ;;  %v9409_v39 = vmov 0  ;;  %v1905_v24 = vsel %vm7419_vm11, %v1809_v30, -1e+30  ;;  %5437 = vmatprep.subr.bf16.mxu1 %v5652_v7  ;;  %v5653_v30 = vld [vmem:[%s8821_s3 + $0xd8] sm:$0xff]  }
 0x1d8   : > { %vm7469_vm15 = vcmp.lt.s32.totalorder %v9408_v10, 14  ;;  %v2225_v0 = vsel %vm7442_vm12, %v7447_v59, -1e+30  ;;  %v2857_v32 = vmax.f32 %v2823_v45, %v7036_v49  ;;  %v1037_v48 = vand.u32 15, %v845_v22  ;;  %5326 = vmatmul.mubr.bf16.gmra.mrb[52].mxu0 %v2308_v13 }
 0x1d9   : > { %v7465_v31 = vmax.f32 %v9407_v61, %v7430_v51  ;;  %v9410_v39 = vsel %vm7469_vm15, 4294967295, %v9409_v39  ;;  %v1044_v19 = vand.u32 15, %v846_v28  ;;  %v1522_v63 = vmax.f32 %v1488_v50, %v7480_v62 }
 0x1da   : > { %9411 = vst [vmem:[#allocation73_spill] sm:$0xff] %v9410_v39  ;;  %v2836_v8 = vmax.f32 %v7317_v6, %v7357_v4  ;;  %v7486_v34 = vadd.s32 224, %v6097_v52  ;;  %v7489_v15 = vadd.s32 232, %v6097_v52  ;;  %vm9413_vm12 = vnez %v9412_v58  ;;  %5438 = vmatpush3.bf16.msra.mxu1 %v5652_v7  ;;  %v5654_v7 = vld [vmem:[%s8821_s3 + $0xe0] sm:$0xff]  }
 0x1db   : > { %2996 = vst [vmem:[#allocation2 + $0xb0] sm:$0xff] %v7465_v31  ;;  %v3112_v47 = vsel %vm9413_vm12, %v7413_v18, -1e+30  ;;  %vm9415_vm11 = vnez %v9414_v44  ;;  %v2891_v11 = vmax.f32 %v2857_v32, %v7051_v17  ;;  %v2825_v6 = vmax.f32 %v7002_v38, %v7036_v49  ;;  %5439 = vmatprep.subr.bf16.mxu1 %v5653_v30 }
 0x1dc   : > { %v3304_v33 = vsel %vm9415_vm11, %v7415_v43, -1e+30  ;;  %v2902_v18 = vmax.f32 %v7373_v40, %v7430_v51  ;;  %v1556_v56 = vmax.f32 %v1522_v63, %v9392_v29  ;;  %v1681_v14 = vld [vmem:[#allocation2 + $0xe1] sm:$0xff]  ;;  %v1682_v59 = vld [vmem:[#allocation2 + $0xe9] sm:$0xff]  ;;  %vm7512_vm11 = vcmp.ge.s32.totalorder %v1037_v48, 1 }
 0x1dd   : > { %v1810_v45 = vld [vmem:[#allocation2 + $0xe7] sm:$0xff]  ;;  %v7510_v22 = vmax.f32 %v2891_v11, %v7072_v26  ;;  %v9416_v38 = vmov 0  ;;  %vm7516_vm12 = vcmp.ge.s32.totalorder %v1037_v48, 2  ;;  %v9419_v28 = vmov 0  ;;  %v3016_v5 = vld [vmem:[#allocation2 + $0x51] sm:$0xff]  ;;  %v3017_v43 = vld [vmem:[#allocation2 + $0x59] sm:$0xff] }
 0x1de   : > { %v9417_v38 = vsel %vm7512_vm11, 4294967295, %v9416_v38  ;;  %v9420_v28 = vsel %vm7516_vm12, 4294967295, %v9419_v28  ;;  %v7521_v40 = vmax.f32 %v2836_v8, %v7430_v51  ;;  %v1778_v50 = vsel %vm7436_vm1, %v1682_v59, -1e+30  ;;  %v2001_v61 = vld [vmem:[#allocation2 + $0xe2] sm:$0xff]  ;;  %v2002_v10 = vld [vmem:[#allocation2 + $0xea] sm:$0xff]  ;;  %5440 = vmatpush3.bf16.msra.mxu1 %v5653_v30 }
 0x1df   : > { %9418 = vst [vmem:[#allocation74_spill] sm:$0xff] %v9417_v38  ;;  %9421 = vst [vmem:[#allocation75_spill] sm:$0xff] %v9420_v28  ;;  %v1937_v13 = vmax.f32 %v1681_v14, %v1905_v24  ;;  %v2130_v32 = vld [vmem:[#allocation2 + $0xe6] sm:$0xff]  ;;  %vm7525_vm10 = vcmp.lt.s32.totalorder %v1044_v19, 15  ;;  %v9422_v26 = vmov 0  ;;  %v7529_v63 = vmax.f32 %v1556_v56, %v1588_v42  ;;  %v3208_v44 = vld [vmem:[#allocation2 + $0x52] sm:$0xff]  ;;  %5441 = vmatprep.subr.bf16.mxu1 %v5654_v7 }
 0x1e0   : > { %v9423_v26 = vsel %vm7525_vm10, 4294967295, %v9422_v26  ;;  %v1058_v48 = vand.u32 15, %v7489_v15  ;;  %v1938_v11 = vmax.f32 %v1778_v50, %v1810_v45  ;;  %v2098_v8 = vsel %vm7469_vm15, %v2002_v10, -1e+30  ;;  %2987 = vst [vmem:[#allocation2 + $0x68] sm:$0xff] %v7510_v22  ;;  %v5925_v15 = vld [vmem:[#allocation2 + $0xe0] sm:$0xff] }
 0x1e1   : > { %9424 = vst [vmem:[#allocation76_spill] sm:$0xff] %v9423_v26  ;;  %vm7535_vm1 = vcmp.lt.s32.totalorder %v1044_v19, 14  ;;  %v9425_v24 = vmov 0  ;;  %v7540_v14 = vmax.f32 %v2825_v6, %v7051_v17  ;;  %v1969_v56 = vmax.f32 %v5925_v15, %v1937_v13  ;;  %v9428_v45 = vld [vmem:[#allocation53_spill] sm:$0xff]  ;;  %v3209_v58 = vld [vmem:[#allocation2 + $0x5a] sm:$0xff]  ;;  %1652 = vst [vmem:[#allocation2 + $0xf8] sm:$0xff] %v7529_v63 }
 0x1e2   : > { %v9426_v24 = vsel %vm7535_vm1, 4294967295, %v9425_v24  ;;  %v2257_v59 = vmax.f32 %v2001_v61, %v2225_v0  ;;  %vm9429_vm15 = vnez %v9428_v45  ;;  %v3081_v50 = vld [vmem:[#allocation2 + $0x57] sm:$0xff]  ;;  %v3144_v10 = vmax.f32 %v3016_v5, %v3112_v47  ;;  %v9434_v0 = vld [vmem:[#allocation55_spill] sm:$0xff]  ;;  %v1811_v47 = vld [vmem:[#allocation2 + $0xef] sm:$0xff]  ;;  %5442 = vmatpush3.bf16.msra.mxu1 %v5654_v7 }
 0x1e3   : > { %9427 = vst [vmem:[#allocation77_spill] sm:$0xff] %v9426_v24  ;;  %v3049_v19 = vsel %vm9429_vm15, %v3017_v43, -1e+30  ;;  %v9430_v6 = vand.u32 15, %v7486_v34  ;;  %v9431_v42 = vmov 0  ;;  %v1970_v46 = vmax.f32 %v7411_v54, %v1938_v11  ;;  %v3082_v43 = vld [vmem:[#allocation2 + $0x5f] sm:$0xff] }
 0x1e4   : > { %v2258_v35 = vmax.f32 %v2098_v8, %v2130_v32  ;;  %v3145_v13 = vmax.f32 %v3049_v19, %v3081_v50  ;;  %vm9435_vm7 = vnez %v9434_v0  ;;  %v3274_v15 = vld [vmem:[#allocation2 + $0x5e] sm:$0xff]  ;;  %v7559_v5 = vmax.f32 %v1969_v56, %v2257_v59  ;;  %v3273_v20 = vld [vmem:[#allocation2 + $0x56] sm:$0xff]  ;;  %v1686_v8 = vld [vmem:[#allocation2 + $0x109] sm:$0xff] }
 0x1e5   : > { %vm7552_vm6 = vcmp.ge.s32.totalorder %v9430_v6, 1  ;;  %v3241_v61 = vsel %vm9435_vm7, %v3209_v58, -1e+30  ;;  %v3176_v45 = vmax.f32 %v7153_v55, %v3144_v10  ;;  %v3336_v1 = vmax.f32 %v3208_v44, %v3304_v33  ;;  %v7562_v6 = vld [vmem:[#allocation2 + $0xee] sm:$0xff] }
 0x1e6   : > { %v9432_v42 = vsel %vm7552_vm6, 4294967295, %v9431_v42  ;;  %vm7564_vm15 = vcmp.lt.s32.totalorder %v1058_v48, 15  ;;  %v9436_v39 = vmov 0  ;;  %v7568_v54 = vmax.f32 %v1970_v46, %v2258_v35  ;;  %v7573_v56 = vld [vmem:[#allocation2 + $0x88] sm:$0xff]  ;;  %v7601_v19 = vld [vmem:[%s8821_s3 + $0xf0] sm:$0xff]  }
 0x1e7   : > { %9433 = vst [vmem:[#allocation78_spill] sm:$0xff] %v9432_v42  ;;  %v9437_v39 = vsel %vm7564_vm15, 4294967295, %v9436_v39  ;;  %v3177_v58 = vmax.f32 %v7427_v2, %v3145_v13  ;;  %v3337_v32 = vmax.f32 %v3241_v61, %v3273_v20  ;;  %vm9439_vm7 = vnez %v9226_v37  ;;  %v5655_v55 = vld [vmem:[%s8821_s3 + $0xe8] sm:$0xff]  }
 0x1e8   : > { %9438 = vst [vmem:[#allocation79_spill] sm:$0xff] %v9437_v39  ;;  %v3114_v11 = vsel %vm9439_vm7, %v3082_v43, -1e+30  ;;  %v7579_v44 = vmax.f32 %v2902_v18, %v7559_v5  ;;  %v3368_v33 = vmax.f32 %v3176_v45, %v3336_v1  ;;  %v3306_v35 = vsel %vm6819_vm4, %v3274_v15, -1e+30  ;;  %v1814_v1 = vld [vmem:[#allocation2 + $0x107] sm:$0xff]  ;;  %5443 = vmatprep.subr.bf16.mxu1 %v5655_v55 }
 0x1e9   : > { %v1907_v46 = vsel %vm7512_vm11, %v1811_v47, -1e+30  ;;  %v2309_v20 = vpack.c.bf16 %v7568_v54, %v7559_v5  ;;  %v3369_v2 = vmax.f32 %v3177_v58, %v3337_v32  ;;  %v2227_v30 = vsel %vm7516_vm12, %v7562_v6, -1e+30  ;;  %v7596_v45 = vld [vmem:[#allocation2 + $0x98] sm:$0xff]  ;;  %v3018_v50 = vld [vmem:[#allocation2 + $0x61] sm:$0xff]  ;;  %5444 = vmatpush3.bf16.msra.mxu1 %v5655_v55 }
 0x1ea   : > { %v9440_v59 = vand.u32 15, %v7486_v34  ;;  %v9441_v18 = vmov 0  ;;  %2998 = vst [vmem:[#allocation2 + $0xc0] sm:$0xff] %v7579_v44  ;;  %3674 = vst [vmem:[#allocation2 + $0x50] sm:$0xff] %v3368_v33  ;;  %v3019_v10 = vld [vmem:[#allocation2 + $0x69] sm:$0xff]  ;;  %vm7606_vm4 = vcmp.lt.s32.totalorder %v1058_v48, 14  ;;  %v2893_v15 = vmax.f32 %v7540_v14, %v7573_v56  ;;  %5445 = vmatprep.subr.bf16.mxu1 %v7601_v19 }
 0x1eb   : > { %v3083_v13 = vld [vmem:[#allocation2 + $0x67] sm:$0xff]  ;;  %v9444_v61 = vmov 0  ;;  %v1782_v43 = vsel %vm7564_vm15, %v1686_v8, -1e+30  ;;  %5329 = vmatprep.mubr.bf16.mxu0 %v2309_v20  ;;  %v3397_v47 = vpack.c.bf16 %v3369_v2, %v3368_v33  ;;  %v3146_v32 = vmax.f32 %v3018_v50, %v3114_v11  ;;  %3675 = vst [vmem:[#allocation2 + $0x58] sm:$0xff] %v3369_v2  ;;  %v1683_v33 = vld [vmem:[#allocation2 + $0xf1] sm:$0xff] }
 0x1ec   : > { %vm7592_vm7 = vcmp.ge.s32.totalorder %v9440_v59, 2  ;;  %v9445_v61 = vsel %vm7606_vm4, 4294967295, %v9444_v61  ;;  %v9447_v6 = vld [vmem:[#allocation4_spill] sm:$0xff]  ;;  %v9449_v48 = vmax.f32 %v7357_v4, %v7430_v51  ;;  %v1684_v20 = vld [vmem:[#allocation2 + $0xf9] sm:$0xff]  ;;  %v7625_v11 = vmax.f32 %v2893_v15, %v7596_v45 }
 0x1ed   : > { %v9442_v18 = vsel %vm7592_vm7, 4294967295, %v9441_v18  ;;  %9446 = vst [vmem:[#allocation81_spill] sm:$0xff] %v9445_v61  ;;  %vm9448_vm12 = vnez %v9447_v6  ;;  %v3210_v59 = vld [vmem:[#allocation2 + $0x62] sm:$0xff]  ;;  %v3211_v60 = vld [vmem:[#allocation2 + $0x6a] sm:$0xff]  ;;  %v1812_v6 = vld [vmem:[#allocation2 + $0xf7] sm:$0xff]  ;;  %5406 = vmatmul.mubr.bf16.gmra.mrb[20].mxu1 %v3397_v47  ;;  %v3178_v2 = vmax.f32 %v7155_v21, %v3146_v32 }
 0x1ee   : > { %9443 = vst [vmem:[#allocation80_spill] sm:$0xff] %v9442_v18  ;;  %v3051_v58 = vsel %vm9448_vm12, %v3019_v10, -1e+30  ;;  %v3275_v34 = vld [vmem:[#allocation2 + $0x66] sm:$0xff]  ;;  %v7620_v37 = vmax.f32 %v9449_v48, %v7559_v5  ;;  %v3243_v7 = vsel %vm6825_vm5, %v3211_v60, -1e+30  ;;  %v1942_v10 = vmax.f32 %v1782_v43, %v1814_v1  ;;  %5446 = vmatpush3.bf16.msra.mxu1 %v7601_v19 }
 0x1ef   : > { %v3147_v8 = vmax.f32 %v3051_v58, %v3083_v13  ;;  %v3338_v50 = vmax.f32 %v3210_v59, %v3306_v35  ;;  %v1780_v4 = vsel %vm7525_vm10, %v1684_v20, -1e+30  ;;  %v1939_v48 = vmax.f32 %v1683_v33, %v1907_v46  ;;  %v2003_v0 = vld [vmem:[#allocation2 + $0xf2] sm:$0xff]  ;;  %v2004_v13 = vld [vmem:[#allocation2 + $0xfa] sm:$0xff]  ;;  %v2006_v15 = vld [vmem:[#allocation2 + $0x10a] sm:$0xff]  ;;  %2989 = vst [vmem:[#allocation2 + $0x78] sm:$0xff] %v7625_v11 }
 0x1f0   : > { %v2132_v58 = vld [vmem:[#allocation2 + $0xf6] sm:$0xff]  ;;  %v3339_v14 = vmax.f32 %v3243_v7, %v3275_v34  ;;  %v1940_v39 = vmax.f32 %v1780_v4, %v1812_v6  ;;  %v2100_v1 = vsel %vm7535_vm1, %v2004_v13, -1e+30  ;;  %v1813_v43 = vld [vmem:[#allocation2 + $0xff] sm:$0xff]  ;;  %v2259_v46 = vmax.f32 %v2003_v0, %v2227_v30  ;;  %v5927_v0 = vld [vmem:[#allocation2 + $0x108] sm:$0xff] }
 0x1f1   : > { %v3179_v60 = vmax.f32 %v7510_v22, %v3147_v8  ;;  %v2133_v47 = vld [vmem:[#allocation2 + $0xfe] sm:$0xff]  ;;  %v3370_v21 = vmax.f32 %v3178_v2, %v3338_v50  ;;  %v5926_v35 = vld [vmem:[#allocation2 + $0xf0] sm:$0xff]  ;;  %v1909_v33 = vsel %vm7552_vm6, %v1813_v43, -1e+30  ;;  %v2260_v8 = vmax.f32 %v2100_v1, %v2132_v58  ;;  %v2134_v20 = vld [vmem:[#allocation2 + $0x106] sm:$0xff] }
 0x1f2   : > { %v1971_v32 = vmax.f32 %v5926_v35, %v1939_v48  ;;  %v1685_v59 = vld [vmem:[#allocation2 + $0x101] sm:$0xff]  ;;  %v5657_v22 = vld [vmem:[%s8821_s3 + $0xf8] sm:$0xff]   ;;  %v1972_v6 = vmax.f32 %v7529_v63, %v1940_v39  ;;  %v1974_v30 = vmax.f32 %v5927_v0, %v1942_v10  ;;  %v2102_v50 = vsel %vm7606_vm4, %v2006_v15, -1e+30  ;;  %v3084_v48 = vld [vmem:[#allocation2 + $0x6f] sm:$0xff] }
 0x1f3   : > { %v3371_v34 = vmax.f32 %v3179_v60, %v3339_v14  ;;  %v1941_v7 = vmax.f32 %v1685_v59, %v1909_v33  ;;  %v2005_v55 = vld [vmem:[#allocation2 + $0x102] sm:$0xff]  ;;  %3676 = vst [vmem:[#allocation2 + $0x60] sm:$0xff] %v3370_v21  ;;  %v2229_v4 = vsel %vm7592_vm7, %v2133_v47, -1e+30  ;;  %v3276_v13 = vld [vmem:[#allocation2 + $0x6e] sm:$0xff]  ;;  %v2840_v10 = vmax.f32 %v7430_v51, %v7559_v5  ;;  %5447 = vmatprep.subr.bf16.mxu1 %v5657_v22 }
 0x1f4   : > { %v7641_v2 = vmax.f32 %v1971_v32, %v2259_v46  ;;  %v7647_v60 = vmax.f32 %v1972_v6, %v2260_v8  ;;  %v5928_v39 = vld [vmem:[#allocation2 + $0x100] sm:$0xff]  ;;  %v2261_v58 = vmax.f32 %v2005_v55, %v2229_v4  ;;  %v9451_v1 = vmax.f32 %v7521_v40, %v7559_v5  ;;  %v9455_v55 = vld [vmem:[#allocation6_spill] sm:$0xff]  ;;  %5448 = vmatpush3.bf16.msra.mxu1 %v5657_v22 }
 0x1f5   : > { %v3398_v14 = vpack.c.bf16 %v3371_v34, %v3370_v21  ;;  %v1973_v63 = vmax.f32 %v5928_v39, %v1941_v7  ;;  %3677 = vst [vmem:[#allocation2 + $0x68] sm:$0xff] %v3371_v34  ;;  %v2262_v15 = vmax.f32 %v2102_v50, %v2134_v20  ;;  %v3116_v32 = vsel %vm6857_vm2, %v3084_v48, -1e+30 }
 0x1f6   : > { %v7656_v43 = vmax.f32 %v9451_v1, %v7641_v2  ;;  %v2906_v47 = vmax.f32 %v7620_v37, %v7641_v2  ;;  %v2310_v21 = vpack.c.bf16 %v7647_v60, %v7641_v2  ;;  %v2842_v51 = vmax.f32 %v7559_v5, %v7641_v2  ;;  %v3020_v46 = vld [vmem:[#allocation2 + $0x71] sm:$0xff]  ;;  %v3021_v59 = vld [vmem:[#allocation2 + $0x79] sm:$0xff] }
 0x1f7   : > { %5409 = vmatprep.mubr.bf16.mxu1 %v3398_v14  ;;  %v7662_v35 = vmax.f32 %v1973_v63, %v2261_v58  ;;  %v7669_v40 = vmax.f32 %v1974_v30, %v2262_v15  ;;  %v3085_v37 = vld [vmem:[#allocation2 + $0x77] sm:$0xff]  ;;  %v3308_v34 = vsel %vm6900_vm8, %v3276_v13, -1e+30  ;;  %v9454_v6 = vmax.f32 %v7036_v49, %v7051_v17 }
 0x1f8   : > { %3000 = vst [vmem:[#allocation2 + $0xd0] sm:$0xff] %v7656_v43  ;;  %v849_v5 = vadd.s32 240, %v6097_v52  ;;  %5330 = vmatmul.mubr.bf16.gmra.mrb[56].mxu0 %v2310_v21  ;;  %vm9456_vm2 = vnez %v9455_v55  ;;  %v3212_v0 = vld [vmem:[#allocation2 + $0x72] sm:$0xff]  ;;  %v3213_v30 = vld [vmem:[#allocation2 + $0x7a] sm:$0xff]  ;;  %v850_v4 = vadd.s32 248, %v6097_v52  ;;  %v1492_v48 = vmax.f32 %v7480_v62, %v9392_v29 }
 0x1f9   : > { %v2861_v8 = vmax.f32 %v9454_v6, %v7573_v56  ;;  %v7679_v7 = vmax.f32 %v2906_v47, %v7662_v35  ;;  %v3053_v20 = vsel %vm9456_vm2, %v3021_v59, -1e+30  ;;  %v3277_v50 = vld [vmem:[#allocation2 + $0x76] sm:$0xff]  ;;  %v2311_v49 = vpack.c.bf16 %v7669_v40, %v7662_v35  ;;  %v3086_v47 = vld [vmem:[#allocation2 + $0x7f] sm:$0xff] }
 0x1fa   : > { %v3148_v13 = vmax.f32 %v3020_v46, %v3116_v32  ;;  %v3149_v14 = vmax.f32 %v3053_v20, %v3085_v37  ;;  %v3245_v63 = vsel %vm6882_vm3, %v3213_v30, -1e+30  ;;  %v7693_v1 = vmax.f32 %v2842_v51, %v7662_v35  ;;  %v7699_v21 = vld [vmem:[#allocation2 + $0x7e] sm:$0xff]  ;;  %v7701_v46 = vld [vmem:[#allocation2 + $0x10f] sm:$0xff] }
 0x1fb   : > { %3002 = vst [vmem:[#allocation2 + $0xe0] sm:$0xff] %v7679_v7  ;;  %v3340_v52 = vmax.f32 %v3212_v0, %v3308_v34  ;;  %v2895_v29 = vmax.f32 %v2861_v8, %v7596_v45  ;;  %5333 = vmatprep.mubr.bf16.mxu0 %v2311_v49  ;;  %v3341_v15 = vmax.f32 %v3245_v63, %v3277_v50  ;;  %v1065_v32 = vand.u32 15, %v849_v5  ;;  %v9458_v59 = vld [vmem:[#allocation58_spill] sm:$0xff]  ;;  %v7706_v20 = vld [vmem:[#allocation2 + $0x10e] sm:$0xff] }
 0x1fc   : > { %v3180_v62 = vmax.f32 %v7158_v16, %v3148_v13  ;;  %v3181_v22 = vmax.f32 %v7625_v11, %v3149_v14  ;;  %v1072_v37 = vand.u32 15, %v850_v4  ;;  %v5929_v6 = vld [vmem:[#allocation2 + $0x118] sm:$0xff]  ;;  %v7709_v8 = vmax.f32 %v2840_v10, %v7641_v2 }
 0x1fd   : > { %v7704_v51 = vmax.f32 %v2895_v29, %v9458_v59  ;;  %v1526_v34 = vmax.f32 %v1492_v48, %v5929_v6  ;;  %vm7713_vm8 = vcmp.ge.s32.totalorder %v1065_v32, 1  ;;  %v9460_v0 = vmov 0  ;;  %v7727_v48 = vld [vmem:[#allocation2 + $0x120] sm:$0xff] }
 0x1fe   : > { %v7711_v16 = vmax.f32 %v3180_v62, %v3340_v52  ;;  %v3373_v11 = vmax.f32 %v3181_v22, %v3341_v15  ;;  %v9461_v0 = vsel %vm7713_vm8, 4294967295, %v9460_v0  ;;  %vm7717_vm3 = vcmp.ge.s32.totalorder %v1065_v32, 2  ;;  %v9470_v62 = vld [vmem:[#allocation15_spill] sm:$0xff]  ;;  %v9471_v22 = vld [vmem:[#allocation18_spill] sm:$0xff]  ;;  %v9478_v52 = vld [vmem:[#allocation21_spill] sm:$0xff] }
 0x1ff   : > { %9462 = vst [vmem:[#allocation82_spill] sm:$0xff] %v9461_v0  ;;  %v9463_v5 = vmov 0  ;;  %2991 = vst [vmem:[#allocation2 + $0x88] sm:$0xff] %v7704_v51  ;;  %v3118_v50 = vsel %vm6924_vm13, %v3086_v47, -1e+30  ;;  %v1560_v49 = vmax.f32 %v1526_v34, %v7727_v48  ;;  %vm7734_vm2 = vcmp.lt.s32.totalorder %v1072_v37, 15 }
 0x200   : > { %9459 = vst [vmem:[#allocation58_spill] sm:$0xff] %v7711_v16  ;;  %v9464_v5 = vsel %vm7717_vm3, 4294967295, %v9463_v5  ;;  %v3310_v10 = vsel %vm6948_vm14, %v7699_v21, -1e+30  ;;  %v3399_v14 = vpack.c.bf16 %v3373_v11, %v7711_v16  ;;  %3679 = vst [vmem:[#allocation2 + $0x78] sm:$0xff] %v3373_v11  ;;  %v9468_v63 = vmov 0 }
 0x201   : > { %9465 = vst [vmem:[#allocation83_spill] sm:$0xff] %v9464_v5  ;;  %v9469_v63 = vsel %vm7734_vm2, 4294967295, %v9468_v63  ;;  %vm7745_vm14 = vcmp.lt.s32.totalorder %v1072_v37, 14  ;;  %v9472_v47 = vmov 0  ;;  %v7750_v21 = vmax.f32 %v1560_v49, %v7727_v48  ;;  %v9475_v34 = vld [vmem:[#allocation20_spill] sm:$0xff]  ;;  %v9476_v11 = vld [vmem:[#allocation22_spill] sm:$0xff] }
 0x202   : > { %v9473_v47 = vsel %vm7745_vm14, 4294967295, %v9472_v47  ;;  %v2829_v32 = vmax.f32 %v7051_v17, %v7573_v56  ;;  %v2831_v6 = vmax.f32 %v7573_v56, %v7596_v45  ;;  %5410 = vmatmul.mubr.bf16.gmra.mrb[24].mxu1 %v3399_v14  ;;  %v2833_v15 = vmax.f32 %v7596_v45, %v9458_v59  ;;  %v9477_v29 = vld [vmem:[#allocation19_spill] sm:$0xff]  ;;  %v9502_v5 = vld [vmem:[#allocation9_spill] sm:$0xff] }
 0x203   : > { %9474 = vst [vmem:[#allocation15_spill] sm:$0xff] %v9473_v47  ;;  %v2835_v37 = vmax.f32 %v9458_v59, %v7335_v9  ;;  %1656 = vst [vmem:[#allocation2 + $0x118] sm:$0xff] %v7750_v21  ;;  %v2837_v14 = vmax.f32 %v7335_v9, %v7370_v3  ;;  %v2839_v58 = vmax.f32 %v7370_v3, %v7432_v25  ;;  %v9487_v49 = vld [vmem:[#allocation7_spill] sm:$0xff]  ;;  %vm9503_vm12 = vnez %v9502_v5 }
 0x204   : > { %v2863_v17 = vmax.f32 %v2829_v32, %v7596_v45  ;;  %v2865_v56 = vmax.f32 %v2831_v6, %v9458_v59  ;;  %v2867_v33 = vmax.f32 %v2833_v15, %v7335_v9  ;;  %v2841_v55 = vmax.f32 %v7432_v25, %v7568_v54 }
 0x205   : > { %v2869_v39 = vmax.f32 %v2835_v37, %v7370_v3  ;;  %v2871_v6 = vmax.f32 %v2837_v14, %v7432_v25  ;;  %v2873_v42 = vmax.f32 %v2839_v58, %v7568_v54  ;;  %v2843_v61 = vmax.f32 %v7568_v54, %v7647_v60 }
 0x206   : > { %v2897_v45 = vmax.f32 %v2863_v17, %v9458_v59  ;;  %v2899_v32 = vmax.f32 %v2865_v56, %v7335_v9  ;;  %v3022_v24 = vld [vmem:[#allocation2 + $0x81] sm:$0xff]  ;;  %v3023_v26 = vld [vmem:[#allocation2 + $0x89] sm:$0xff]  ;;  %v2901_v15 = vmax.f32 %v2867_v33, %v7370_v3  ;;  %vm9488_vm5 = vnez %v9487_v49 }
 0x207   : > { %v3087_v16 = vld [vmem:[#allocation2 + $0x87] sm:$0xff]  ;;  %v2903_v37 = vmax.f32 %v2869_v39, %v7432_v25  ;;  %v3150_v56 = vmax.f32 %v3022_v24, %v3118_v50  ;;  %v7799_v13 = vld [vmem:[#allocation2 + $0x8f] sm:$0xff] }
 0x208   : > { %v9485_v59 = vld [vmem:[#allocation8_spill] sm:$0xff]  ;;  %v7792_v18 = vmax.f32 %v2897_v45, %v7335_v9  ;;  %v7795_v33 = vmax.f32 %v2899_v32, %v7370_v3  ;;  %v9490_v9 = vld [vmem:[#allocation33_spill] sm:$0xff] }
 0x209   : > { %vm9486_vm13 = vnez %v9485_v59  ;;  %v3214_v14 = vld [vmem:[#allocation2 + $0x82] sm:$0xff]  ;;  %v3215_v30 = vld [vmem:[#allocation2 + $0x8a] sm:$0xff] }
 0x20a   : > { %v3055_v17 = vsel %vm9486_vm13, %v3023_v26, -1e+30  ;;  %v3279_v58 = vld [vmem:[#allocation2 + $0x86] sm:$0xff]  ;;  %v3247_v19 = vsel %vm9488_vm5, %v3215_v30, -1e+30  ;;  %v3342_v28 = vmax.f32 %v3214_v14, %v3310_v10  ;;  %v7801_v4 = vld [vmem:[#allocation2 + $0x8e] sm:$0xff]  ;;  %v7804_v26 = vmax.f32 %v2901_v15, %v7432_v25 }
 0x20b   : > { %v3151_v39 = vmax.f32 %v3055_v17, %v3087_v16  ;;  %v9489_v24 = vld [vmem:[#allocation12_spill] sm:$0xff]  ;;  %v3343_v59 = vmax.f32 %v3247_v19, %v3279_v58  ;;  %2993 = vst [vmem:[#allocation2 + $0x98] sm:$0xff] %v7792_v18  ;;  %vm9491_vm13 = vnez %v9490_v9  ;;  %v9492_v16 = vld [vmem:[#allocation62_spill] sm:$0xff]  ;;  %2995 = vst [vmem:[#allocation2 + $0xa8] sm:$0xff] %v7795_v33  ;;  %v7818_v19 = vmax.f32 %v2903_v37, %v7568_v54 }
 0x20c   : > { %v3182_v50 = vmax.f32 %v9489_v24, %v3150_v56  ;;  %v3120_v3 = vsel %vm9491_vm13, %v7799_v13, -1e+30  ;;  %vm9493_vm5 = vnez %v9492_v16  ;;  %v1687_v45 = vld [vmem:[#allocation2 + $0x111] sm:$0xff]  ;;  %v1688_v25 = vld [vmem:[#allocation2 + $0x119] sm:$0xff]  ;;  %2997 = vst [vmem:[#allocation2 + $0xb8] sm:$0xff] %v7804_v26  ;;  %v2905_v15 = vmax.f32 %v2871_v6, %v7568_v54 }
 0x20d   : > { %v3183_v10 = vmax.f32 %v7704_v51, %v3151_v39  ;;  %v1816_v32 = vld [vmem:[#allocation2 + $0x117] sm:$0xff]  ;;  %v2907_v13 = vmax.f32 %v2873_v42, %v7647_v60  ;;  %v1784_v56 = vsel %vm7734_vm2, %v1688_v25, -1e+30  ;;  %v9494_v51 = vsel %vm7713_vm8, %v7701_v46, -1e+30  ;;  %2999 = vst [vmem:[#allocation2 + $0xc8] sm:$0xff] %v7818_v19 }
 0x20e   : > { %v7822_v17 = vmax.f32 %v3182_v50, %v3342_v28  ;;  %v1943_v14 = vmax.f32 %v1687_v45, %v9494_v51  ;;  %v2007_v58 = vld [vmem:[#allocation2 + $0x112] sm:$0xff]  ;;  %v2008_v39 = vld [vmem:[#allocation2 + $0x11a] sm:$0xff]  ;;  %v7831_v37 = vmax.f32 %v2841_v55, %v7647_v60  ;;  %v1944_v54 = vmax.f32 %v1784_v56, %v1816_v32 }
 0x20f   : > { %v2136_v24 = vld [vmem:[#allocation2 + $0x116] sm:$0xff]  ;;  %v3375_v30 = vmax.f32 %v3183_v10, %v3343_v59  ;;  %v2104_v28 = vsel %vm7745_vm14, %v2008_v39, -1e+30  ;;  %v9495_v42 = vsel %vm7717_vm3, %v7706_v20, -1e+30  ;;  %v7841_v25 = vmax.f32 %v2905_v15, %v7647_v60  ;;  %v7846_v59 = vld [vmem:[#allocation2 + $0x20] sm:$0xff] }
 0x210   : > { %v2263_v6 = vmax.f32 %v2007_v58, %v9495_v42  ;;  %v5931_v46 = vld [vmem:[#allocation2 + $0x110] sm:$0xff]  ;;  %v2264_v45 = vmax.f32 %v2104_v28, %v2136_v24  ;;  %v7844_v55 = vmax.f32 %v2907_v13, %v7669_v40  ;;  %v7848_v10 = vld [vmem:[#allocation2 + $0x28] sm:$0xff]  ;;  %v1976_v56 = vmax.f32 %v7750_v21, %v1944_v54  ;;  %v9500_v39 = vld [vmem:[#allocation10_spill] sm:$0xff] }
 0x211   : > { %v1975_v50 = vmax.f32 %v5931_v46, %v1943_v14  ;;  %v7850_v32 = vld [vmem:[#allocation2 + $0x30] sm:$0xff]  ;;  %v3400_v20 = vpack.c.bf16 %v3375_v30, %v7822_v17  ;;  %3681 = vst [vmem:[#allocation2 + $0x88] sm:$0xff] %v3375_v30  ;;  %v7857_v15 = vmax.f32 %v2843_v61, %v7669_v40  ;;  %3001 = vst [vmem:[#allocation2 + $0xd8] sm:$0xff] %v7841_v25  ;;  %v9496_v13 = vld [vmem:[#allocation28_spill] sm:$0xff]  ;;  %vm9501_vm13 = vnez %v9500_v39 }
 0x212   : > { %3003 = vst [vmem:[#allocation2 + $0xe8] sm:$0xff] %v7844_v55  ;;  %v9497_v58 = vld [vmem:[#allocation32_spill] sm:$0xff]  ;;  %v7865_v21 = vmax.f32 %v1976_v56, %v2264_v45  ;;  %v3024_v30 = vld [vmem:[#allocation2 + $0x91] sm:$0xff]  ;;  %v3025_v54 = vld [vmem:[#allocation2 + $0x99] sm:$0xff]  ;;  %v9498_v46 = vmax.f32 %v7641_v2, %v7662_v35  ;;  %v9499_v45 = vmax.f32 %v7709_v8, %v7662_v35 }
 0x213   : > { %v2295_v14 = vmax.f32 %v1975_v50, %v2263_v6  ;;  %5413 = vmatprep.mubr.bf16.mxu1 %v3400_v20  ;;  %v3089_v28 = vld [vmem:[#allocation2 + $0x97] sm:$0xff]  ;;  %v3057_v61 = vsel %vm9501_vm13, %v3025_v54, -1e+30  ;;  %v3152_v6 = vmax.f32 %v3024_v30, %v3120_v3  ;;  %v3090_v47 = vld [vmem:[#allocation2 + $0x9f] sm:$0xff]  ;;  %v9504_v54 = vsel %vm9493_vm5, %v7801_v4, -1e+30 }
 0x214   : > { %v3216_v24 = vld [vmem:[#allocation2 + $0x92] sm:$0xff]  ;;  %v3217_v51 = vld [vmem:[#allocation2 + $0x9a] sm:$0xff]  ;;  %v3153_v49 = vmax.f32 %v3057_v61, %v3089_v28  ;;  %v3091_v30 = vld [vmem:[#allocation2 + $0xa7] sm:$0xff]  ;;  %v9509_v4 = vpack.c.bf16 %v9471_v22, %v9470_v62 }
 0x215   : > { %v2878_v50 = vmax.f32 %v9498_v46, %v2295_v14  ;;  %v2910_v20 = vmax.f32 %v7693_v1, %v2295_v14  ;;  %v7880_v56 = vmax.f32 %v9499_v45, %v2295_v14  ;;  %v3281_v42 = vld [vmem:[#allocation2 + $0x96] sm:$0xff]  ;;  %v2312_v9 = vpack.c.bf16 %v7865_v21, %v2295_v14  ;;  %v3026_v46 = vld [vmem:[#allocation2 + $0xa1] sm:$0xff]  ;;  %v3027_v1 = vld [vmem:[#allocation2 + $0xa9] sm:$0xff] }
 0x216   : > { %v3249_v2 = vsel %vm9503_vm12, %v3217_v51, -1e+30  ;;  %v3344_v14 = vmax.f32 %v3216_v24, %v9504_v54  ;;  %v3219_v28 = vld [vmem:[#allocation2 + $0xaa] sm:$0xff]  ;;  %v3184_v51 = vmax.f32 %v7352_v36, %v3152_v6  ;;  %v3185_v61 = vmax.f32 %v7792_v18, %v3153_v49  ;;  %v3218_v39 = vld [vmem:[#allocation2 + $0xa2] sm:$0xff]  ;;  %v9514_v62 = vld [vmem:[#allocation46_spill] sm:$0xff] }
 0x217   : > { %v2912_v35 = vmax.f32 %v2878_v50, %v7727_v48  ;;  %v7889_v8 = vmax.f32 %v2910_v20, %v7727_v48  ;;  %3004 = vst [vmem:[#allocation2 + $0xf0] sm:$0xff] %v7880_v56  ;;  %v3345_v3 = vmax.f32 %v3249_v2, %v3281_v42  ;;  %5334 = vmatmul.mubr.bf16.gmra.mrb[60].mxu0 %v2312_v9  ;;  %v9505_v45 = vld [vmem:[#allocation44_spill] sm:$0xff]  ;;  %v9507_v20 = vld [vmem:[#allocation11_spill] sm:$0xff] }
 0x218   : > { %vm9506_vm12 = vnez %v9505_v45  ;;  %vm9508_vm13 = vnez %v9507_v20  ;;  %v3282_v0 = vld [vmem:[#allocation2 + $0x9e] sm:$0xff]  ;;  %5353 = vmatprep.mubr.bf16.mxu0 %v9509_v4  ;;  %v9510_v18 = vld [vmem:[#allocation48_spill] sm:$0xff]  ;;  %v3028_v20 = vld [vmem:[#allocation2 + $0xb1] sm:$0xff] }
 0x219   : > { %v3059_v50 = vsel %vm9506_vm12, %v3027_v1, -1e+30  ;;  %v3122_v5 = vsel %vm9508_vm13, %v3090_v47, -1e+30  ;;  %v7903_v16 = vmax.f32 %v2912_v35, %v7727_v48  ;;  %3006 = vst [vmem:[#allocation2 + $0x100] sm:$0xff] %v7889_v8  ;;  %vm9511_vm5 = vnez %v9510_v18  ;;  %v3283_v24 = vld [vmem:[#allocation2 + $0xa6] sm:$0xff] }
 0x21a   : > { %v3154_v36 = vmax.f32 %v3026_v46, %v3122_v5  ;;  %v3155_v9 = vmax.f32 %v3059_v50, %v3091_v30  ;;  %v3251_v49 = vsel %vm9511_vm5, %v3219_v28, -1e+30  ;;  %v3029_v42 = vld [vmem:[#allocation2 + $0xb9] sm:$0xff]  ;;  %v3092_v6 = vld [vmem:[#allocation2 + $0xaf] sm:$0xff]  ;;  %v7911_v47 = vmax.f32 %v3184_v51, %v3344_v14 }
 0x21b   : > { %v3377_v2 = vmax.f32 %v3185_v61, %v3345_v3  ;;  %v9512_v1 = vld [vmem:[#allocation63_spill] sm:$0xff]  ;;  %v3347_v54 = vmax.f32 %v3251_v49, %v3283_v24  ;;  %3008 = vst [vmem:[#allocation2 + $0x110] sm:$0xff] %v7903_v16  ;;  %v3061_v28 = vsel %vm7193_vm9, %v3029_v42, -1e+30  ;;  %v3093_v50 = vld [vmem:[#allocation2 + $0xb7] sm:$0xff]  ;;  %v3284_v51 = vld [vmem:[#allocation2 + $0xae] sm:$0xff] }
 0x21c   : > { %vm9513_vm13 = vnez %v9512_v1  ;;  %v3221_v45 = vld [vmem:[#allocation2 + $0xba] sm:$0xff]  ;;  %v3186_v5 = vmax.f32 %v9514_v62, %v3154_v36  ;;  %v3187_v22 = vmax.f32 %v7795_v33, %v3155_v9  ;;  %v3220_v14 = vld [vmem:[#allocation2 + $0xb2] sm:$0xff]  ;;  %v3157_v4 = vmax.f32 %v3061_v28, %v3093_v50  ;;  %v9518_v49 = vld [vmem:[#allocation64_spill] sm:$0xff] }
 0x21d   : > { %v3314_v35 = vsel %vm9513_vm13, %v3282_v0, -1e+30  ;;  %v3401_v3 = vpack.c.bf16 %v3377_v2, %v7911_v47  ;;  %3683 = vst [vmem:[#allocation2 + $0x98] sm:$0xff] %v3377_v2  ;;  %v9516_v0 = vld [vmem:[#allocation37_spill] sm:$0xff]  ;;  %vm9519_vm5 = vnez %v9518_v49  ;;  %v3094_v62 = vld [vmem:[#allocation2 + $0xbf] sm:$0xff] }
 0x21e   : > { %v3346_v46 = vmax.f32 %v3218_v39, %v3314_v35  ;;  %vm9517_vm13 = vnez %v9516_v0  ;;  %v3253_v24 = vsel %vm9519_vm5, %v3221_v45, -1e+30  ;;  %v3031_v36 = vld [vmem:[#allocation2 + $0xc9] sm:$0xff]  ;;  %v7927_v39 = vmax.f32 %v3187_v22, %v3347_v54  ;;  %v3285_v42 = vld [vmem:[#allocation2 + $0xb6] sm:$0xff]  ;;  %v3030_v1 = vld [vmem:[#allocation2 + $0xc1] sm:$0xff] }
 0x21f   : > { %v3124_v61 = vsel %vm9517_vm13, %v3092_v6, -1e+30  ;;  %v9520_v35 = vld [vmem:[#allocation17_spill] sm:$0xff]  ;;  %5414 = vmatmul.mubr.bf16.gmra.mrb[28].mxu1 %v3401_v3  ;;  %v3189_v6 = vmax.f32 %v7804_v26, %v3157_v4  ;;  %v3349_v50 = vmax.f32 %v3253_v24, %v3285_v42  ;;  %v9522_v49 = vld [vmem:[#allocation66_spill] sm:$0xff]  ;;  %v3095_v0 = vld [vmem:[#allocation2 + $0xc7] sm:$0xff] }
 0x220   : > { %v7925_v33 = vmax.f32 %v3186_v5, %v3346_v46  ;;  %v3156_v9 = vmax.f32 %v3028_v20, %v3124_v61  ;;  %vm9521_vm9 = vnez %v9520_v35  ;;  %v3223_v2 = vld [vmem:[#allocation2 + $0xca] sm:$0xff]  ;;  %vm9523_vm5 = vnez %v9522_v49  ;;  %v3222_v5 = vld [vmem:[#allocation2 + $0xc2] sm:$0xff]  ;;  %3685 = vst [vmem:[#allocation2 + $0xa8] sm:$0xff] %v7927_v39  ;;  %v9527_v4 = vld [vmem:[#allocation14_spill] sm:$0xff] }
 0x221   : > { %v3316_v30 = vsel %vm9521_vm9, %v3284_v51, -1e+30  ;;  %v3063_v45 = vsel %vm9523_vm5, %v3031_v36, -1e+30  ;;  %v3286_v46 = vld [vmem:[#allocation2 + $0xbe] sm:$0xff]  ;;  %v9524_v22 = vld [vmem:[#allocation65_spill] sm:$0xff]  ;;  %v7943_v36 = vmax.f32 %v3189_v6, %v3349_v50 }
 0x222   : > { %v3348_v28 = vmax.f32 %v3220_v14, %v3316_v30  ;;  %v3402_v20 = vpack.c.bf16 %v7927_v39, %v7925_v33  ;;  %v3188_v54 = vmax.f32 %v7465_v31, %v3156_v9  ;;  %vm9525_vm9 = vnez %v9524_v22  ;;  %v3287_v26 = vld [vmem:[#allocation2 + $0xc6] sm:$0xff]  ;;  %v3033_v30 = vld [vmem:[#allocation2 + $0xd9] sm:$0xff]  ;;  %v3096_v14 = vld [vmem:[#allocation2 + $0xcf] sm:$0xff] }
 0x223   : > { %v3126_v51 = vsel %vm9525_vm9, %v3094_v62, -1e+30  ;;  %v3159_v3 = vmax.f32 %v3063_v45, %v3095_v0  ;;  %v9526_v61 = vld [vmem:[#allocation16_spill] sm:$0xff]  ;;  %v9531_v31 = vld [vmem:[#allocation67_spill] sm:$0xff]  ;;  %v3032_v18 = vld [vmem:[#allocation2 + $0xd1] sm:$0xff]  ;;  %v9533_v0 = vpack.c.bf16 %v9476_v11, %v9475_v34  ;;  %3687 = vst [vmem:[#allocation2 + $0xb8] sm:$0xff] %v7943_v36 }
 0x224   : > { %v9528_v24 = vpack.c.bf16 %v9526_v61, %v9527_v4  ;;  %v3158_v42 = vmax.f32 %v3030_v1, %v3126_v51  ;;  %v9529_v49 = vld [vmem:[#allocation68_spill] sm:$0xff]  ;;  %vm9532_vm13 = vnez %v9531_v31  ;;  %v3225_v22 = vld [vmem:[#allocation2 + $0xda] sm:$0xff]  ;;  %5417 = vmatprep.mubr.bf16.mxu1 %v3402_v20  ;;  %v7952_v62 = vmax.f32 %v3188_v54, %v3348_v28 }
 0x225   : > { %vm9530_vm5 = vnez %v9529_v49  ;;  %v3318_v9 = vsel %vm9532_vm13, %v3286_v46, -1e+30  ;;  %v3191_v45 = vmax.f32 %v7818_v19, %v3159_v3  ;;  %v3065_v1 = vsel %vm7310_vm0, %v3033_v30, -1e+30  ;;  %v3097_v50 = vld [vmem:[#allocation2 + $0xd7] sm:$0xff]  ;;  %v3288_v51 = vld [vmem:[#allocation2 + $0xce] sm:$0xff] }
 0x226   : > { %5354 = vmatmul.mubr.bf16.vlgmr.msra.gmra.mrb[32].mxu0 %v9528_v24  ;;  %v3255_v35 = vsel %vm9530_vm5, %v3223_v2, -1e+30  ;;  %v3350_v6 = vmax.f32 %v3222_v5, %v3318_v9  ;;  %v3224_v2 = vld [vmem:[#allocation2 + $0xd2] sm:$0xff]  ;;  %v3190_v46 = vmax.f32 %v7579_v44, %v3158_v42  ;;  %vm9534_vm13 = vnez %v9358_v23  ;;  %v3035_v28 = vld [vmem:[#allocation2 + $0xe9] sm:$0xff]  ;;  %v3098_v20 = vld [vmem:[#allocation2 + $0xdf] sm:$0xff] }
 0x227   : > { %5357 = vmatprep.mubr.bf16.mxu0 %v9533_v0  ;;  %v3351_v61 = vmax.f32 %v3255_v35, %v3287_v26  ;;  %v3128_v34 = vsel %vm9534_vm13, %v3096_v14, -1e+30  ;;  %v3161_v11 = vmax.f32 %v3065_v1, %v3097_v50  ;;  %v3403_v19 = vpack.c.bf16 %v7943_v36, %v7952_v62  ;;  %v3034_v44 = vld [vmem:[#allocation2 + $0xe1] sm:$0xff]  ;;  %v3227_v35 = vld [vmem:[#allocation2 + $0xea] sm:$0xff]  ;;  %v3289_v4 = vld [vmem:[#allocation2 + $0xd6] sm:$0xff] }
 0x228   : > { %v3160_v5 = vmax.f32 %v3032_v18, %v3128_v34  ;;  %vm9535_vm0 = vnez %v9370_v27  ;;  %vm9536_vm5 = vnez %v9366_v41  ;;  %v7967_v26 = vmax.f32 %v3190_v46, %v3350_v6  ;;  %v3099_v42 = vld [vmem:[#allocation2 + $0xe7] sm:$0xff]  ;;  %v3290_v9 = vld [vmem:[#allocation2 + $0xde] sm:$0xff]  ;;  %v7977_v6 = vld [vmem:[#allocation2 + $0xef] sm:$0xff] }
 0x229   : > { %v3257_v54 = vsel %vm9535_vm0, %v3225_v22, -1e+30  ;;  %v3320_v3 = vsel %vm9536_vm5, %v3288_v51, -1e+30  ;;  %v7969_v30 = vmax.f32 %v3191_v45, %v3351_v61  ;;  %v3193_v14 = vmax.f32 %v7841_v25, %v3161_v11  ;;  %v3226_v50 = vld [vmem:[#allocation2 + $0xe2] sm:$0xff]  ;;  %5418 = vmatmul.mubr.bf16.gmra.mrb[0].mxu1 %v3403_v19  ;;  %v9539_v51 = vld [vmem:[#allocation73_spill] sm:$0xff] }
 0x22a   : > { %v3352_v24 = vmax.f32 %v3224_v2, %v3320_v3  ;;  %v3192_v18 = vmax.f32 %v7656_v43, %v3160_v5  ;;  %v3353_v0 = vmax.f32 %v3257_v54, %v3289_v4  ;;  %vm9537_vm0 = vnez %v9401_v12  ;;  %v3291_v46 = vld [vmem:[#allocation2 + $0xe6] sm:$0xff]  ;;  %v7984_v61 = vld [vmem:[#allocation2 + $0xee] sm:$0xff] }
 0x22b   : > { %v3067_v22 = vsel %vm9537_vm0, %v3035_v28, -1e+30  ;;  %vm9538_vm5 = vnez %v9396_v57  ;;  %v3404_v25 = vpack.c.bf16 %v7969_v30, %v7967_v26  ;;  %3689 = vst [vmem:[#allocation2 + $0xc8] sm:$0xff] %v7969_v30  ;;  %vm9540_vm13 = vnez %v9539_v51  ;;  %v9541_v28 = vld [vmem:[#allocation72_spill] sm:$0xff]  ;;  %v3708_v5 = vld [vmem:[#allocation2 + $0x40] sm:$0xff]  ;;  %v8000_v4 = vld [vmem:[#allocation2 + $0x50] sm:$0xff] }
 0x22c   : > { %v3130_v1 = vsel %vm9538_vm5, %v3098_v20, -1e+30  ;;  %v3163_v2 = vmax.f32 %v3067_v22, %v3099_v42  ;;  %v3259_v43 = vsel %vm9540_vm13, %v3227_v35, -1e+30  ;;  %v7986_v34 = vmax.f32 %v3192_v18, %v3352_v24  ;;  %v8002_v24 = vld [vmem:[#allocation2 + $0x60] sm:$0xff]  ;;  %v9544_v42 = vld [vmem:[#allocation26_spill] sm:$0xff] }
 0x22d   : > { %v3162_v45 = vmax.f32 %v3034_v44, %v3130_v1  ;;  %v7988_v11 = vmax.f32 %v3193_v14, %v3353_v0  ;;  %vm9542_vm5 = vnez %v9541_v28  ;;  %v3355_v19 = vmax.f32 %v3259_v43, %v3291_v46  ;;  %5421 = vmatprep.mubr.bf16.mxu1 %v3404_v25  ;;  %v9551_v43 = vld [vmem:[#allocation58_spill] sm:$0xff] }
 0x22e   : > { %v3322_v20 = vsel %vm9542_vm5, %v3290_v9, -1e+30  ;;  %v9543_v54 = vpack.c.bf16 %v9478_v52, %v9477_v29  ;;  %v3195_v44 = vmax.f32 %v7844_v55, %v3163_v2  ;;  %v3132_v14 = vsel %vm7512_vm11, %v7977_v6, -1e+30  ;;  %v9545_v9 = vld [vmem:[#allocation24_spill] sm:$0xff]  ;;  %v9548_v55 = vld [vmem:[#allocation75_spill] sm:$0xff] }
 0x22f   : > { %v3194_v3 = vmax.f32 %v7679_v7, %v3162_v45  ;;  %v3354_v35 = vmax.f32 %v3226_v50, %v3322_v20  ;;  %v9546_v18 = vpack.c.bf16 %v9544_v42, %v9545_v9  ;;  %v3405_v52 = vpack.c.bf16 %v7988_v11, %v7986_v34  ;;  %3691 = vst [vmem:[#allocation2 + $0xd8] sm:$0xff] %v7988_v11 }
 0x230   : > { %5358 = vmatmul.mubr.bf16.gmra.mrb[36].mxu0 %v9543_v54  ;;  %v9547_v7 = vmax.f32 %v7831_v37, %v7669_v40  ;;  %vm9549_vm11 = vnez %v9548_v55  ;;  %v2911_v22 = vmax.f32 %v7857_v15, %v7865_v21  ;;  %v8023_v50 = vmax.f32 %v3195_v44, %v3355_v19 }
 0x231   : > { %5361 = vmatprep.mubr.bf16.mxu0 %v9546_v18  ;;  %v3324_v0 = vsel %vm9549_vm11, %v7984_v61, -1e+30  ;;  %v8021_v1 = vmax.f32 %v3194_v3, %v3354_v35  ;;  %v9550_v6 = vmax.f32 %v7647_v60, %v7669_v40  ;;  %v3740_v37 = vmax.f32 %v7850_v32, %v3708_v5  ;;  %v8042_v40 = vld [vmem:[#allocation2 + $0x38] sm:$0xff]  ;;  %5422 = vmatmul.mubr.bf16.gmra.mrb[4].mxu1 %v3405_v52 }
 0x232   : > { %v8014_v29 = vmax.f32 %v9547_v7, %v7865_v21  ;;  %v8032_v45 = vmax.f32 %v2911_v22, %v7727_v48  ;;  %v3742_v2 = vmax.f32 %v3708_v5, %v8000_v4  ;;  %v3744_v15 = vmax.f32 %v8000_v4, %v8002_v24 }
 0x233   : > { %v2879_v25 = vmax.f32 %v9550_v6, %v7865_v21  ;;  %v3746_v46 = vmax.f32 %v8002_v24, %v9551_v43  ;;  %v3406_v61 = vpack.c.bf16 %v8023_v50, %v8021_v1  ;;  %v3748_v21 = vmax.f32 %v9551_v43, %v7822_v17 }
 0x234   : > { %3005 = vst [vmem:[#allocation2 + $0xf8] sm:$0xff] %v8014_v29  ;;  %v3750_v20 = vmax.f32 %v7822_v17, %v7911_v47  ;;  %3007 = vst [vmem:[#allocation2 + $0x108] sm:$0xff] %v8032_v45  ;;  %v3752_v19 = vmax.f32 %v7911_v47, %v7925_v33  ;;  %v3754_v54 = vmax.f32 %v7925_v33, %v7952_v62 }
 0x235   : > { %v2913_v60 = vmax.f32 %v2879_v25, %v7727_v48  ;;  %v3756_v3 = vmax.f32 %v7952_v62, %v7967_v26  ;;  %v3758_v44 = vmax.f32 %v7967_v26, %v7986_v34  ;;  %5425 = vmatprep.mubr.bf16.mxu1 %v3406_v61  ;;  %v9552_v9 = vmax.f32 %v7727_v48, %v7846_v59  ;;  %v9555_v61 = vld [vmem:[#allocation25_spill] sm:$0xff] }
 0x236   : > { %v9553_v7 = vmax.f32 %v7727_v48, %v7848_v10  ;;  %v9554_v52 = vmax.f32 %v7846_v59, %v7850_v32  ;;  %v8078_v25 = vmax.f32 %v3740_v37, %v8000_v4  ;;  %v8091_v55 = vmax.f32 %v3746_v46, %v7822_v17  ;;  %v9559_v37 = vld [vmem:[#allocation30_spill] sm:$0xff] }
 0x237   : > { %v8058_v35 = vmax.f32 %v2913_v60, %v7727_v48  ;;  %v3770_v18 = vmax.f32 %v9552_v9, %v7850_v32  ;;  %v9556_v60 = vld [vmem:[#allocation23_spill] sm:$0xff]  ;;  %v8085_v9 = vmax.f32 %v3742_v2, %v8002_v24  ;;  %v8094_v59 = vmax.f32 %v3748_v21, %v7911_v47  ;;  %v9558_v32 = vld [vmem:[#allocation34_spill] sm:$0xff] }
 0x238   : > { %v8070_v22 = vmax.f32 %v9553_v7, %v8042_v40  ;;  %v8075_v6 = vmax.f32 %v9554_v52, %v3708_v5  ;;  %v9557_v42 = vpack.c.bf16 %v9555_v61, %v9556_v60  ;;  %v8088_v7 = vmax.f32 %v3744_v15, %v9551_v43 }
 0x239   : > { %3009 = vst [vmem:[#allocation2 + $0x118] sm:$0xff] %v8058_v35  ;;  %v9560_v52 = vpack.c.bf16 %v9558_v32, %v9559_v37  ;;  %v8103_v61 = vmax.f32 %v3752_v19, %v7952_v62  ;;  %v8106_v2 = vmax.f32 %v3754_v54, %v7967_v26  ;;  %v8109_v15 = vmax.f32 %v3756_v3, %v7986_v34 }
 0x23a   : > { %5362 = vmatmul.mubr.bf16.gmra.mrb[40].mxu0 %v9557_v42  ;;  %v8100_v42 = vmax.f32 %v3750_v20, %v7925_v33  ;;  %v8112_v38 = vmax.f32 %v3758_v44, %v8021_v1  ;;  %v8114_v32 = vmax.f32 %v3770_v18, %v3708_v5 }
 0x23b   : > { %5365 = vmatprep.mubr.bf16.mxu0 %v9560_v52  ;;  %v3036_v46 = vld [vmem:[#allocation2 + $0xf1] sm:$0xff]  ;;  %v3037_v60 = vld [vmem:[#allocation2 + $0xf9] sm:$0xff]  ;;  %v3038_v5 = vld [vmem:[#allocation2 + $0x101] sm:$0xff] }
 0x23c   : > { %v3101_v21 = vld [vmem:[#allocation2 + $0xf7] sm:$0xff]  ;;  %v3069_v20 = vsel %vm7525_vm10, %v3037_v60, -1e+30  ;;  %v3164_v52 = vmax.f32 %v3036_v46, %v3132_v14  ;;  %v3039_v18 = vld [vmem:[#allocation2 + $0x109] sm:$0xff]  ;;  %v3102_v53 = vld [vmem:[#allocation2 + $0xff] sm:$0xff]  ;;  %v3812_v14 = vmax.f32 %v8088_v7, %v7822_v17  ;;  %3898 = vst [vmem:[#allocation2 + $0x20] sm:$0xff] %v8114_v32 }
 0x23d   : > { %v3228_v19 = vld [vmem:[#allocation2 + $0xf2] sm:$0xff]  ;;  %v3229_v28 = vld [vmem:[#allocation2 + $0xfa] sm:$0xff]  ;;  %v3165_v57 = vmax.f32 %v3069_v20, %v3101_v21  ;;  %v3071_v54 = vsel %vm7564_vm15, %v3039_v18, -1e+30  ;;  %v3103_v41 = vld [vmem:[#allocation2 + $0x107] sm:$0xff] }
 0x23e   : > { %v3293_v51 = vld [vmem:[#allocation2 + $0xf6] sm:$0xff]  ;;  %v3261_v44 = vsel %vm7535_vm1, %v3229_v28, -1e+30  ;;  %v3356_v27 = vmax.f32 %v3228_v19, %v3324_v0  ;;  %v3196_v46 = vmax.f32 %v7880_v56, %v3164_v52  ;;  %v3134_v21 = vsel %vm7552_vm6, %v3102_v53, -1e+30  ;;  %v3230_v20 = vld [vmem:[#allocation2 + $0x102] sm:$0xff] }
 0x23f   : > { %v3357_v60 = vmax.f32 %v3261_v44, %v3293_v51  ;;  %v3197_v28 = vmax.f32 %v8014_v29, %v3165_v57  ;;  %v3166_v0 = vmax.f32 %v3038_v5, %v3134_v21  ;;  %v3167_v19 = vmax.f32 %v3071_v54, %v3103_v41  ;;  %v3231_v3 = vld [vmem:[#allocation2 + $0x10a] sm:$0xff]  ;;  %v3294_v12 = vld [vmem:[#allocation2 + $0xfe] sm:$0xff] }
 0x240   : > { %v3295_v31 = vld [vmem:[#allocation2 + $0x106] sm:$0xff]  ;;  %v8134_v56 = vmax.f32 %v3196_v46, %v3356_v27  ;;  %v3263_v52 = vsel %vm7606_vm4, %v3231_v3, -1e+30  ;;  %v3326_v18 = vsel %vm7592_vm7, %v3294_v12, -1e+30  ;;  %v3040_v53 = vld [vmem:[#allocation2 + $0x111] sm:$0xff]  ;;  %v3814_v57 = vmax.f32 %v8091_v55, %v7911_v47 }
 0x241   : > { %v3041_v23 = vld [vmem:[#allocation2 + $0x119] sm:$0xff]  ;;  %v8142_v41 = vmax.f32 %v3197_v28, %v3357_v60  ;;  %v3198_v29 = vmax.f32 %v7889_v8, %v3166_v0  ;;  %v3199_v54 = vmax.f32 %v8032_v45, %v3167_v19  ;;  %v3358_v7 = vmax.f32 %v3230_v20, %v3326_v18  ;;  %v3104_v3 = vld [vmem:[#allocation2 + $0x10f] sm:$0xff] }
 0x242   : > { %v9567_v27 = vpack.c.bf16 %v9497_v58, %v9496_v13  ;;  %v3105_v5 = vld [vmem:[#allocation2 + $0x117] sm:$0xff]  ;;  %v3359_v12 = vmax.f32 %v3263_v52, %v3295_v31  ;;  %v3073_v21 = vsel %vm7734_vm2, %v3041_v23, -1e+30  ;;  %v3136_v55 = vsel %vm7713_vm8, %v3104_v3, -1e+30  ;;  %v3296_v28 = vld [vmem:[#allocation2 + $0x10e] sm:$0xff] }
 0x243   : > { %v3232_v46 = vld [vmem:[#allocation2 + $0x112] sm:$0xff]  ;;  %v3233_v60 = vld [vmem:[#allocation2 + $0x11a] sm:$0xff]  ;;  %v3762_v8 = vmax.f32 %v8021_v1, %v8134_v56  ;;  %v3407_v45 = vpack.c.bf16 %v8142_v41, %v8134_v56  ;;  %v3390_v13 = vmax.f32 %v3198_v29, %v3358_v7  ;;  %v3168_v58 = vmax.f32 %v3040_v53, %v3136_v55 }
 0x244   : > { %5366 = vmatmul.mubr.bf16.gmra.mrb[44].mxu0 %v9567_v27  ;;  %v3169_v20 = vmax.f32 %v3073_v21, %v3105_v5  ;;  %v3297_v0 = vld [vmem:[#allocation2 + $0x116] sm:$0xff]  ;;  %v8157_v19 = vmax.f32 %v3199_v54, %v3359_v12  ;;  %v9569_v31 = vld [vmem:[#allocation15_spill] sm:$0xff]  ;;  %v3265_v23 = vsel %vm7745_vm14, %v3233_v60, -1e+30  ;;  %v3328_v18 = vsel %vm7717_vm3, %v3296_v28, -1e+30 }
 0x245   : > { %v9571_v27 = vmax.f32 %v7986_v34, %v8021_v1  ;;  %5426 = vmatmul.mubr.bf16.gmra.mrb[8].mxu1 %v3407_v45  ;;  %v3200_v44 = vmax.f32 %v7903_v16, %v3168_v58  ;;  %v3360_v29 = vmax.f32 %v3232_v46, %v3328_v18  ;;  %v3361_v7 = vmax.f32 %v3265_v23, %v3297_v0  ;;  %v9682_v51 = vld [vmem:[#allocation82_spill] sm:$0xff] }
 0x246   : > { %v3201_v53 = vmax.f32 %v8058_v35, %v3169_v20  ;;  %v3408_v54 = vpack.c.bf16 %v8157_v19, %v3390_v13  ;;  %v3764_v5 = vmax.f32 %v8134_v56, %v3390_v13  ;;  %v3796_v12 = vmax.f32 %v3762_v8, %v3390_v13  ;;  %v3835_v35 = vld [vmem:[#allocation2 + $0x48] sm:$0xff] }
 0x247   : > { %v3794_v3 = vmax.f32 %v9571_v27, %v8134_v56  ;;  %v3816_v21 = vmax.f32 %v8094_v59, %v7925_v33  ;;  %v3392_v55 = vmax.f32 %v3200_v44, %v3360_v29  ;;  %v3818_v28 = vmax.f32 %v8100_v42, %v7952_v62  ;;  %v8274_v29 = vld [vmem:[#allocation2 + $0xa8] sm:$0xff] }
 0x248   : > { %v8173_v60 = vmax.f32 %v3201_v53, %v3361_v7  ;;  %v3820_v16 = vmax.f32 %v8103_v61, %v7967_v26  ;;  %5429 = vmatprep.mubr.bf16.mxu1 %v3408_v54  ;;  %v3822_v46 = vmax.f32 %v8106_v2, %v7986_v34  ;;  %v3824_v8 = vmax.f32 %v8109_v15, %v8021_v1 }
 0x249   : > { %v3826_v59 = vmax.f32 %v8112_v38, %v8134_v56  ;;  %v3828_v44 = vmax.f32 %v3794_v3, %v3390_v13  ;;  %v3798_v42 = vmax.f32 %v3764_v5, %v3392_v55  ;;  %v3830_v58 = vmax.f32 %v3796_v12, %v3392_v55 }
 0x24a   : > { %v3409_v45 = vpack.c.bf16 %v8173_v60, %v3392_v55  ;;  %3699 = vst [vmem:[#allocation2 + $0x118] sm:$0xff] %v8173_v60  ;;  %v8188_v61 = vmax.f32 %v8070_v22, %v3835_v35  ;;  %v8192_v20 = vmax.f32 %v8114_v32, %v8000_v4  ;;  %v9572_v2 = vmax.f32 %v8075_v6, %v8000_v4  ;;  %v8220_v6 = vld [vmem:[#allocation2 + $0x58] sm:$0xff] }
 0x24b   : > { %v9573_v38 = vmax.f32 %v8078_v25, %v8002_v24  ;;  %v3832_v23 = vmax.f32 %v3798_v42, %v7727_v48  ;;  %v9574_v22 = vmax.f32 %v8085_v9, %v9551_v43  ;;  %v8214_v27 = vmax.f32 %v3812_v14, %v7911_v47  ;;  %v3839_v47 = vld [vmem:[#allocation2 + $0x68] sm:$0xff]  ;;  %v8255_v14 = vld [vmem:[#allocation2 + $0x98] sm:$0xff] }
 0x24c   : > { %v8198_v15 = vmax.f32 %v9572_v2, %v8002_v24  ;;  %v8217_v4 = vmax.f32 %v3814_v57, %v7925_v33  ;;  %v8223_v24 = vmax.f32 %v3816_v21, %v7952_v62  ;;  %v8226_v25 = vmax.f32 %v3818_v28, %v7967_v26  ;;  %3899 = vst [vmem:[#allocation2 + $0x28] sm:$0xff] %v8188_v61  ;;  %v8238_v33 = vld [vmem:[#allocation2 + $0x78] sm:$0xff]  ;;  %v8240_v62 = vld [vmem:[#allocation2 + $0x88] sm:$0xff]  ;;  %v9576_v2 = vld [vmem:[#allocation29_spill] sm:$0xff] }
 0x24d   : > { %v8204_v0 = vmax.f32 %v9573_v38, %v9551_v43  ;;  %v8211_v18 = vmax.f32 %v9574_v22, %v7822_v17  ;;  %v8229_v43 = vmax.f32 %v3820_v16, %v7986_v34  ;;  %v8232_v17 = vmax.f32 %v3822_v46, %v8021_v1  ;;  %3900 = vst [vmem:[#allocation2 + $0x30] sm:$0xff] %v8192_v20  ;;  %v3994_v16 = vld [vmem:[#allocation2 + $0x1f] sm:$0xff] }
 0x24e   : > { %3902 = vst [vmem:[#allocation2 + $0x40] sm:$0xff] %v8198_v15  ;;  %5430 = vmatmul.mubr.bf16.gmra.mrb[12].mxu1 %v3409_v45  ;;  %v8243_v26 = vmax.f32 %v3824_v8, %v8134_v56  ;;  %v8245_v34 = vmax.f32 %v3826_v59, %v3390_v13  ;;  %v8247_v1 = vmax.f32 %v3828_v44, %v3392_v55  ;;  %3908 = vst [vmem:[#allocation2 + $0x70] sm:$0xff] %v8214_v27  ;;  %v4186_v46 = vld [vmem:[#allocation2 + $0x1e] sm:$0xff] }
 0x24f   : > { %3904 = vst [vmem:[#allocation2 + $0x50] sm:$0xff] %v8204_v0  ;;  %v8250_v9 = vmax.f32 %v3830_v58, %v7727_v48  ;;  %3906 = vst [vmem:[#allocation2 + $0x60] sm:$0xff] %v8211_v18  ;;  %v8258_v57 = vmax.f32 %v3832_v23, %v7727_v48  ;;  %v3739_v56 = vmax.f32 %v7848_v10, %v8042_v40  ;;  %vm9577_vm3 = vnez %v9576_v2  ;;  %v9582_v2 = vld [vmem:[#allocation35_spill] sm:$0xff] }
 0x250   : > { %3910 = vst [vmem:[#allocation2 + $0x80] sm:$0xff] %v8217_v4  ;;  %3912 = vst [vmem:[#allocation2 + $0x90] sm:$0xff] %v8223_v24  ;;  %v3741_v13 = vmax.f32 %v8042_v40, %v3835_v35  ;;  %v3743_v48 = vmax.f32 %v3835_v35, %v8220_v6  ;;  %v3745_v3 = vmax.f32 %v8220_v6, %v3839_v47  ;;  %v4026_v38 = vsel %vm9577_vm3, %v3994_v16, -1e+30 }
 0x251   : > { %9575 = vst [vmem:[#allocation18_spill] sm:$0xff] %v8258_v57  ;;  %3914 = vst [vmem:[#allocation2 + $0xa0] sm:$0xff] %v8226_v25  ;;  %v3747_v53 = vmax.f32 %v3839_v47, %v8238_v33  ;;  %v3749_v10 = vmax.f32 %v8238_v33, %v8240_v62  ;;  %v8281_v40 = vmax.f32 %v8188_v61, %v8220_v6  ;;  %vm9583_vm8 = vnez %v9582_v2 }
 0x252   : > { %3916 = vst [vmem:[#allocation2 + $0xb0] sm:$0xff] %v8229_v43  ;;  %3918 = vst [vmem:[#allocation2 + $0xc0] sm:$0xff] %v8232_v17  ;;  %v3773_v7 = vmax.f32 %v3739_v56, %v3835_v35  ;;  %v3775_v54 = vmax.f32 %v3741_v13, %v8220_v6  ;;  %v3751_v5 = vmax.f32 %v8240_v62, %v8255_v14  ;;  %v8299_v13 = vld [vmem:[#allocation2 + $0xb8] sm:$0xff] }
 0x253   : > { %3920 = vst [vmem:[#allocation2 + $0xd0] sm:$0xff] %v8243_v26  ;;  %3922 = vst [vmem:[#allocation2 + $0xe0] sm:$0xff] %v8245_v34  ;;  %v3777_v12 = vmax.f32 %v3743_v48, %v3839_v47  ;;  %v3779_v21 = vmax.f32 %v3745_v3, %v8238_v33  ;;  %v3781_v55 = vmax.f32 %v3747_v53, %v8240_v62  ;;  %v3930_v45 = vld [vmem:[#allocation2 + $0x21] sm:$0xff] }
 0x254   : > { %3924 = vst [vmem:[#allocation2 + $0xf0] sm:$0xff] %v8247_v1  ;;  %3926 = vst [vmem:[#allocation2 + $0x100] sm:$0xff] %v8250_v9  ;;  %v3783_v28 = vmax.f32 %v3749_v10, %v8255_v14  ;;  %v3807_v8 = vmax.f32 %v3773_v7, %v8220_v6  ;;  %v3809_v59 = vmax.f32 %v3775_v54, %v3839_v47  ;;  %v3931_v42 = vld [vmem:[#allocation2 + $0x29] sm:$0xff]  ;;  %v9578_v6 = vld [vmem:[#allocation27_spill] sm:$0xff] }
 0x255   : > { %3928 = vst [vmem:[#allocation2 + $0x110] sm:$0xff] %v8258_v57  ;;  %3901 = vst [vmem:[#allocation2 + $0x38] sm:$0xff] %v8281_v40  ;;  %v3785_v35 = vmax.f32 %v3751_v5, %v8274_v29  ;;  %v3753_v44 = vmax.f32 %v8255_v14, %v8274_v29  ;;  %v3995_v58 = vld [vmem:[#allocation2 + $0x27] sm:$0xff]  ;;  %v3811_v23 = vmax.f32 %v3777_v12, %v8238_v33  ;;  %vm9579_vm14 = vnez %v9578_v6  ;;  %v3996_v57 = vld [vmem:[#allocation2 + $0x2f] sm:$0xff] }
 0x256   : > { %v3813_v22 = vmax.f32 %v3779_v21, %v8240_v62  ;;  %v3815_v56 = vmax.f32 %v3781_v55, %v8255_v14  ;;  %v3963_v48 = vsel %vm9579_vm14, %v3931_v42, -1e+30  ;;  %v4058_v3 = vmax.f32 %v3930_v45, %v4026_v38  ;;  %v4122_v53 = vld [vmem:[#allocation2 + $0x22] sm:$0xff]  ;;  %v4123_v10 = vld [vmem:[#allocation2 + $0x2a] sm:$0xff] }
 0x257   : > { %v4187_v7 = vld [vmem:[#allocation2 + $0x26] sm:$0xff]  ;;  %v8303_v54 = vmax.f32 %v3807_v8, %v3839_v47  ;;  %v8306_v5 = vmax.f32 %v3809_v59, %v8238_v33  ;;  %v4059_v16 = vmax.f32 %v3963_v48, %v3995_v58  ;;  %v4218_v55 = vsel %vm9583_vm8, %v4186_v46, -1e+30  ;;  %v4188_v52 = vld [vmem:[#allocation2 + $0x2e] sm:$0xff]  ;;  %v9584_v8 = vld [vmem:[#allocation38_spill] sm:$0xff] }
 0x258   : > { %v9580_v12 = vld [vmem:[#allocation36_spill] sm:$0xff]  ;;  %v8313_v42 = vmax.f32 %v3811_v23, %v8240_v62  ;;  %v4090_v45 = vmax.f32 %v8114_v32, %v4058_v3  ;;  %v4250_v38 = vmax.f32 %v4122_v53, %v4218_v55  ;;  %vm9585_vm14 = vnez %v9584_v8  ;;  %v8322_v58 = vld [vmem:[#allocation2 + $0xd8] sm:$0xff] }
 0x259   : > { %vm9581_vm3 = vnez %v9580_v12  ;;  %v4028_v33 = vsel %vm9585_vm14, %v3996_v57, -1e+30  ;;  %3903 = vst [vmem:[#allocation2 + $0x48] sm:$0xff] %v8303_v54  ;;  %3905 = vst [vmem:[#allocation2 + $0x58] sm:$0xff] %v8306_v5  ;;  %v8320_v59 = vld [vmem:[#allocation2 + $0xc8] sm:$0xff]  ;;  %v4091_v46 = vmax.f32 %v8188_v61, %v4059_v16  ;;  %v8329_v32 = vmax.f32 %v3813_v22, %v8255_v14 }
 0x25a   : > { %v4155_v21 = vsel %vm9581_vm3, %v4123_v10, -1e+30  ;;  %v9586_v6 = vld [vmem:[#allocation40_spill] sm:$0xff]  ;;  %3907 = vst [vmem:[#allocation2 + $0x68] sm:$0xff] %v8313_v42  ;;  %v8332_v57 = vmax.f32 %v3815_v56, %v7927_v39  ;;  %v4282_v23 = vmax.f32 %v4090_v45, %v4250_v38  ;;  %v3817_v48 = vmax.f32 %v3783_v28, %v8274_v29  ;;  %v9590_v45 = vld [vmem:[#allocation41_spill] sm:$0xff] }
 0x25b   : > { %v4251_v47 = vmax.f32 %v4155_v21, %v4187_v7  ;;  %vm9587_vm8 = vnez %v9586_v6  ;;  %v3819_v3 = vmax.f32 %v3785_v35, %v8299_v13  ;;  %v8337_v53 = vmax.f32 %v3753_v44, %v8299_v13  ;;  %3909 = vst [vmem:[#allocation2 + $0x78] sm:$0xff] %v8329_v32  ;;  %v9588_v35 = vld [vmem:[#allocation39_spill] sm:$0xff]  ;;  %v9592_v6 = vld [vmem:[#allocation42_spill] sm:$0xff] }
 0x25c   : > { %v4220_v62 = vsel %vm9587_vm8, %v4188_v52, -1e+30  ;;  %v3932_v10 = vld [vmem:[#allocation2 + $0x31] sm:$0xff]  ;;  %v3933_v7 = vld [vmem:[#allocation2 + $0x39] sm:$0xff]  ;;  %3911 = vst [vmem:[#allocation2 + $0x88] sm:$0xff] %v8332_v57  ;;  %v3755_v39 = vmax.f32 %v8274_v29, %v8299_v13  ;;  %v3757_v14 = vmax.f32 %v8299_v13, %v8320_v59  ;;  %v3759_v28 = vmax.f32 %v8320_v59, %v8322_v58 }
 0x25d   : > { %v4283_v61 = vmax.f32 %v4091_v46, %v4251_v47  ;;  %v3997_v52 = vld [vmem:[#allocation2 + $0x37] sm:$0xff]  ;;  %vm9589_vm3 = vnez %v9588_v35  ;;  %v4060_v22 = vmax.f32 %v3932_v10, %v4028_v33  ;;  %v8350_v21 = vmax.f32 %v3817_v48, %v7943_v36  ;;  %v3998_v47 = vld [vmem:[#allocation2 + $0x3f] sm:$0xff] }
 0x25e   : > { %v3965_v44 = vsel %vm9589_vm3, %v3933_v7, -1e+30  ;;  %v4124_v56 = vld [vmem:[#allocation2 + $0x32] sm:$0xff]  ;;  %v4125_v16 = vld [vmem:[#allocation2 + $0x3a] sm:$0xff]  ;;  %v8353_v2 = vmax.f32 %v3819_v3, %v7969_v30  ;;  %vm9591_vm14 = vnez %v9590_v45  ;;  %vm9593_vm8 = vnez %v9592_v6 }
 0x25f   : > { %v4189_v12 = vld [vmem:[#allocation2 + $0x36] sm:$0xff]  ;;  %v4314_v29 = vpack.c.bf16 %v4283_v61, %v4282_v23  ;;  %v4061_v55 = vmax.f32 %v3965_v44, %v3997_v52  ;;  %v4157_v13 = vsel %vm9591_vm14, %v4125_v16, -1e+30  ;;  %v4252_v38 = vmax.f32 %v4124_v56, %v4220_v62  ;;  %v4190_v8 = vld [vmem:[#allocation2 + $0x3e] sm:$0xff]  ;;  %3913 = vst [vmem:[#allocation2 + $0x98] sm:$0xff] %v8350_v21 }
 0x260   : > { %v4092_v46 = vmax.f32 %v8192_v20, %v4060_v22  ;;  %v4253_v33 = vmax.f32 %v4157_v13, %v4189_v12  ;;  %v4030_v10 = vsel %vm9593_vm8, %v3998_v47, -1e+30  ;;  %v9594_v7 = vld [vmem:[#allocation47_spill] sm:$0xff]  ;;  %3915 = vst [vmem:[#allocation2 + $0xa8] sm:$0xff] %v8353_v2  ;;  %v3935_v62 = vld [vmem:[#allocation2 + $0x49] sm:$0xff]  ;;  %v3821_v20 = vmax.f32 %v8337_v53, %v8320_v59  ;;  %v3936_v45 = vld [vmem:[#allocation2 + $0x51] sm:$0xff] }
 0x261   : > { %vm9595_vm3 = vnez %v9594_v7  ;;  %5449 = vmatprep.mubr.bf16.mxu1 %v4314_v29  ;;  %v4093_v30 = vmax.f32 %v8281_v40, %v4061_v55  ;;  %v3934_v23 = vld [vmem:[#allocation2 + $0x41] sm:$0xff]  ;;  %v8368_v3 = vmax.f32 %v3755_v39, %v8320_v59  ;;  %v8371_v61 = vmax.f32 %v3757_v14, %v8322_v58  ;;  %v9596_v35 = vld [vmem:[#allocation49_spill] sm:$0xff]  ;;  %v3937_v14 = vld [vmem:[#allocation2 + $0x59] sm:$0xff] }
 0x262   : > { %v4222_v36 = vsel %vm9595_vm3, %v4190_v8, -1e+30  ;;  %v3999_v48 = vld [vmem:[#allocation2 + $0x47] sm:$0xff]  ;;  %v4284_v52 = vmax.f32 %v4092_v46, %v4252_v38  ;;  %vm9597_vm14 = vnez %v9596_v35  ;;  %v4062_v22 = vmax.f32 %v3934_v23, %v4030_v10  ;;  %v4000_v13 = vld [vmem:[#allocation2 + $0x4f] sm:$0xff]  ;;  %v4001_v6 = vld [vmem:[#allocation2 + $0x57] sm:$0xff] }
 0x263   : > { %v3967_v44 = vsel %vm9597_vm14, %v3935_v62, -1e+30  ;;  %v4126_v56 = vld [vmem:[#allocation2 + $0x42] sm:$0xff]  ;;  %v4127_v16 = vld [vmem:[#allocation2 + $0x4a] sm:$0xff]  ;;  %v8376_v12 = vmax.f32 %v3759_v28, %v8023_v50  ;;  %v4285_v29 = vmax.f32 %v4093_v30, %v4253_v33  ;;  %v4128_v7 = vld [vmem:[#allocation2 + $0x52] sm:$0xff] }
 0x264   : > { %v4191_v40 = vld [vmem:[#allocation2 + $0x46] sm:$0xff]  ;;  %v4063_v55 = vmax.f32 %v3967_v44, %v3999_v48  ;;  %v4254_v39 = vmax.f32 %v4126_v56, %v4222_v36  ;;  %v4094_v38 = vmax.f32 %v8198_v15, %v4062_v22  ;;  %v9600_v8 = vld [vmem:[#allocation53_spill] sm:$0xff]  ;;  %v4129_v36 = vld [vmem:[#allocation2 + $0x5a] sm:$0xff] }
 0x265   : > { %v9598_v53 = vld [vmem:[#allocation51_spill] sm:$0xff]  ;;  %vm9601_vm3 = vnez %v9600_v8  ;;  %v9602_v10 = vld [vmem:[#allocation52_spill] sm:$0xff]  ;;  %v4315_v33 = vpack.c.bf16 %v4285_v29, %v4284_v52  ;;  %v4193_v35 = vld [vmem:[#allocation2 + $0x56] sm:$0xff] }
 0x266   : > { %vm9599_vm8 = vnez %v9598_v53  ;;  %v3969_v46 = vsel %vm9601_vm3, %v3937_v14, -1e+30  ;;  %vm9603_vm14 = vnez %v9602_v10  ;;  %v4095_v30 = vmax.f32 %v8303_v54, %v4063_v55  ;;  %v4192_v48 = vld [vmem:[#allocation2 + $0x4e] sm:$0xff]  ;;  %v9604_v56 = vld [vmem:[#allocation55_spill] sm:$0xff]  ;;  %v9606_v22 = vld [vmem:[#allocation54_spill] sm:$0xff] }
 0x267   : > { %v4159_v59 = vsel %vm9599_vm8, %v4127_v16, -1e+30  ;;  %v4032_v28 = vsel %vm9603_vm14, %v4000_v13, -1e+30  ;;  %v4065_v62 = vmax.f32 %v3969_v46, %v4001_v6  ;;  %v4286_v44 = vmax.f32 %v4094_v38, %v4254_v39  ;;  %v3939_v53 = vld [vmem:[#allocation2 + $0x69] sm:$0xff]  ;;  %5450 = vmatmul.mubr.bf16.vlgmr.msra.gmra.mrb[16].mxu1 %v4315_v33  ;;  %v9610_v46 = vld [vmem:[#allocation3_spill] sm:$0xff] }
 0x268   : > { %v4255_v47 = vmax.f32 %v4159_v59, %v4191_v40  ;;  %v4064_v23 = vmax.f32 %v3936_v45, %v4032_v28  ;;  %vm9605_vm8 = vnez %v9604_v56  ;;  %vm9607_vm2 = vnez %v9606_v22  ;;  %v3938_v40 = vld [vmem:[#allocation2 + $0x61] sm:$0xff]  ;;  %v4131_v10 = vld [vmem:[#allocation2 + $0x6a] sm:$0xff]  ;;  %v9616_v56 = vld [vmem:[#allocation6_spill] sm:$0xff] }
 0x269   : > { %v4161_v15 = vsel %vm9605_vm8, %v4129_v36, -1e+30  ;;  %v4224_v16 = vsel %vm9607_vm2, %v4192_v48, -1e+30  ;;  %v8391_v59 = vmax.f32 %v3821_v20, %v7988_v11  ;;  %v4097_v29 = vmax.f32 %v8306_v5, %v4065_v62  ;;  %v4002_v45 = vld [vmem:[#allocation2 + $0x5f] sm:$0xff]  ;;  %v4003_v39 = vld [vmem:[#allocation2 + $0x67] sm:$0xff] }
 0x26a   : > { %v4287_v52 = vmax.f32 %v4095_v30, %v4255_v47  ;;  %v4096_v54 = vmax.f32 %v8204_v0, %v4064_v23  ;;  %v4256_v55 = vmax.f32 %v4128_v7, %v4224_v16  ;;  %v4130_v14 = vld [vmem:[#allocation2 + $0x62] sm:$0xff]  ;;  %v4257_v13 = vmax.f32 %v4161_v15, %v4193_v35  ;;  %v3940_v33 = vld [vmem:[#allocation2 + $0x71] sm:$0xff]  ;;  %v3941_v30 = vld [vmem:[#allocation2 + $0x79] sm:$0xff] }
 0x26b   : > { %v9608_v38 = vld [vmem:[#allocation4_spill] sm:$0xff]  ;;  %vm9611_vm2 = vnez %v9610_v46  ;;  %v4194_v11 = vld [vmem:[#allocation2 + $0x5e] sm:$0xff]  ;;  %3917 = vst [vmem:[#allocation2 + $0xb8] sm:$0xff] %v8391_v59  ;;  %v3823_v0 = vmax.f32 %v8368_v3, %v8322_v58  ;;  %v9612_v62 = vld [vmem:[#allocation57_spill] sm:$0xff] }
 0x26c   : > { %vm9609_vm3 = vnez %v9608_v38  ;;  %v4034_v6 = vsel %vm9611_vm2, %v4002_v45, -1e+30  ;;  %v4316_v20 = vpack.c.bf16 %v4287_v52, %v4286_v44  ;;  %v4288_v5 = vmax.f32 %v4096_v54, %v4256_v55  ;;  %v4195_v7 = vld [vmem:[#allocation2 + $0x66] sm:$0xff]  ;;  %v4132_v52 = vld [vmem:[#allocation2 + $0x72] sm:$0xff] }
 0x26d   : > { %v3971_v8 = vsel %vm9609_vm3, %v3939_v53, -1e+30  ;;  %v4066_v47 = vmax.f32 %v3938_v40, %v4034_v6  ;;  %v4289_v23 = vmax.f32 %v4097_v29, %v4257_v13  ;;  %vm9613_vm14 = vnez %v9612_v62  ;;  %v9614_v48 = vld [vmem:[#allocation56_spill] sm:$0xff]  ;;  %v4005_v53 = vld [vmem:[#allocation2 + $0x77] sm:$0xff] }
 0x26e   : > { %v4067_v28 = vmax.f32 %v3971_v8, %v4003_v39  ;;  %v4163_v36 = vsel %vm9613_vm14, %v4131_v10, -1e+30  ;;  %vm9615_vm8 = vnez %v9614_v48  ;;  %vm9617_vm3 = vnez %v9616_v56  ;;  %5453 = vmatprep.mubr.bf16.mxu1 %v4316_v20  ;;  %v4004_v40 = vld [vmem:[#allocation2 + $0x6f] sm:$0xff]  ;;  %v4133_v39 = vld [vmem:[#allocation2 + $0x7a] sm:$0xff]  ;;  %v4134_v62 = vld [vmem:[#allocation2 + $0x82] sm:$0xff] }
 0x26f   : > { %v4226_v35 = vsel %vm9615_vm8, %v4194_v11, -1e+30  ;;  %v3973_v15 = vsel %vm9617_vm3, %v3941_v30, -1e+30  ;;  %v4098_v3 = vmax.f32 %v8211_v18, %v4066_v47  ;;  %v4259_v16 = vmax.f32 %v4163_v36, %v4195_v7  ;;  %v9618_v29 = vld [vmem:[#allocation5_spill] sm:$0xff]  ;;  %v3942_v10 = vld [vmem:[#allocation2 + $0x81] sm:$0xff] }
 0x270   : > { %v4099_v44 = vmax.f32 %v8313_v42, %v4067_v28  ;;  %v4258_v22 = vmax.f32 %v4130_v14, %v4226_v35  ;;  %v4317_v54 = vpack.c.bf16 %v4289_v23, %v4288_v5  ;;  %vm9619_vm2 = vnez %v9618_v29  ;;  %v4196_v13 = vld [vmem:[#allocation2 + $0x6e] sm:$0xff]  ;;  %v4197_v38 = vld [vmem:[#allocation2 + $0x76] sm:$0xff]  ;;  %v9620_v42 = vld [vmem:[#allocation59_spill] sm:$0xff] }
 0x271   : > { %v4036_v55 = vsel %vm9619_vm2, %v4004_v40, -1e+30  ;;  %v4069_v45 = vmax.f32 %v3973_v15, %v4005_v53  ;;  %v8413_v8 = vmax.f32 %v3823_v0, %v8023_v50  ;;  %vm9621_vm14 = vnez %v9620_v42  ;;  %v3943_v11 = vld [vmem:[#allocation2 + $0x89] sm:$0xff]  ;;  %v4006_v20 = vld [vmem:[#allocation2 + $0x7f] sm:$0xff]  ;;  %v3944_v29 = vld [vmem:[#allocation2 + $0x91] sm:$0xff] }
 0x272   : > { %v4290_v46 = vmax.f32 %v4098_v3, %v4258_v22  ;;  %v4291_v18 = vmax.f32 %v4099_v44, %v4259_v16  ;;  %v4068_v6 = vmax.f32 %v3940_v33, %v4036_v55  ;;  %v4165_v14 = vsel %vm9621_vm14, %v4133_v39, -1e+30  ;;  %v9622_v47 = vld [vmem:[#allocation60_spill] sm:$0xff]  ;;  %5454 = vmatmul.mubr.bf16.gmra.mrb[20].mxu1 %v4317_v54  ;;  %v9626_v35 = vld [vmem:[#allocation31_spill] sm:$0xff]  ;;  %v9630_v39 = vld [vmem:[#allocation61_spill] sm:$0xff] }
 0x273   : > { %v4101_v5 = vmax.f32 %v8329_v32, %v4069_v45  ;;  %vm9623_vm8 = vnez %v9622_v47  ;;  %v4261_v7 = vmax.f32 %v4165_v14, %v4197_v38  ;;  %v9624_v30 = vld [vmem:[#allocation8_spill] sm:$0xff]  ;;  %3919 = vst [vmem:[#allocation2 + $0xc8] sm:$0xff] %v8413_v8  ;;  %vm9627_vm2 = vnez %v9626_v35  ;;  %v4198_v15 = vld [vmem:[#allocation2 + $0x7e] sm:$0xff]  ;;  %v4201_v47 = vld [vmem:[#allocation2 + $0x96] sm:$0xff] }
 0x274   : > { %v4228_v28 = vsel %vm9623_vm8, %v4196_v13, -1e+30  ;;  %vm9625_vm3 = vnez %v9624_v30  ;;  %v4007_v0 = vld [vmem:[#allocation2 + $0x87] sm:$0xff]  ;;  %v4318_v33 = vpack.c.bf16 %v4291_v18, %v4290_v46  ;;  %v4100_v36 = vmax.f32 %v8214_v27, %v4068_v6  ;;  %v3945_v55 = vld [vmem:[#allocation2 + $0x99] sm:$0xff]  ;;  %v4008_v45 = vld [vmem:[#allocation2 + $0x8f] sm:$0xff] }
 0x275   : > { %v3975_v23 = vsel %vm9625_vm3, %v3943_v11, -1e+30  ;;  %v4260_v48 = vmax.f32 %v4132_v52, %v4228_v28  ;;  %v4038_v56 = vsel %vm9627_vm2, %v4006_v20, -1e+30  ;;  %v4135_v32 = vld [vmem:[#allocation2 + $0x8a] sm:$0xff]  ;;  %v4293_v44 = vmax.f32 %v4101_v5, %v4261_v7  ;;  %v9628_v40 = vld [vmem:[#allocation7_spill] sm:$0xff] }
 0x276   : > { %v4199_v3 = vld [vmem:[#allocation2 + $0x86] sm:$0xff]  ;;  %v4070_v22 = vmax.f32 %v3942_v10, %v4038_v56  ;;  %v4071_v16 = vmax.f32 %v3975_v23, %v4007_v0  ;;  %vm9629_vm14 = vnez %v9628_v40  ;;  %5457 = vmatprep.mubr.bf16.mxu1 %v4318_v33  ;;  %vm9631_vm8 = vnez %v9630_v39  ;;  %v9632_v13 = vld [vmem:[#allocation10_spill] sm:$0xff]  ;;  %v9634_v10 = vld [vmem:[#allocation33_spill] sm:$0xff] }
 0x277   : > { %v4167_v53 = vsel %vm9629_vm14, %v4135_v32, -1e+30  ;;  %v4292_v54 = vmax.f32 %v4100_v36, %v4260_v48  ;;  %v4230_v27 = vsel %vm9631_vm8, %v4198_v15, -1e+30  ;;  %vm9633_vm3 = vnez %v9632_v13  ;;  %v4009_v46 = vld [vmem:[#allocation2 + $0x97] sm:$0xff]  ;;  %v4200_v5 = vld [vmem:[#allocation2 + $0x8e] sm:$0xff] }
 0x278   : > { %v4263_v52 = vmax.f32 %v4167_v53, %v4199_v3  ;;  %v3977_v38 = vsel %vm9633_vm3, %v3945_v55, -1e+30  ;;  %v4136_v18 = vld [vmem:[#allocation2 + $0x92] sm:$0xff]  ;;  %v4102_v6 = vmax.f32 %v8217_v4, %v4070_v22  ;;  %v4103_v42 = vmax.f32 %v8332_v57, %v4071_v16  ;;  %v4137_v20 = vld [vmem:[#allocation2 + $0x9a] sm:$0xff]  ;;  %v3947_v33 = vld [vmem:[#allocation2 + $0xa9] sm:$0xff] }
 0x279   : > { %v4262_v14 = vmax.f32 %v4134_v62, %v4230_v27  ;;  %vm9635_vm2 = vnez %v9634_v10  ;;  %v4319_v28 = vpack.c.bf16 %v4293_v44, %v4292_v54  ;;  %v4073_v30 = vmax.f32 %v3977_v38, %v4009_v46  ;;  %v9636_v23 = vld [vmem:[#allocation9_spill] sm:$0xff]  ;;  %v4010_v36 = vld [vmem:[#allocation2 + $0x9f] sm:$0xff]  ;;  %v4011_v32 = vld [vmem:[#allocation2 + $0xa7] sm:$0xff] }
 0x27a   : > { %v4040_v11 = vsel %vm9635_vm2, %v4008_v45, -1e+30  ;;  %vm9637_vm14 = vnez %v9636_v23  ;;  %v4295_v35 = vmax.f32 %v4103_v42, %v4263_v52  ;;  %v9638_v4 = vld [vmem:[#allocation62_spill] sm:$0xff]  ;;  %v3946_v56 = vld [vmem:[#allocation2 + $0xa1] sm:$0xff]  ;;  %v4139_v15 = vld [vmem:[#allocation2 + $0xaa] sm:$0xff] }
 0x27b   : > { %v4072_v7 = vmax.f32 %v3944_v29, %v4040_v11  ;;  %v4169_v0 = vsel %vm9637_vm14, %v4137_v20, -1e+30  ;;  %v4294_v48 = vmax.f32 %v4102_v6, %v4262_v14  ;;  %vm9639_vm8 = vnez %v9638_v4  ;;  %v4138_v53 = vld [vmem:[#allocation2 + $0xa2] sm:$0xff]  ;;  %v3949_v38 = vld [vmem:[#allocation2 + $0xb9] sm:$0xff]  ;;  %v4012_v46 = vld [vmem:[#allocation2 + $0xaf] sm:$0xff]  ;;  %5458 = vmatmul.mubr.bf16.gmra.mrb[24].mxu1 %v4319_v28 }
 0x27c   : > { %v4232_v57 = vsel %vm9639_vm8, %v4200_v5, -1e+30  ;;  %v4265_v62 = vmax.f32 %v4169_v0, %v4201_v47  ;;  %v4105_v44 = vmax.f32 %v8350_v21, %v4073_v30  ;;  %v3979_v40 = vsel %vm9506_vm12, %v3947_v33, -1e+30  ;;  %v4202_v29 = vld [vmem:[#allocation2 + $0x9e] sm:$0xff]  ;;  %v4203_v55 = vld [vmem:[#allocation2 + $0xa6] sm:$0xff] }
 0x27d   : > { %v4104_v3 = vmax.f32 %v8223_v24, %v4072_v7  ;;  %v4264_v22 = vmax.f32 %v4136_v18, %v4232_v57  ;;  %v4320_v45 = vpack.c.bf16 %v4295_v35, %v4294_v48  ;;  %v9641_v54 = vld [vmem:[#allocation11_spill] sm:$0xff]  ;;  %v4075_v27 = vmax.f32 %v3979_v40, %v4011_v32  ;;  %v9643_v52 = vld [vmem:[#allocation48_spill] sm:$0xff]  ;;  %v3948_v14 = vld [vmem:[#allocation2 + $0xb1] sm:$0xff] }
 0x27e   : > { %vm9642_vm3 = vnez %v9641_v54  ;;  %vm9644_vm2 = vnez %v9643_v52  ;;  %v4297_v21 = vmax.f32 %v4105_v44, %v4265_v62  ;;  %v9645_v6 = vld [vmem:[#allocation63_spill] sm:$0xff]  ;;  %v4013_v10 = vld [vmem:[#allocation2 + $0xb7] sm:$0xff]  ;;  %v4204_v0 = vld [vmem:[#allocation2 + $0xae] sm:$0xff] }
 0x27f   : > { %v4042_v39 = vsel %vm9642_vm3, %v4010_v36, -1e+30  ;;  %v4171_v13 = vsel %vm9644_vm2, %v4139_v15, -1e+30  ;;  %v4296_v24 = vmax.f32 %v4104_v3, %v4264_v22  ;;  %vm9646_vm14 = vnez %v9645_v6  ;;  %v4141_v11 = vld [vmem:[#allocation2 + $0xba] sm:$0xff]  ;;  %5461 = vmatprep.mubr.bf16.mxu1 %v4320_v45  ;;  %v9647_v7 = vld [vmem:[#allocation13_spill] sm:$0xff] }
 0x280   : > { %v4074_v18 = vmax.f32 %v3946_v56, %v4042_v39  ;;  %v4234_v42 = vsel %vm9646_vm14, %v4202_v29, -1e+30  ;;  %v4107_v20 = vmax.f32 %v8353_v2, %v4075_v27  ;;  %v4267_v47 = vmax.f32 %v4171_v13, %v4203_v55  ;;  %v4140_v23 = vld [vmem:[#allocation2 + $0xb2] sm:$0xff]  ;;  %v3950_v57 = vld [vmem:[#allocation2 + $0xc1] sm:$0xff]  ;;  %v3951_v62 = vld [vmem:[#allocation2 + $0xc9] sm:$0xff] }
 0x281   : > { %v4266_v5 = vmax.f32 %v4138_v53, %v4234_v42  ;;  %vm9648_vm12 = vnez %v9647_v7  ;;  %v4205_v28 = vld [vmem:[#allocation2 + $0xb6] sm:$0xff]  ;;  %v4321_v33 = vpack.c.bf16 %v4297_v21, %v4296_v24  ;;  %v4014_v56 = vld [vmem:[#allocation2 + $0xbf] sm:$0xff]  ;;  %v9651_v15 = vld [vmem:[#allocation64_spill] sm:$0xff] }
 0x282   : > { %v3981_v30 = vsel %vm9648_vm12, %v3949_v38, -1e+30  ;;  %v4106_v36 = vmax.f32 %v8226_v25, %v4074_v18  ;;  %v9649_v48 = vld [vmem:[#allocation37_spill] sm:$0xff]  ;;  %v4299_v32 = vmax.f32 %v4107_v20, %v4267_v47  ;;  %vm9652_vm3 = vnez %v9651_v15  ;;  %v4015_v16 = vld [vmem:[#allocation2 + $0xc7] sm:$0xff]  ;;  %v4206_v45 = vld [vmem:[#allocation2 + $0xbe] sm:$0xff] }
 0x283   : > { %vm9650_vm8 = vnez %v9649_v48  ;;  %v4077_v4 = vmax.f32 %v3981_v30, %v4013_v10  ;;  %v4173_v3 = vsel %vm9652_vm3, %v4141_v11, -1e+30  ;;  %v9653_v44 = vld [vmem:[#allocation17_spill] sm:$0xff]  ;;  %v4207_v54 = vld [vmem:[#allocation2 + $0xc6] sm:$0xff]  ;;  %v9655_v27 = vld [vmem:[#allocation66_spill] sm:$0xff]  ;;  %vm9658_vm12 = vnez %v9529_v49  ;;  %5462 = vmatmul.mubr.bf16.gmra.mrb[28].mxu1 %v4321_v33 }
 0x284   : > { %v4044_v35 = vsel %vm9650_vm8, %v4012_v46, -1e+30  ;;  %vm9654_vm2 = vnez %v9653_v44  ;;  %v4143_v40 = vld [vmem:[#allocation2 + $0xca] sm:$0xff]  ;;  %v4298_v53 = vmax.f32 %v4106_v36, %v4266_v5  ;;  %v4269_v55 = vmax.f32 %v4173_v3, %v4205_v28 }
 0x285   : > { %v4076_v2 = vmax.f32 %v3948_v14, %v4044_v35  ;;  %v4236_v22 = vsel %vm9654_vm2, %v4204_v0, -1e+30  ;;  %v4109_v25 = vmax.f32 %v8391_v59, %v4077_v4  ;;  %vm9656_vm14 = vnez %v9655_v27  ;;  %v4142_v59 = vld [vmem:[#allocation2 + $0xc2] sm:$0xff]  ;;  %v3767_v0 = vld [vmem:[#allocation2 + $0x118] sm:$0xff]  ;;  %v4016_v48 = vld [vmem:[#allocation2 + $0xcf] sm:$0xff] }
 0x286   : > { %v4268_v29 = vmax.f32 %v4140_v23, %v4236_v22  ;;  %v3983_v52 = vsel %vm9656_vm14, %v3951_v62, -1e+30  ;;  %v4046_v38 = vsel %vm9525_vm9, %v4014_v56, -1e+30  ;;  %v4175_v46 = vsel %vm9658_vm12, %v4143_v40, -1e+30 }
 0x287   : > { %v4108_v39 = vmax.f32 %v8229_v43, %v4076_v2  ;;  %v4322_v24 = vpack.c.bf16 %v4299_v32, %v4298_v53  ;;  %v4301_v21 = vmax.f32 %v4109_v25, %v4269_v55  ;;  %v4078_v18 = vmax.f32 %v3950_v57, %v4046_v38  ;;  %v9659_v14 = vld [vmem:[#allocation67_spill] sm:$0xff]  ;;  %v4208_v57 = vld [vmem:[#allocation2 + $0xce] sm:$0xff] }
 0x288   : > { %v4079_v6 = vmax.f32 %v3983_v52, %v4015_v16  ;;  %vm9660_vm8 = vnez %v9659_v14  ;;  %v3825_v43 = vmax.f32 %v8371_v61, %v8023_v50  ;;  %v4271_v5 = vmax.f32 %v4175_v46, %v4207_v54  ;;  %v5932_v62 = vld [vmem:[#allocation2 + $0x120] sm:$0xff]  ;;  %v9661_v32 = vld [vmem:[#allocation45_spill] sm:$0xff] }
 0x289   : > { %v4300_v42 = vmax.f32 %v4108_v39, %v4268_v29  ;;  %v4238_v10 = vsel %vm9660_vm8, %v4206_v45, -1e+30  ;;  %v4110_v11 = vmax.f32 %v8232_v17, %v4078_v18  ;;  %5465 = vmatprep.mubr.bf16.mxu1 %v4322_v24  ;;  %v3827_v30 = vmax.f32 %v8376_v12, %v8142_v41  ;;  %v9663_v16 = vld [vmem:[#allocation69_spill] sm:$0xff]  ;;  %v9665_v53 = vld [vmem:[#allocation43_spill] sm:$0xff]  ;;  %v9667_v39 = vld [vmem:[#allocation70_spill] sm:$0xff] }
 0x28a   : > { %v4111_v20 = vmax.f32 %v8413_v8, %v4079_v6  ;;  %v4270_v47 = vmax.f32 %v4142_v59, %v4238_v10  ;;  %v3889_v7 = vmax.f32 %v3825_v43, %v8142_v41  ;;  %v3761_v23 = vmax.f32 %v8322_v58, %v8023_v50  ;;  %v9670_v59 = vld [vmem:[#allocation50_spill] sm:$0xff] }
 0x28b   : > { %v4323_v49 = vpack.c.bf16 %v4301_v21, %v4300_v42  ;;  %v3763_v61 = vmax.f32 %v8023_v50, %v8142_v41  ;;  %v8482_v8 = vmax.f32 %v3827_v30, %v8157_v19  ;;  %v3765_v33 = vmax.f32 %v8142_v41, %v8157_v19 }
 0x28c   : > { %v4302_v28 = vmax.f32 %v4110_v11, %v4270_v47  ;;  %v4303_v17 = vmax.f32 %v4111_v20, %v4271_v5  ;;  %3921 = vst [vmem:[#allocation2 + $0xd8] sm:$0xff] %v3889_v7  ;;  %v3795_v36 = vmax.f32 %v3761_v23, %v8142_v41  ;;  %vm9662_vm9 = vnez %v9661_v32 }
 0x28d   : > { %v3797_v12 = vmax.f32 %v3763_v61, %v8157_v19  ;;  %3923 = vst [vmem:[#allocation2 + $0xe8] sm:$0xff] %v8482_v8  ;;  %v3799_v58 = vmax.f32 %v3765_v33, %v3767_v0  ;;  %5466 = vmatmul.mubr.bf16.gmra.mrb[0].mxu1 %v4323_v49  ;;  %v4048_v2 = vsel %vm9662_vm9, %v4016_v48, -1e+30  ;;  %vm9664_vm3 = vnez %v9663_v16 }
 0x28e   : > { %v3829_v50 = vmax.f32 %v3795_v36, %v8157_v19  ;;  %v4324_v4 = vpack.c.bf16 %v4303_v17, %v4302_v28  ;;  %v4240_v40 = vsel %vm9664_vm3, %v4208_v57, -1e+30  ;;  %vm9666_vm2 = vnez %v9665_v53 }
 0x28f   : > { %v3831_v35 = vmax.f32 %v3797_v12, %v3767_v0  ;;  %v3833_v56 = vmax.f32 %v3799_v58, %v5932_v62  ;;  %vm9668_vm14 = vnez %v9667_v39  ;;  %vm9671_vm12 = vnez %v9670_v59 }
 0x290   : > { %v8493_v15 = vmax.f32 %v3829_v50, %v8173_v60  ;;  %5469 = vmatprep.mubr.bf16.mxu1 %v4324_v4  ;;  %v9674_v4 = vld [vmem:[#allocation74_spill] sm:$0xff] }
 0x291   : > { %v8495_v41 = vmax.f32 %v3831_v35, %v5932_v62  ;;  %v8497_v3 = vmax.f32 %v3833_v56, %v5932_v62 }
 0x292   : > { %3925 = vst [vmem:[#allocation2 + $0xf8] sm:$0xff] %v8493_v15 }
 0x293   : > { %v3952_v44 = vld [vmem:[#allocation2 + $0xd1] sm:$0xff]  ;;  %v3953_v22 = vld [vmem:[#allocation2 + $0xd9] sm:$0xff]  ;;  %3927 = vst [vmem:[#allocation2 + $0x108] sm:$0xff] %v8495_v41  ;;  %3929 = vst [vmem:[#allocation2 + $0x118] sm:$0xff] %v8497_v3 }
 0x294   : > { %v4017_v19 = vld [vmem:[#allocation2 + $0xd7] sm:$0xff]  ;;  %v3985_v25 = vsel %vm9666_vm2, %v3953_v22, -1e+30  ;;  %v4080_v60 = vmax.f32 %v3952_v44, %v4048_v2  ;;  %v3954_v52 = vld [vmem:[#allocation2 + $0xe1] sm:$0xff]  ;;  %v3955_v13 = vld [vmem:[#allocation2 + $0xe9] sm:$0xff] }
 0x295   : > { %v4144_v29 = vld [vmem:[#allocation2 + $0xd2] sm:$0xff]  ;;  %v4145_v55 = vld [vmem:[#allocation2 + $0xda] sm:$0xff]  ;;  %v4081_v54 = vmax.f32 %v3985_v25, %v4017_v19  ;;  %v3987_v18 = vsel %vm9537_vm0, %v3955_v13, -1e+30  ;;  %v4019_v6 = vld [vmem:[#allocation2 + $0xe7] sm:$0xff]  ;;  %vm9675_vm0 = vnez %v9674_v4 }
 0x296   : > { %v4209_v45 = vld [vmem:[#allocation2 + $0xd6] sm:$0xff]  ;;  %v4177_v27 = vsel %vm9668_vm14, %v4145_v55, -1e+30  ;;  %v4018_v38 = vld [vmem:[#allocation2 + $0xdf] sm:$0xff]  ;;  %v4112_v46 = vmax.f32 %v8243_v26, %v4080_v60  ;;  %v4272_v24 = vmax.f32 %v4144_v29, %v4240_v40  ;;  %v4083_v20 = vmax.f32 %v3987_v18, %v4019_v6  ;;  %v4147_v5 = vld [vmem:[#allocation2 + $0xea] sm:$0xff] }
 0x297   : > { %v4050_v42 = vsel %vm9671_vm12, %v4018_v38, -1e+30  ;;  %v4146_v14 = vld [vmem:[#allocation2 + $0xe2] sm:$0xff]  ;;  %v4113_v10 = vmax.f32 %v3889_v7, %v4081_v54  ;;  %v4273_v43 = vmax.f32 %v4177_v27, %v4209_v45  ;;  %v4179_v26 = vsel %vm9540_vm13, %v4147_v5, -1e+30  ;;  %v4020_v28 = vld [vmem:[#allocation2 + $0xef] sm:$0xff] }
 0x298   : > { %v4082_v11 = vmax.f32 %v3954_v52, %v4050_v42  ;;  %v4210_v49 = vld [vmem:[#allocation2 + $0xde] sm:$0xff]  ;;  %v4211_v47 = vld [vmem:[#allocation2 + $0xe6] sm:$0xff]  ;;  %v4304_v30 = vmax.f32 %v4112_v46, %v4272_v24  ;;  %v4115_v36 = vmax.f32 %v8482_v8, %v4083_v20  ;;  %v4212_v12 = vld [vmem:[#allocation2 + $0xee] sm:$0xff]  ;;  %v4052_v57 = vsel %vm9675_vm0, %v4020_v28, -1e+30 }
 0x299   : > { %v4242_v0 = vsel %vm9542_vm5, %v4210_v49, -1e+30  ;;  %v4305_v17 = vmax.f32 %v4113_v10, %v4273_v43  ;;  %v4275_v48 = vmax.f32 %v4179_v26, %v4211_v47  ;;  %v3956_v58 = vld [vmem:[#allocation2 + $0xf1] sm:$0xff]  ;;  %v3957_v50 = vld [vmem:[#allocation2 + $0xf9] sm:$0xff]  ;;  %v4244_v60 = vsel %vm9549_vm11, %v4212_v12, -1e+30 }
 0x29a   : > { %v4114_v33 = vmax.f32 %v8245_v34, %v4082_v11  ;;  %v4274_v7 = vmax.f32 %v4146_v14, %v4242_v0  ;;  %v4021_v35 = vld [vmem:[#allocation2 + $0xf7] sm:$0xff]  ;;  %v3989_v2 = vsel %vm7525_vm10, %v3957_v50, -1e+30  ;;  %v4084_v44 = vmax.f32 %v3956_v58, %v4052_v57  ;;  %v3958_v29 = vld [vmem:[#allocation2 + $0x101] sm:$0xff]  ;;  %v3959_v55 = vld [vmem:[#allocation2 + $0x109] sm:$0xff] }
 0x29b   : > { %v4325_v62 = vpack.c.bf16 %v4305_v17, %v4304_v30  ;;  %v4148_v22 = vld [vmem:[#allocation2 + $0xf2] sm:$0xff]  ;;  %v4149_v19 = vld [vmem:[#allocation2 + $0xfa] sm:$0xff]  ;;  %v4307_v16 = vmax.f32 %v4115_v36, %v4275_v48  ;;  %v4085_v8 = vmax.f32 %v3989_v2, %v4021_v35  ;;  %v3991_v27 = vsel %vm7564_vm15, %v3959_v55, -1e+30  ;;  %v4023_v13 = vld [vmem:[#allocation2 + $0x107] sm:$0xff] }
 0x29c   : > { %v4306_v56 = vmax.f32 %v4114_v33, %v4274_v7  ;;  %v4213_v34 = vld [vmem:[#allocation2 + $0xf6] sm:$0xff]  ;;  %v4181_v53 = vsel %vm7535_vm1, %v4149_v19, -1e+30  ;;  %v4116_v45 = vmax.f32 %v8247_v1, %v4084_v44  ;;  %v4276_v54 = vmax.f32 %v4148_v22, %v4244_v60  ;;  %v4022_v52 = vld [vmem:[#allocation2 + $0xff] sm:$0xff]  ;;  %v4151_v59 = vld [vmem:[#allocation2 + $0x10a] sm:$0xff] }
 0x29d   : > { %5470 = vmatmul.mubr.bf16.gmra.mrb[4].mxu1 %v4325_v62  ;;  %v4277_v39 = vmax.f32 %v4181_v53, %v4213_v34  ;;  %v4150_v38 = vld [vmem:[#allocation2 + $0x102] sm:$0xff]  ;;  %v4117_v24 = vmax.f32 %v8493_v15, %v4085_v8  ;;  %v4054_v18 = vsel %vm7552_vm6, %v4022_v52, -1e+30  ;;  %v4087_v6 = vmax.f32 %v3991_v27, %v4023_v13  ;;  %v3960_v20 = vld [vmem:[#allocation2 + $0x111] sm:$0xff]  ;;  %v3961_v5 = vld [vmem:[#allocation2 + $0x119] sm:$0xff]  ;;  %v8549_v34 = vpop.f32.mrb[48].mxu0 }
 0x29e   : > { %v4326_v46 = vpack.c.bf16 %v4307_v16, %v4306_v56  ;;  %v4214_v42 = vld [vmem:[#allocation2 + $0xfe] sm:$0xff]  ;;  %v4215_v14 = vld [vmem:[#allocation2 + $0x106] sm:$0xff]  ;;  %v4308_v10 = vmax.f32 %v4116_v45, %v4276_v54  ;;  %v4086_v1 = vmax.f32 %v3958_v29, %v4054_v18  ;;  %v4183_v43 = vsel %vm7606_vm4, %v4151_v59, -1e+30  ;;  %v4024_v30 = vld [vmem:[#allocation2 + $0x10f] sm:$0xff] }
 0x29f   : > { %v4246_v11 = vsel %vm7592_vm7, %v4214_v42, -1e+30  ;;  %v4309_v49 = vmax.f32 %v4117_v24, %v4277_v39  ;;  %v4119_v15 = vmax.f32 %v8495_v41, %v4087_v6  ;;  %v4279_v47 = vmax.f32 %v4183_v43, %v4215_v14  ;;  %v4025_v23 = vld [vmem:[#allocation2 + $0x117] sm:$0xff]  ;;  %v4216_v33 = vld [vmem:[#allocation2 + $0x10e] sm:$0xff] }
 0x2a0   : > { %5473 = vmatprep.mubr.bf16.mxu1 %v4326_v46  ;;  %v4118_v26 = vmax.f32 %v8250_v9, %v4086_v1  ;;  %v4278_v61 = vmax.f32 %v4150_v38, %v4246_v11  ;;  %vm9681_vm1 = vnez %v9469_v63  ;;  %vm9683_vm4 = vnez %v9682_v51  ;;  %v4153_v17 = vld [vmem:[#allocation2 + $0x11a] sm:$0xff]  ;;  %v4152_v58 = vld [vmem:[#allocation2 + $0x112] sm:$0xff] }
 0x2a1   : > { %v3993_v0 = vsel %vm9681_vm1, %v3961_v5, -1e+30  ;;  %v4056_v28 = vsel %vm9683_vm4, %v4024_v30, -1e+30  ;;  %v4327_v36 = vpack.c.bf16 %v4309_v49, %v4308_v10  ;;  %v4311_v7 = vmax.f32 %v4119_v15, %v4279_v47  ;;  %v4217_v41 = vld [vmem:[#allocation2 + $0x116] sm:$0xff]  ;;  %v9685_v9 = vld [vmem:[#allocation83_spill] sm:$0xff] }
 0x2a2   : > { %v4088_v12 = vmax.f32 %v3960_v20, %v4056_v28  ;;  %v4089_v48 = vmax.f32 %v3993_v0, %v4025_v23  ;;  %v4310_v50 = vmax.f32 %v4118_v26, %v4278_v61  ;;  %vm9684_vm5 = vnez %v9569_v31  ;;  %v9687_v63 = vld [vmem:[#allocation18_spill] sm:$0xff]  ;;  %v8551_v31 = vpop.f32.mrb[49].mxu0  ;;  %v8594_v49 = vld [vmem:[%s8822_s4] ss:$0 sm:$0xff] }
 0x2a3   : > { %v4185_v35 = vsel %vm9684_vm5, %v4153_v17, -1e+30  ;;  %vm9686_vm6 = vnez %v9685_v9  ;;  %v8553_v16 = vpop.f32.mrb[50].mxu0 }
 0x2a4   : > { %v4248_v4 = vsel %vm9686_vm6, %v4216_v33, -1e+30  ;;  %v4120_v57 = vmax.f32 %v9687_v63, %v4088_v12  ;;  %v4121_v62 = vmax.f32 %v8497_v3, %v4089_v48  ;;  %v4328_v56 = vpack.c.bf16 %v4311_v7, %v4310_v50  ;;  %v8555_v8 = vpop.f32.mrb[51].mxu0 }
 0x2a5   : > { %5474 = vmatmul.mubr.bf16.gmra.mrb[8].mxu1 %v4327_v36  ;;  %v4280_v32 = vmax.f32 %v4152_v58, %v4248_v4  ;;  %v4281_v2 = vmax.f32 %v4185_v35, %v4217_v41 }
 0x2a6   : > { %5477 = vmatprep.mubr.bf16.mxu1 %v4328_v56 }
 0x2a7   : > { %v4312_v44 = vmax.f32 %v4120_v57, %v4280_v32  ;;  %v4313_v22 = vmax.f32 %v4121_v62, %v4281_v2 }
 0x2a9   : > { %v4329_v19 = vpack.c.bf16 %v4313_v22, %v4312_v44 }
 0x2ab   : > { %v8557_v40 = vpop.f32.mrb[52].mxu0 }
 0x2ac   : > { %v8559_v3 = vpop.f32.mrb[53].mxu0 }
 0x2ad   : > { %5478 = vmatmul.mubr.bf16.gmra.mrb[12].mxu1 %v4329_v19  ;;  %v8561_v53 = vpop.f32.mrb[54].mxu0 }
 0x2ae   : > { %v8563_v25 = vpop.f32.mrb[55].mxu0 }
 0x2cb   : > { %v8565_v60 = vpop.f32.mrb[56].mxu0 }
 0x2cc   : > { %v8567_v29 = vpop.f32.mrb[57].mxu0 }
 0x2cd   : > { %v8569_v55 = vpop.f32.mrb[58].mxu0 }
 0x2ce   : > { %v8571_v45 = vpop.f32.mrb[59].mxu0 }
 0x2ea   : > { %v8573_v54 = vpop.f32.mrb[60].mxu0 }
 0x2eb   : > { %v8575_v39 = vpop.f32.mrb[61].mxu0 }
 0x2ec   : > { %v8577_v27 = vpop.f32.mrb[62].mxu0 }
 0x2ed   : > { %v8579_v52 = vpop.f32.mrb[63].mxu0 }
 0x2f9   : > { %v5355_v13 = vpop.f32.mrb[32].mxu0 }
 0x2fa   : > { %v2621_v38 = vpop.f32.mrb[33].mxu0 }
 0x2fb   : > { %v5356_v46 = vpop.f32.mrb[34].mxu0 }
 0x2fc   : > { %v2624_v24 = vpop.f32.mrb[35].mxu0 }
 0x303   : > { %v5359_v21 = vpop.f32.mrb[36].mxu0 }
 0x304   : > { %v2637_v18 = vpop.f32.mrb[37].mxu0 }
 0x305   : > { %v5360_v6 = vpop.f32.mrb[38].mxu0 }
 0x306   : > { %v2640_v59 = vpop.f32.mrb[39].mxu0 }
 0x30d   : > { %v5363_v42 = vpop.f32.mrb[40].mxu0 }
 0x30e   : > { %v2653_v14 = vpop.f32.mrb[41].mxu0 }
 0x30f   : > { %v5364_v10 = vpop.f32.mrb[42].mxu0 }
 0x310   : > { %v8581_v1 = vpop.f32.mrb[43].mxu0 }
 0x317   : > { %v8583_v43 = vpop.f32.mrb[44].mxu0 }
 0x318   : > { %v8585_v37 = vpop.f32.mrb[45].mxu0 }
 0x319   : > { %v8587_v11 = vpop.f32.mrb[46].mxu0 }
 0x31a   : > { %v8589_v20 = vpop.f32.mrb[47].mxu0 }
 0x33a   : > { %v5451_v5 = vpop.f32.mrb[16].mxu1 }
 0x33b   : > { %v5497_v15 = vadd.f32 %v5451_v5, %v5355_v13  ;;  %v4429_v47 = vpop.f32.mrb[17].mxu1 }
 0x33c   : > { %v5498_v30 = vadd.f32 %v4429_v47, %v2621_v38  ;;  %v5452_v23 = vpop.f32.mrb[18].mxu1 }
 0x33d   : > { %v8597_v26 = vadd.f32 %v5497_v15, %v8594_v49  ;;  %v5499_v61 = vadd.f32 %v5452_v23, %v5356_v46  ;;  %v4432_v0 = vpop.f32.mrb[19].mxu1 }
 0x33e   : > { %v8600_v51 = vadd.f32 %v5498_v30, %v8594_v49  ;;  %v5500_v28 = vadd.f32 %v4432_v0, %v2624_v24 }
 0x33f   : > { %v5087_v17 = vmul.f32 -1.442695, %v8597_v26  ;;  %v8604_v33 = vadd.f32 %v5499_v61, %v8594_v49 }
 0x340   : > { %v5085_v36 = vmul.f32 -1.442695, %v8600_v51  ;;  %v8608_v7 = vadd.f32 %v5500_v28, %v8594_v49 }
 0x341   : > { %5786 = vpow2.f32 %v5087_v17  ;;  %v5088_v12 = vmul.f32 -1.442695, %v8604_v33 }
 0x342   : > { %5788 = vpow2.f32 %v5085_v36  ;;  %v5086_v48 = vmul.f32 -1.442695, %v8608_v7 }
 0x343   : > { %5790 = vpow2.f32 %v5088_v12 }
 0x344   : > { %5792 = vpow2.f32 %v5086_v48 }
 0x345   : > { %v5455_v58 = vpop.f32.mrb[20].mxu1 }
 0x346   : > { %v5501_v41 = vadd.f32 %v5455_v58, %v5359_v21  ;;  %v4445_v50 = vpop.f32.mrb[21].mxu1 }
 0x347   : > { %v5502_v35 = vadd.f32 %v4445_v50, %v2637_v18  ;;  %v5456_v9 = vpop.f32.mrb[22].mxu1 }
 0x348   : > { %v8613_v4 = vadd.f32 %v5501_v41, %v8594_v49  ;;  %v5503_v63 = vadd.f32 %v5456_v9, %v5360_v6  ;;  %v4448_v57 = vpop.f32.mrb[23].mxu1 }
 0x349   : > { %v8616_v62 = vadd.f32 %v5502_v35, %v8594_v49  ;;  %v5504_v56 = vadd.f32 %v4448_v57, %v2640_v59 }
 0x34a   : > { %v5091_v32 = vmul.f32 -1.442695, %v8613_v4  ;;  %v8620_v2 = vadd.f32 %v5503_v63, %v8594_v49 }
 0x34b   : > { %v5089_v44 = vmul.f32 -1.442695, %v8616_v62  ;;  %v8624_v22 = vadd.f32 %v5504_v56, %v8594_v49  ;;  %v5787_v46 = vpop.eup %5786 }
 0x34c   : > { %5794 = vpow2.f32 %v5091_v32  ;;  %v5092_v19 = vmul.f32 -1.442695, %v8620_v2  ;;  %v5789_v18 = vpop.eup %5788  ;;  %v4725_v6 = vadd.f32 1.0, %v5787_v46 }
 0x34d   : > { %5796 = vpow2.f32 %v5089_v44  ;;  %v5090_v13 = vmul.f32 -1.442695, %v8624_v22  ;;  %v5791_v15 = vpop.eup %5790  ;;  %v4723_v47 = vadd.f32 1.0, %v5789_v18 }
 0x34e   : > { %v5459_v38 = vpop.f32.mrb[24].mxu1  ;;  %5798 = vpow2.f32 %v5092_v19  ;;  %v5793_v0 = vpop.eup %5792  ;;  %v4726_v28 = vadd.f32 1.0, %v5791_v15 }
 0x34f   : > { %v5505_v24 = vadd.f32 %v5459_v38, %v5363_v42  ;;  %v4461_v21 = vpop.f32.mrb[25].mxu1  ;;  %5800 = vpow2.f32 %v5090_v13  ;;  %v4724_v36 = vadd.f32 1.0, %v5793_v0 }
 0x350   : > { %v5506_v59 = vadd.f32 %v4461_v21, %v2653_v14  ;;  %v5460_v5 = vpop.f32.mrb[26].mxu1  ;;  %5802 = vrcp.f32 %v4725_v6 }
 0x351   : > { %v8629_v30 = vadd.f32 %v5505_v24, %v8594_v49  ;;  %v5507_v23 = vadd.f32 %v5460_v5, %v5364_v10  ;;  %v4464_v61 = vpop.f32.mrb[27].mxu1  ;;  %5804 = vrcp.f32 %v4723_v47 }
 0x352   : > { %v8632_v17 = vadd.f32 %v5506_v59, %v8594_v49  ;;  %v5508_v42 = vadd.f32 %v4464_v61, %v8581_v1  ;;  %5806 = vrcp.f32 %v4726_v28 }
 0x353   : > { %v5095_v14 = vmul.f32 -1.442695, %v8629_v30  ;;  %v8637_v12 = vadd.f32 %v5507_v23, %v8594_v49  ;;  %5808 = vrcp.f32 %v4724_v36 }
 0x354   : > { %v5093_v48 = vmul.f32 -1.442695, %v8632_v17  ;;  %v8641_v10 = vadd.f32 %v5508_v42, %v8594_v49 }
 0x355   : > { %v5096_v58 = vmul.f32 -1.442695, %v8637_v12  ;;  %5810 = vpow2.f32 %v5095_v14 }
 0x356   : > { %v5094_v1 = vmul.f32 -1.442695, %v8641_v10  ;;  %v5463_v41 = vpop.f32.mrb[28].mxu1  ;;  %v5795_v50 = vpop.eup %5794  ;;  %5812 = vpow2.f32 %v5093_v48 }
 0x357   : > { %v5509_v35 = vadd.f32 %v5463_v41, %v8583_v43  ;;  %v4477_v9 = vpop.f32.mrb[29].mxu1  ;;  %v5797_v63 = vpop.eup %5796  ;;  %v4729_v57 = vadd.f32 1.0, %v5795_v50  ;;  %5814 = vpow2.f32 %v5096_v58 }
 0x358   : > { %v5510_v56 = vadd.f32 %v4477_v9, %v8585_v37  ;;  %v5464_v32 = vpop.f32.mrb[30].mxu1  ;;  %v5799_v44 = vpop.eup %5798  ;;  %v4727_v19 = vadd.f32 1.0, %v5797_v63  ;;  %5816 = vpow2.f32 %v5094_v1 }
 0x359   : > { %v8649_v13 = vadd.f32 %v5509_v35, %v8594_v49  ;;  %v5511_v38 = vadd.f32 %v5464_v32, %v8587_v11  ;;  %v4480_v46 = vpop.f32.mrb[31].mxu1  ;;  %v5801_v24 = vpop.eup %5800  ;;  %5818 = vrcp.f32 %v4729_v57  ;;  %v4730_v43 = vadd.f32 1.0, %v5799_v44 }
 0x35a   : > { %v8653_v21 = vadd.f32 %v5510_v56, %v8594_v49  ;;  %v5512_v18 = vadd.f32 %v4480_v46, %v8589_v20  ;;  %5820 = vrcp.f32 %v4727_v19  ;;  %v4728_v37 = vadd.f32 1.0, %v5801_v24  ;;  %v5803_v5 = vpop.eup %5802 }
 0x35b   : > { %v5099_v6 = vmul.f32 -1.442695, %v8649_v13  ;;  %v8658_v59 = vadd.f32 %v5511_v38, %v8594_v49  ;;  %5822 = vrcp.f32 %v4730_v43  ;;  %v5805_v20 = vpop.eup %5804  ;;  %v4821_v47 = vmul.f32 %v5803_v5, %v8597_v26 }
 0x35c   : > { %v5097_v11 = vmul.f32 -1.442695, %v8653_v21  ;;  %v8667_v15 = vadd.f32 %v5512_v18, %v8594_v49  ;;  %5824 = vrcp.f32 %v4728_v37  ;;  %v5807_v61 = vpop.eup %5806  ;;  %v4819_v0 = vmul.f32 %v5805_v20, %v8600_v51 }
 0x35d   : > { %v5100_v23 = vmul.f32 -1.442695, %v8658_v59  ;;  %5826 = vpow2.f32 %v5099_v6  ;;  %v5809_v36 = vpop.eup %5808  ;;  %4853 = vst [vmem:[%s8663_s9 + $0x10] sm:$0xff] %v4821_v47  ;;  %v4822_v14 = vmul.f32 %v5807_v61, %v8604_v33 }
 0x35e   : > { %v5098_v28 = vmul.f32 -1.442695, %v8667_v15  ;;  %5828 = vpow2.f32 %v5097_v11  ;;  %4851 = vst [vmem:[%s8663_s9] sm:$0xff] %v4819_v0  ;;  %v4820_v1 = vmul.f32 %v5809_v36, %v8608_v7 }
 0x35f   : > { %v5811_v58 = vpop.eup %5810  ;;  %5830 = vpow2.f32 %v5100_v23  ;;  %4854 = vst [vmem:[%s8663_s9 + $0x18] sm:$0xff] %v4822_v14 }
 0x360   : > { %v5467_v42 = vpop.f32.mrb[0].mxu1  ;;  %v5813_v50 = vpop.eup %5812  ;;  %v4733_v35 = vadd.f32 1.0, %v5811_v58  ;;  %5832 = vpow2.f32 %v5098_v28  ;;  %4852 = vst [vmem:[%s8663_s9 + $0x8] sm:$0xff] %v4820_v1 }
 0x361   : > { %v5513_v48 = vadd.f32 %v5467_v42, %v8549_v34  ;;  %v4493_v26 = vpop.f32.mrb[1].mxu1  ;;  %v5815_v63 = vpop.eup %5814  ;;  %v4731_v57 = vadd.f32 1.0, %v5813_v50 }
 0x362   : > { %v5514_v51 = vadd.f32 %v4493_v26, %v8551_v31  ;;  %v5468_v41 = vpop.f32.mrb[2].mxu1  ;;  %v5817_v31 = vpop.eup %5816  ;;  %5834 = vrcp.f32 %v4733_v35  ;;  %v4734_v32 = vadd.f32 1.0, %v5815_v63 }
 0x363   : > { %v8681_v9 = vadd.f32 %v5513_v48, %v8594_v49  ;;  %v5515_v33 = vadd.f32 %v5468_v41, %v8553_v16  ;;  %v4496_v34 = vpop.f32.mrb[3].mxu1  ;;  %v5819_v38 = vpop.eup %5818  ;;  %5836 = vrcp.f32 %v4731_v57  ;;  %v4732_v16 = vadd.f32 1.0, %v5817_v31 }
 0x364   : > { %v8686_v56 = vadd.f32 %v5514_v51, %v8594_v49  ;;  %v5516_v7 = vadd.f32 %v4496_v34, %v8555_v8  ;;  %v5821_v43 = vpop.eup %5820  ;;  %v4825_v8 = vmul.f32 %v5819_v38, %v8613_v4  ;;  %5838 = vrcp.f32 %v4734_v32 }
 0x365   : > { %v5103_v44 = vmul.f32 -1.442695, %v8681_v9  ;;  %v8691_v19 = vadd.f32 %v5515_v33, %v8594_v49  ;;  %v5823_v37 = vpop.eup %5822  ;;  %v4823_v6 = vmul.f32 %v5821_v43, %v8616_v62  ;;  %5840 = vrcp.f32 %v4732_v16 }
 0x366   : > { %v5101_v46 = vmul.f32 -1.442695, %v8686_v56  ;;  %v8695_v24 = vadd.f32 %v5516_v7, %v8594_v49  ;;  %v5825_v11 = vpop.eup %5824  ;;  %4857 = vst [vmem:[%s8663_s9 + $0x30] sm:$0xff] %v4825_v8  ;;  %v4826_v20 = vmul.f32 %v5823_v37, %v8620_v2 }
 0x367   : > { %v5104_v18 = vmul.f32 -1.442695, %v8691_v19  ;;  %5842 = vpow2.f32 %v5103_v44  ;;  %v5827_v47 = vpop.eup %5826  ;;  %4855 = vst [vmem:[%s8663_s9 + $0x20] sm:$0xff] %v4823_v6  ;;  %v4824_v4 = vmul.f32 %v5825_v11, %v8624_v22 }
 0x368   : > { %v5102_v5 = vmul.f32 -1.442695, %v8695_v24  ;;  %5844 = vpow2.f32 %v5101_v46  ;;  %v5829_v23 = vpop.eup %5828  ;;  %4858 = vst [vmem:[%s8663_s9 + $0x38] sm:$0xff] %v4826_v20  ;;  %v4737_v61 = vadd.f32 1.0, %v5827_v47 }
 0x369   : > { %5846 = vpow2.f32 %v5104_v18  ;;  %v5831_v0 = vpop.eup %5830  ;;  %4856 = vst [vmem:[%s8663_s9 + $0x28] sm:$0xff] %v4824_v4  ;;  %v4735_v62 = vadd.f32 1.0, %v5829_v23 }
 0x36a   : > { %5848 = vpow2.f32 %v5102_v5  ;;  %v5833_v42 = vpop.eup %5832  ;;  %v4738_v36 = vadd.f32 1.0, %v5831_v0 }
 0x36b   : > { %5850 = vrcp.f32 %v4737_v61  ;;  %v4736_v48 = vadd.f32 1.0, %v5833_v42 }
 0x36c   : > { %5852 = vrcp.f32 %v4735_v62  ;;  %v5835_v58 = vpop.eup %5834 }
 0x36d   : > { %5854 = vrcp.f32 %v4738_v36  ;;  %v5837_v50 = vpop.eup %5836  ;;  %v4829_v35 = vmul.f32 %v5835_v58, %v8629_v30 }
 0x36e   : > { %5856 = vrcp.f32 %v4736_v48  ;;  %v5839_v33 = vpop.eup %5838  ;;  %v4827_v34 = vmul.f32 %v5837_v50, %v8632_v17 }
 0x36f   : > { %4861 = vst [vmem:[%s8663_s9 + $0x50] sm:$0xff] %v4829_v35  ;;  %v4830_v30 = vmul.f32 %v5839_v33, %v8637_v12 }
 0x370   : > { %v5471_v28 = vpop.f32.mrb[4].mxu1  ;;  %4859 = vst [vmem:[%s8663_s9 + $0x40] sm:$0xff] %v4827_v34 }
 0x371   : > { %v5517_v2 = vadd.f32 %v5471_v28, %v8557_v40  ;;  %v4509_v14 = vpop.f32.mrb[5].mxu1  ;;  %4862 = vst [vmem:[%s8663_s9 + $0x58] sm:$0xff] %v4830_v30 }
 0x372   : > { %v5518_v22 = vadd.f32 %v4509_v14, %v8559_v3  ;;  %v5472_v26 = vpop.f32.mrb[6].mxu1 }
 0x373   : > { %v8710_v1 = vadd.f32 %v5517_v2, %v8594_v49  ;;  %v5519_v51 = vadd.f32 %v5472_v26, %v8561_v53  ;;  %v4512_v41 = vpop.f32.mrb[7].mxu1  ;;  %v5841_v53 = vpop.eup %5840 }
 0x374   : > { %v8715_v40 = vadd.f32 %v5518_v22, %v8594_v49  ;;  %v5520_v3 = vadd.f32 %v4512_v41, %v8563_v25  ;;  %v5843_v25 = vpop.eup %5842  ;;  %v4828_v32 = vmul.f32 %v5841_v53, %v8641_v10 }
 0x375   : > { %v5107_v63 = vmul.f32 -1.442695, %v8710_v1  ;;  %v8721_v57 = vadd.f32 %v5519_v51, %v8594_v49  ;;  %v5845_v44 = vpop.eup %5844  ;;  %v4741_v38 = vadd.f32 1.0, %v5843_v25 }
 0x376   : > { %v5105_v7 = vmul.f32 -1.442695, %v8715_v40  ;;  %v8727_v31 = vadd.f32 %v5520_v3, %v8594_v49  ;;  %v5847_v46 = vpop.eup %5846  ;;  %4860 = vst [vmem:[%s8663_s9 + $0x48] sm:$0xff] %v4828_v32  ;;  %v4739_v12 = vadd.f32 1.0, %v5845_v44 }
 0x377   : > { %5858 = vpow2.f32 %v5107_v63  ;;  %v5108_v17 = vmul.f32 -1.442695, %v8721_v57  ;;  %v5849_v18 = vpop.eup %5848  ;;  %v4742_v37 = vadd.f32 1.0, %v5847_v46 }
 0x378   : > { %5860 = vpow2.f32 %v5105_v7  ;;  %v5475_v16 = vpop.f32.mrb[8].mxu1  ;;  %v5106_v10 = vmul.f32 -1.442695, %v8727_v31  ;;  %v5851_v11 = vpop.eup %5850  ;;  %v4740_v20 = vadd.f32 1.0, %v5849_v18 }
 0x379   : > { %5862 = vpow2.f32 %v5108_v17  ;;  %v5521_v43 = vadd.f32 %v5475_v16, %v8565_v60  ;;  %v4525_v8 = vpop.f32.mrb[9].mxu1  ;;  %v5853_v60 = vpop.eup %5852  ;;  %v4833_v61 = vmul.f32 %v5851_v11, %v8649_v13 }
 0x37a   : > { %5864 = vrcp.f32 %v4741_v38  ;;  %v5522_v6 = vadd.f32 %v4525_v8, %v8567_v29  ;;  %v5476_v5 = vpop.f32.mrb[10].mxu1  ;;  %v5855_v62 = vpop.eup %5854  ;;  %v4831_v28 = vmul.f32 %v5853_v60, %v8653_v21 }
 0x37b   : > { %5866 = vrcp.f32 %v4739_v12  ;;  %v8738_v47 = vadd.f32 %v5521_v43, %v8594_v49  ;;  %v5523_v4 = vadd.f32 %v5476_v5, %v8569_v55  ;;  %v4528_v23 = vpop.f32.mrb[11].mxu1  ;;  %v5857_v36 = vpop.eup %5856  ;;  %4865 = vst [vmem:[%s8663_s9 + $0x70] sm:$0xff] %v4833_v61  ;;  %v4834_v13 = vmul.f32 %v5855_v62, %v8658_v59 }
 0x37c   : > { %5868 = vrcp.f32 %v4742_v37  ;;  %v8743_v0 = vadd.f32 %v5522_v6, %v8594_v49  ;;  %v5524_v29 = vadd.f32 %v4528_v23, %v8571_v45  ;;  %4863 = vst [vmem:[%s8663_s9 + $0x60] sm:$0xff] %v4831_v28  ;;  %v4832_v21 = vmul.f32 %v5857_v36, %v8667_v15 }
 0x37d   : > { %5870 = vrcp.f32 %v4740_v20  ;;  %v5111_v42 = vmul.f32 -1.442695, %v8738_v47  ;;  %v8749_v55 = vadd.f32 %v5523_v4, %v8594_v49  ;;  %4866 = vst [vmem:[%s8663_s9 + $0x78] sm:$0xff] %v4834_v13 }
 0x37e   : > { %5872 = vpow2.f32 %v5106_v10  ;;  %v5109_v2 = vmul.f32 -1.442695, %v8743_v0  ;;  %v8755_v45 = vadd.f32 %v5524_v29, %v8594_v49  ;;  %4864 = vst [vmem:[%s8663_s9 + $0x68] sm:$0xff] %v4832_v21 }
 0x37f   : > { %5874 = vpow2.f32 %v5111_v42  ;;  %v5112_v14 = vmul.f32 -1.442695, %v8749_v55 }
 0x380   : > { %5876 = vpow2.f32 %v5109_v2  ;;  %v5110_v48 = vmul.f32 -1.442695, %v8755_v45  ;;  %v5479_v22 = vpop.f32.mrb[12].mxu1 }
 0x381   : > { %v5859_v26 = vpop.eup %5858  ;;  %5878 = vpow2.f32 %v5112_v14  ;;  %v5525_v59 = vadd.f32 %v5479_v22, %v8573_v54  ;;  %v4541_v58 = vpop.f32.mrb[13].mxu1 }
 0x382   : > { %v5861_v51 = vpop.eup %5860  ;;  %v4745_v41 = vadd.f32 1.0, %v5859_v26  ;;  %5880 = vpow2.f32 %v5110_v48  ;;  %v5526_v50 = vadd.f32 %v4541_v58, %v8575_v39  ;;  %v5480_v15 = vpop.f32.mrb[14].mxu1 }
 0x383   : > { %v5863_v35 = vpop.eup %5862  ;;  %v4743_v3 = vadd.f32 1.0, %v5861_v51  ;;  %v8766_v33 = vadd.f32 %v5525_v59, %v8594_v49  ;;  %v5527_v34 = vadd.f32 %v5480_v15, %v8577_v27  ;;  %v4544_v63 = vpop.f32.mrb[15].mxu1 }
 0x384   : > { %v5865_v53 = vpop.eup %5864  ;;  %5882 = vrcp.f32 %v4745_v41  ;;  %v4746_v30 = vadd.f32 1.0, %v5863_v35  ;;  %v8770_v54 = vadd.f32 %v5526_v50, %v8594_v49  ;;  %v5528_v7 = vadd.f32 %v4544_v63, %v8579_v52 }
 0x385   : > { %v5867_v25 = vpop.eup %5866  ;;  %v4837_v39 = vmul.f32 %v5865_v53, %v8681_v9  ;;  %5884 = vrcp.f32 %v4743_v3  ;;  %v5115_v32 = vmul.f32 -1.442695, %v8766_v33  ;;  %v8776_v17 = vadd.f32 %v5527_v34, %v8594_v49 }
 0x386   : > { %v5869_v27 = vpop.eup %5868  ;;  %v4835_v44 = vmul.f32 %v5867_v25, %v8686_v56  ;;  %5886 = vrcp.f32 %v4746_v30  ;;  %v5113_v38 = vmul.f32 -1.442695, %v8770_v54  ;;  %v8781_v16 = vadd.f32 %v5528_v7, %v8594_v49 }
 0x387   : > { %v5871_v52 = vpop.eup %5870  ;;  %4869 = vst [vmem:[%s8663_s9 + $0x90] sm:$0xff] %v4837_v39  ;;  %v4838_v9 = vmul.f32 %v5869_v27, %v8691_v19  ;;  %5888 = vpow2.f32 %v5115_v32  ;;  %v5116_v46 = vmul.f32 -1.442695, %v8776_v17 }
 0x388   : > { %v5873_v12 = vpop.eup %5872  ;;  %4867 = vst [vmem:[%s8663_s9 + $0x80] sm:$0xff] %v4835_v44  ;;  %v4836_v43 = vmul.f32 %v5871_v52, %v8695_v24  ;;  %5890 = vpow2.f32 %v5113_v38  ;;  %v5114_v56 = vmul.f32 -1.442695, %v8781_v16 }
 0x389   : > { %v5875_v8 = vpop.eup %5874  ;;  %4870 = vst [vmem:[%s8663_s9 + $0x98] sm:$0xff] %v4838_v9  ;;  %v4744_v18 = vadd.f32 1.0, %v5873_v12  ;;  %5892 = vpow2.f32 %v5116_v46 }
 0x38a   : > { %v5877_v49 = vpop.eup %5876  ;;  %4868 = vst [vmem:[%s8663_s9 + $0x88] sm:$0xff] %v4836_v43  ;;  %v4749_v37 = vadd.f32 1.0, %v5875_v8  ;;  %5894 = vpow2.f32 %v5114_v56 }
 0x38b   : > { %v5879_v10 = vpop.eup %5878  ;;  %5896 = vrcp.f32 %v4744_v18  ;;  %v4747_v19 = vadd.f32 1.0, %v5877_v49 }
 0x38c   : > { %v5881_v6 = vpop.eup %5880  ;;  %5898 = vrcp.f32 %v4749_v37  ;;  %v4750_v5 = vadd.f32 1.0, %v5879_v10 }
 0x38d   : > { %5900 = vrcp.f32 %v4747_v19  ;;  %v4748_v24 = vadd.f32 1.0, %v5881_v6 }
 0x38e   : > { %v5883_v11 = vpop.eup %5882  ;;  %5902 = vrcp.f32 %v4750_v5 }
 0x38f   : > { %v5885_v20 = vpop.eup %5884  ;;  %v4841_v4 = vmul.f32 %v5883_v11, %v8710_v1  ;;  %5904 = vrcp.f32 %v4748_v24 }
 0x390   : > { %v5887_v23 = vpop.eup %5886  ;;  %v4839_v60 = vmul.f32 %v5885_v20, %v8715_v40 }
 0x391   : > { %v5889_v61 = vpop.eup %5888  ;;  %4873 = vst [vmem:[%s8663_s9 + $0xb0] sm:$0xff] %v4841_v4  ;;  %v4842_v29 = vmul.f32 %v5887_v23, %v8721_v57 }
 0x392   : > { %v5891_v62 = vpop.eup %5890  ;;  %4871 = vst [vmem:[%s8663_s9 + $0xa0] sm:$0xff] %v4839_v60  ;;  %v4753_v28 = vadd.f32 1.0, %v5889_v61 }
 0x393   : > { %v5893_v42 = vpop.eup %5892  ;;  %4874 = vst [vmem:[%s8663_s9 + $0xb8] sm:$0xff] %v4842_v29  ;;  %v4751_v36 = vadd.f32 1.0, %v5891_v62 }
 0x394   : > { %v5895_v13 = vpop.eup %5894  ;;  %5906 = vrcp.f32 %v4753_v28  ;;  %v4754_v2 = vadd.f32 1.0, %v5893_v42 }
 0x395   : > { %v5897_v1 = vpop.eup %5896  ;;  %5908 = vrcp.f32 %v4751_v36  ;;  %v4752_v40 = vadd.f32 1.0, %v5895_v13 }
 0x396   : > { %v5899_v21 = vpop.eup %5898  ;;  %v4840_v57 = vmul.f32 %v5897_v1, %v8727_v31  ;;  %5910 = vrcp.f32 %v4754_v2 }
 0x397   : > { %v5901_v14 = vpop.eup %5900  ;;  %v4845_v48 = vmul.f32 %v5899_v21, %v8738_v47  ;;  %5912 = vrcp.f32 %v4752_v40 }
 0x398   : > { %v5903_v22 = vpop.eup %5902  ;;  %4872 = vst [vmem:[%s8663_s9 + $0xa8] sm:$0xff] %v4840_v57  ;;  %v4843_v26 = vmul.f32 %v5901_v14, %v8743_v0 }
 0x399   : > { %v5905_v59 = vpop.eup %5904  ;;  %4877 = vst [vmem:[%s8663_s9 + $0xd0] sm:$0xff] %v4845_v48  ;;  %v4846_v58 = vmul.f32 %v5903_v22, %v8749_v55 }
 0x39a   : > { %4875 = vst [vmem:[%s8663_s9 + $0xc0] sm:$0xff] %v4843_v26  ;;  %v4844_v31 = vmul.f32 %v5905_v59, %v8755_v45 }
 0x39b   : > { %4878 = vst [vmem:[%s8663_s9 + $0xd8] sm:$0xff] %v4846_v58 }
 0x39c   : > { %4876 = vst [vmem:[%s8663_s9 + $0xc8] sm:$0xff] %v4844_v31 }
 0x39e   : > { %v5907_v51 = vpop.eup %5906 }
 0x39f   : > { %v5909_v47 = vpop.eup %5908  ;;  %v4849_v41 = vmul.f32 %v5907_v51, %v8766_v33 }
 0x3a0   : > { %v5911_v50 = vpop.eup %5910  ;;  %v4847_v15 = vmul.f32 %v5909_v47, %v8770_v54 }
 0x3a1   : > { %v5913_v0 = vpop.eup %5912  ;;  %4881 = vst [vmem:[%s8663_s9 + $0xf0] sm:$0xff] %v4849_v41  ;;  %v4850_v35 = vmul.f32 %v5911_v50, %v8776_v17 }
 0x3a2   : > { %4879 = vst [vmem:[%s8663_s9 + $0xe0] sm:$0xff] %v4847_v15  ;;  %v4848_v55 = vmul.f32 %v5913_v0, %v8781_v16 }
 0x3a3   : > { %4882 = vst [vmem:[%s8663_s9 + $0xf8] sm:$0xff] %v4850_v35 }
 0x3a4   : > { %4880 = vst [vmem:[%s8663_s9 + $0xe8] sm:$0xff] %v4848_v55 }
 0x3a5 PF: > { %s15_s18 = sadd.s32 1, %s5939_s18  }
 0x3a6   : > { %p12_p4 = scmp.ge.s32.totalorder %s15_s18, 4  }
 0x3a8   :  { %14 = sbr.rel (!%p12_p4) target bundleno = 1 (0x1), region = 73 }

</bundles_post_ra>
